<compile_context>
chip_gen: v5e
topology: v5e:2x2
jax: 0.10.0
libtpu: 0.0.40
codegen_flags: <defaults>
</compile_context>

<pallas_src>
import functools

import jax
import jax.numpy as jnp
from jax.experimental import pallas as pl
from jax.experimental.pallas import tpu as pltpu


def _attention_kernel(x_ref, gamma_ref, beta_ref, wq_ref, wk_ref, wv_ref,
                      wo_ref, o_ref, *, eps):
    # x_ref:     (1, N, D)   f32   current batch element
    # gamma/beta:(1, D)      f32
    # wq/wk/wv:  (H, D, dh)  bf16  (scale already folded into wq)
    # wo:        (H, dh, D)  bf16
    # o_ref:     (1, N, D)
    heads = wq_ref.shape[0]
    N = x_ref.shape[1]
    D = x_ref.shape[2]

    x = x_ref[0].astype(jnp.float32)            # (N, D)
    gamma = gamma_ref[0].astype(jnp.float32)    # (D,)
    beta = beta_ref[0].astype(jnp.float32)      # (D,)

    # --- LayerNorm over last dim, f32 (matches nn.LayerNorm defaults) ---
    mean = jnp.mean(x, axis=-1, keepdims=True)
    xc = x - mean
    var = jnp.mean(xc * xc, axis=-1, keepdims=True)
    xn = xc * jax.lax.rsqrt(var + eps)
    xn = xn * gamma[None, :] + beta[None, :]    # (N, D) f32

    # bf16 at the MXU boundary; broadcast over heads for batched matmuls.
    xn_h = jnp.broadcast_to(xn.astype(jnp.bfloat16), (heads, N, D))

    wq = wq_ref[...]
    wk = wk_ref[...]
    wv = wv_ref[...]
    wo = wo_ref[...]

    # --- Head-batched QKV projections: (H,N,D) x (H,D,dh) -> (H,N,dh) ---
    q = jnp.einsum('hnd,hdk->hnk', xn_h, wq, preferred_element_type=jnp.float32)
    k = jnp.einsum('hnd,hdk->hnk', xn_h, wk, preferred_element_type=jnp.float32)
    v = jnp.einsum('hnd,hdk->hnk', xn_h, wv, preferred_element_type=jnp.float32)

    # --- Scores (scale folded into wq): (H,N,dh) x (H,N,dh) -> (H,N,N) ---
    s = jnp.einsum('hqk,hmk->hqm',
                   q.astype(jnp.bfloat16), k.astype(jnp.bfloat16),
                   preferred_element_type=jnp.float32)

    # --- Softmax in f32 (max-subtracted), approx reciprocal on EUP ---
    s = s - jnp.max(s, axis=-1, keepdims=True)
    e = jnp.exp(s)
    p = e * pl.reciprocal(jnp.sum(e, axis=-1, keepdims=True), approx=True)

    # --- Attention-weighted values: (H,N,N) x (H,N,dh) -> (H,N,dh) ---
    out = jnp.einsum('hqm,hmk->hqk',
                     p.astype(jnp.bfloat16), v.astype(jnp.bfloat16),
                     preferred_element_type=jnp.float32)

    # --- Output projection with per-head accumulation:
    #     (H,N,dh) x (H,dh,D) -> (H,N,D), then sum over heads -> (N,D) ---
    y_h = jnp.einsum('hqk,hkD->hqD',
                     out.astype(jnp.bfloat16), wo,
                     preferred_element_type=jnp.float32)
    y = jnp.sum(y_h, axis=0)

    o_ref[0] = y.astype(o_ref.dtype)


def attention_pallas(x, gamma, beta, w_qkv, w_out, *, heads, dim_head, eps=1e-5):
    """x: (B, N, D) f32; gamma/beta: (D,); w_qkv: (D, 3*heads*dim_head);
    w_out: (heads*dim_head, D). Returns (B, N, D)."""
    B, N, D = x.shape
    inner = heads * dim_head
    assert w_qkv.shape == (D, 3 * inner)
    assert w_out.shape == (inner, D)
    scale = dim_head ** (-0.5)

    # Re-pack weights head-major (outside the kernel, once):
    #   w_qkv columns are laid out [q | k | v] each as (h, d)  -> (D,3,H,dh)
    w3 = w_qkv.reshape(D, 3, heads, dim_head)
    wq = (jnp.transpose(w3[:, 0], (1, 0, 2)) * scale).astype(jnp.bfloat16)  # (H,D,dh), scale folded
    wk = jnp.transpose(w3[:, 1], (1, 0, 2)).astype(jnp.bfloat16)            # (H,D,dh)
    wv = jnp.transpose(w3[:, 2], (1, 0, 2)).astype(jnp.bfloat16)            # (H,D,dh)
    wo = w_out.reshape(heads, dim_head, D).astype(jnp.bfloat16)             # (H,dh,D)

    gamma2 = gamma.reshape(1, D).astype(jnp.float32)
    beta2 = beta.reshape(1, D).astype(jnp.float32)

    kernel = functools.partial(_attention_kernel, eps=eps)

    return pl.pallas_call(
        kernel,
        out_shape=jax.ShapeDtypeStruct((B, N, D), x.dtype),
        grid_spec=pltpu.PrefetchScalarGridSpec(
            num_scalar_prefetch=0,
            grid=(B,),
            in_specs=[
                pl.BlockSpec((1, N, D), lambda b: (b, 0, 0)),            # x: one batch row
                pl.BlockSpec((1, D), lambda b: (0, 0)),                  # gamma
                pl.BlockSpec((1, D), lambda b: (0, 0)),                  # beta
                pl.BlockSpec((heads, D, dim_head), lambda b: (0, 0, 0)),  # Wq (head-major, pre-scaled)
                pl.BlockSpec((heads, D, dim_head), lambda b: (0, 0, 0)),  # Wk
                pl.BlockSpec((heads, D, dim_head), lambda b: (0, 0, 0)),  # Wv
                pl.BlockSpec((heads, dim_head, D), lambda b: (0, 0, 0)),  # Wo
            ],
            out_specs=pl.BlockSpec((1, N, D), lambda b: (b, 0, 0)),
        ),
        compiler_params=pltpu.CompilerParams(
            dimension_semantics=("parallel",),
        ),
    )(x, gamma2, beta2, wq, wk, wv, wo)


def attention_reference(x, gamma, beta, w_qkv, w_out, *, heads, dim_head, eps=1e-5):
    """Pure-JAX f32 reference mirroring the PyTorch module."""
    B, N, D = x.shape
    inner = heads * dim_head
    mean = jnp.mean(x, axis=-1, keepdims=True)
    var = jnp.mean((x - mean) ** 2, axis=-1, keepdims=True)
    xn = (x - mean) / jnp.sqrt(var + eps) * gamma + beta
    qkv = xn @ w_qkv                                     # (B, N, 3*inner)
    q, k, v = jnp.split(qkv, 3, axis=-1)

    def split_heads(t):  # 'b n (h d) -> b h n d'
        return t.reshape(B, N, heads, dim_head).transpose(0, 2, 1, 3)

    q, k, v = map(split_heads, (q, k, v))
    dots = jnp.einsum("bhnd,bhmd->bhnm", q, k) * (dim_head ** -0.5)
    attn = jax.nn.softmax(dots, axis=-1)
    out = jnp.einsum("bhnm,bhmd->bhnd", attn, v)
    out = out.transpose(0, 2, 1, 3).reshape(B, N, inner)  # 'b h n d -> b n (h d)'
    return out @ w_out


if __name__ == "__main__":
    # Small, lane-dense shapes consistent with the module's forward.
    B, N, D = 2, 128, 128       # batch, tokens, dim
    heads, dim_head = 4, 64     # inner_dim = 256
    inner = heads * dim_head

    key = jax.random.PRNGKey(0)
    kx, kq, ko, kg, kb = jax.random.split(key, 5)

    x = jax.random.normal(kx, (B, N, D), dtype=jnp.float32)

    # Deterministic synthetic parameters (module __init__ shapes).
    gamma = 1.0 + 0.1 * jax.random.normal(kg, (D,), dtype=jnp.float32)  # LN weight
    beta = 0.05 * jax.random.normal(kb, (D,), dtype=jnp.float32)        # LN bias
    w_qkv = 0.05 * jax.random.normal(kq, (D, 3 * inner), dtype=jnp.float32)
    w_out = 0.05 * jax.random.normal(ko, (inner, D), dtype=jnp.float32)

    y = attention_pallas(x, gamma, beta, w_qkv, w_out,
                         heads=heads, dim_head=dim_head)
    y = jax.block_until_ready(y)

    y_ref = attention_reference(x, gamma, beta, w_qkv, w_out,
                                heads=heads, dim_head=dim_head)
    err = jnp.max(jnp.abs(y - y_ref))
    # bf16 MXU operands vs f32 reference -> tolerance above bf16 noise floor.
    assert err < 2e-2, f"max abs err {err}"

    print("KERNEL_OK")
</pallas_src>

<mosaic_0001>
module attributes {stable_mosaic.version = 11 : i64} {
  func.func @_attention_kernel(%arg0: i32, %arg1: memref<1x128x128xf32, #tpu.memory_space<vmem>>, %arg2: memref<1x128xf32, #tpu.memory_space<vmem>>, %arg3: memref<1x128xf32, #tpu.memory_space<vmem>>, %arg4: memref<4x128x64xbf16, #tpu.memory_space<vmem>>, %arg5: memref<4x128x64xbf16, #tpu.memory_space<vmem>>, %arg6: memref<4x128x64xbf16, #tpu.memory_space<vmem>>, %arg7: memref<4x64x128xbf16, #tpu.memory_space<vmem>>, %arg8: memref<1x128x128xf32, #tpu.memory_space<vmem>>) attributes {dimension_semantics = [#tpu.dimension_semantics<parallel>], iteration_bounds = array<i64: 2>, scalar_prefetch = 0 : i64, scratch_operands = 0 : i64, tpu.core_type = #tpu.core_type<tc>, window_params = [{transform_indices = @transform_0, window_bounds = array<i64: 1, 128, 128>}, {pipeline_mode = #tpu.pipeline_mode<synchronous>, transform_indices = @transform_1, window_bounds = array<i64: 1, 128>}, {pipeline_mode = #tpu.pipeline_mode<synchronous>, transform_indices = @transform_2, window_bounds = array<i64: 1, 128>}, {pipeline_mode = #tpu.pipeline_mode<synchronous>, transform_indices = @transform_3, window_bounds = array<i64: 4, 128, 64>}, {pipeline_mode = #tpu.pipeline_mode<synchronous>, transform_indices = @transform_4, window_bounds = array<i64: 4, 128, 64>}, {pipeline_mode = #tpu.pipeline_mode<synchronous>, transform_indices = @transform_5, window_bounds = array<i64: 4, 128, 64>}, {pipeline_mode = #tpu.pipeline_mode<synchronous>, transform_indices = @transform_6, window_bounds = array<i64: 4, 64, 128>}, {transform_indices = @transform_7, window_bounds = array<i64: 1, 128, 128>}]} {
    %c0 = arith.constant 0 : index
    %c0_0 = arith.constant 0 : index
    %c0_1 = arith.constant 0 : index
    %0 = vector.load %arg1[%c0, %c0_0, %c0_1] : memref<1x128x128xf32, #tpu.memory_space<vmem>>, vector<1x128x128xf32>
    %1 = vector.shape_cast %0 : vector<1x128x128xf32> to vector<128x128xf32>
    %c0_2 = arith.constant 0 : index
    %c0_3 = arith.constant 0 : index
    %2 = vector.load %arg2[%c0_2, %c0_3] : memref<1x128xf32, #tpu.memory_space<vmem>>, vector<1x128xf32>
    %3 = vector.shape_cast %2 : vector<1x128xf32> to vector<128xf32>
    %c0_4 = arith.constant 0 : index
    %c0_5 = arith.constant 0 : index
    %4 = vector.load %arg3[%c0_4, %c0_5] : memref<1x128xf32, #tpu.memory_space<vmem>>, vector<1x128xf32>
    %5 = vector.shape_cast %4 : vector<1x128xf32> to vector<128xf32>
    %cst = arith.constant dense<0.000000e+00> : vector<128xf32>
    %6 = vector.multi_reduction <add>, %1, %cst [1] : vector<128x128xf32> to vector<128xf32>
    %7 = vector.shape_cast %6 : vector<128xf32> to vector<128x1xf32>
    %cst_6 = arith.constant 1.280000e+02 : f32
    %8 = vector.broadcast %cst_6 : f32 to vector<128x1xf32>
    %9 = arith.divf %7, %8 : vector<128x1xf32>
    %10 = vector.broadcast %9 : vector<128x1xf32> to vector<128x128xf32>
    %11 = arith.subf %1, %10 : vector<128x128xf32>
    %12 = arith.mulf %11, %11 : vector<128x128xf32>
    %cst_7 = arith.constant dense<0.000000e+00> : vector<128xf32>
    %13 = vector.multi_reduction <add>, %12, %cst_7 [1] : vector<128x128xf32> to vector<128xf32>
    %14 = vector.shape_cast %13 : vector<128xf32> to vector<128x1xf32>
    %cst_8 = arith.constant 1.280000e+02 : f32
    %15 = vector.broadcast %cst_8 : f32 to vector<128x1xf32>
    %16 = arith.divf %14, %15 : vector<128x1xf32>
    %cst_9 = arith.constant 9.99999974E-6 : f32
    %17 = vector.broadcast %cst_9 : f32 to vector<128x1xf32>
    %18 = arith.addf %16, %17 : vector<128x1xf32>
    %19 = math.rsqrt %18 : vector<128x1xf32>
    %20 = vector.broadcast %19 : vector<128x1xf32> to vector<128x128xf32>
    %21 = arith.mulf %11, %20 : vector<128x128xf32>
    %22 = vector.shape_cast %3 : vector<128xf32> to vector<1x128xf32>
    %23 = vector.broadcast %22 : vector<1x128xf32> to vector<128x128xf32>
    %24 = arith.mulf %21, %23 : vector<128x128xf32>
    %25 = vector.shape_cast %5 : vector<128xf32> to vector<1x128xf32>
    %26 = vector.broadcast %25 : vector<1x128xf32> to vector<128x128xf32>
    %27 = arith.addf %24, %26 : vector<128x128xf32>
    %28 = arith.truncf %27 : vector<128x128xf32> to vector<128x128xbf16>
    %29 = vector.shape_cast %28 : vector<128x128xbf16> to vector<1x128x128xbf16>
    %30 = vector.broadcast %29 : vector<1x128x128xbf16> to vector<4x128x128xbf16>
    %c0_10 = arith.constant 0 : index
    %c0_11 = arith.constant 0 : index
    %c0_12 = arith.constant 0 : index
    %31 = vector.load %arg4[%c0_10, %c0_11, %c0_12] : memref<4x128x64xbf16, #tpu.memory_space<vmem>>, vector<4x128x64xbf16>
    %c0_13 = arith.constant 0 : index
    %c0_14 = arith.constant 0 : index
    %c0_15 = arith.constant 0 : index
    %32 = vector.load %arg5[%c0_13, %c0_14, %c0_15] : memref<4x128x64xbf16, #tpu.memory_space<vmem>>, vector<4x128x64xbf16>
    %c0_16 = arith.constant 0 : index
    %c0_17 = arith.constant 0 : index
    %c0_18 = arith.constant 0 : index
    %33 = vector.load %arg6[%c0_16, %c0_17, %c0_18] : memref<4x128x64xbf16, #tpu.memory_space<vmem>>, vector<4x128x64xbf16>
    %c0_19 = arith.constant 0 : index
    %c0_20 = arith.constant 0 : index
    %c0_21 = arith.constant 0 : index
    %34 = vector.load %arg7[%c0_19, %c0_20, %c0_21] : memref<4x64x128xbf16, #tpu.memory_space<vmem>>, vector<4x64x128xbf16>
    "tpu.trace_start"() <{level = 10 : i32, message = "hnd,hdk->hnk"}> : () -> ()
    %cst_22 = arith.constant dense<0.000000e+00> : vector<4x128x64xf32>
    %35 = tpu.matmul %30, %31, %cst_22 {dimension_numbers = #tpu.dot_dimension_numbers<[2], [1], [1], [2], [0, 0, 0, 1, 1, 2], [0], [0]>} : vector<4x128x128xbf16>, vector<4x128x64xbf16>, vector<4x128x64xf32> -> vector<4x128x64xf32>
    %cst_23 = arith.constant dense<0.000000e+00> : vector<4x128x64xf32>
    %36 = tpu.matmul %30, %32, %cst_23 {dimension_numbers = #tpu.dot_dimension_numbers<[2], [1], [1], [2], [0, 0, 0, 1, 1, 2], [0], [0]>} : vector<4x128x128xbf16>, vector<4x128x64xbf16>, vector<4x128x64xf32> -> vector<4x128x64xf32>
    %cst_24 = arith.constant dense<0.000000e+00> : vector<4x128x64xf32>
    %37 = tpu.matmul %30, %33, %cst_24 {dimension_numbers = #tpu.dot_dimension_numbers<[2], [1], [1], [2], [0, 0, 0, 1, 1, 2], [0], [0]>} : vector<4x128x128xbf16>, vector<4x128x64xbf16>, vector<4x128x64xf32> -> vector<4x128x64xf32>
    "tpu.trace_stop"() : () -> ()
    %38 = arith.truncf %35 : vector<4x128x64xf32> to vector<4x128x64xbf16>
    %39 = arith.truncf %36 : vector<4x128x64xf32> to vector<4x128x64xbf16>
    "tpu.trace_start"() <{level = 10 : i32, message = "hqk,hmk->hqm"}> : () -> ()
    %cst_25 = arith.constant dense<0.000000e+00> : vector<4x128x128xf32>
    %40 = tpu.matmul %38, %39, %cst_25 {dimension_numbers = #tpu.dot_dimension_numbers<[2], [2], [1], [1], [0, 0, 0, 1, 1, 1], [0], [0]>} : vector<4x128x64xbf16>, vector<4x128x64xbf16>, vector<4x128x128xf32> -> vector<4x128x128xf32>
    "tpu.trace_stop"() : () -> ()
    %cst_26 = arith.constant dense<0xFF800000> : vector<4x128xf32>
    %41 = vector.multi_reduction <maximumf>, %40, %cst_26 [2] : vector<4x128x128xf32> to vector<4x128xf32>
    %42 = vector.shape_cast %41 : vector<4x128xf32> to vector<4x128x1xf32>
    %43 = vector.broadcast %42 : vector<4x128x1xf32> to vector<4x128x128xf32>
    %44 = arith.subf %40, %43 : vector<4x128x128xf32>
    %45 = math.exp %44 : vector<4x128x128xf32>
    %cst_27 = arith.constant dense<0.000000e+00> : vector<4x128xf32>
    %46 = vector.multi_reduction <add>, %45, %cst_27 [2] : vector<4x128x128xf32> to vector<4x128xf32>
    %47 = vector.shape_cast %46 : vector<4x128xf32> to vector<4x128x1xf32>
    %48 = tpu.reciprocal %47 {approx = true} : vector<4x128x1xf32> -> vector<4x128x1xf32>
    %49 = vector.broadcast %48 : vector<4x128x1xf32> to vector<4x128x128xf32>
    %50 = arith.mulf %45, %49 : vector<4x128x128xf32>
    %51 = arith.truncf %50 : vector<4x128x128xf32> to vector<4x128x128xbf16>
    %52 = arith.truncf %37 : vector<4x128x64xf32> to vector<4x128x64xbf16>
    "tpu.trace_start"() <{level = 10 : i32, message = "hqm,hmk->hqk"}> : () -> ()
    %cst_28 = arith.constant dense<0.000000e+00> : vector<4x128x64xf32>
    %53 = tpu.matmul %51, %52, %cst_28 {dimension_numbers = #tpu.dot_dimension_numbers<[2], [1], [1], [2], [0, 0, 0, 1, 1, 2], [0], [0]>} : vector<4x128x128xbf16>, vector<4x128x64xbf16>, vector<4x128x64xf32> -> vector<4x128x64xf32>
    "tpu.trace_stop"() : () -> ()
    %54 = arith.truncf %53 : vector<4x128x64xf32> to vector<4x128x64xbf16>
    "tpu.trace_start"() <{level = 10 : i32, message = "hqk,hkD->hqD"}> : () -> ()
    %cst_29 = arith.constant dense<0.000000e+00> : vector<4x128x128xf32>
    %55 = tpu.matmul %54, %34, %cst_29 {dimension_numbers = #tpu.dot_dimension_numbers<[2], [1], [1], [2], [0, 0, 0, 1, 1, 2], [0], [0]>} : vector<4x128x64xbf16>, vector<4x64x128xbf16>, vector<4x128x128xf32> -> vector<4x128x128xf32>
    "tpu.trace_stop"() : () -> ()
    %cst_30 = arith.constant dense<0.000000e+00> : vector<128x128xf32>
    %56 = vector.multi_reduction <add>, %55, %cst_30 [0] : vector<4x128x128xf32> to vector<128x128xf32>
    %c0_31 = arith.constant 0 : index
    %c0_32 = arith.constant 0 : index
    %c0_33 = arith.constant 0 : index
    %57 = vector.load %arg8[%c0_31, %c0_32, %c0_33] : memref<1x128x128xf32, #tpu.memory_space<vmem>>, vector<1x128x128xf32>
    %58 = vector.shape_cast %57 : vector<1x128x128xf32> to vector<128x128xf32>
    %59 = vector.shape_cast %56 : vector<128x128xf32> to vector<1x128x128xf32>
    tpu.vector_store %arg8[%c0_31, %c0_32, %c0_33], %59 {strides = array<i32>} : memref<1x128x128xf32, #tpu.memory_space<vmem>>, vector<1x128x128xf32>,
    return
  }
  func.func @transform_0(%arg0: i32) -> (i32, i32, i32) {
    %c0_i32 = arith.constant 0 : i32
    %c0_i32_0 = arith.constant 0 : i32
    %c0_i32_1 = arith.constant 0 : i32
    return %arg0, %c0_i32, %c0_i32_0 : i32, i32, i32
  }
  func.func @transform_1(%arg0: i32) -> (i32, i32) {
    %c0_i32 = arith.constant 0 : i32
    %c0_i32_0 = arith.constant 0 : i32
    %c0_i32_1 = arith.constant 0 : i32
    return %c0_i32, %c0_i32_0 : i32, i32
  }
  func.func @transform_2(%arg0: i32) -> (i32, i32) {
    %c0_i32 = arith.constant 0 : i32
    %c0_i32_0 = arith.constant 0 : i32
    %c0_i32_1 = arith.constant 0 : i32
    return %c0_i32, %c0_i32_0 : i32, i32
  }
  func.func @transform_3(%arg0: i32) -> (i32, i32, i32) {
    %c0_i32 = arith.constant 0 : i32
    %c0_i32_0 = arith.constant 0 : i32
    %c0_i32_1 = arith.constant 0 : i32
    %c0_i32_2 = arith.constant 0 : i32
    return %c0_i32, %c0_i32_0, %c0_i32_1 : i32, i32, i32
  }
  func.func @transform_4(%arg0: i32) -> (i32, i32, i32) {
    %c0_i32 = arith.constant 0 : i32
    %c0_i32_0 = arith.constant 0 : i32
    %c0_i32_1 = arith.constant 0 : i32
    %c0_i32_2 = arith.constant 0 : i32
    return %c0_i32, %c0_i32_0, %c0_i32_1 : i32, i32, i32
  }
  func.func @transform_5(%arg0: i32) -> (i32, i32, i32) {
    %c0_i32 = arith.constant 0 : i32
    %c0_i32_0 = arith.constant 0 : i32
    %c0_i32_1 = arith.constant 0 : i32
    %c0_i32_2 = arith.constant 0 : i32
    return %c0_i32, %c0_i32_0, %c0_i32_1 : i32, i32, i32
  }
  func.func @transform_6(%arg0: i32) -> (i32, i32, i32) {
    %c0_i32 = arith.constant 0 : i32
    %c0_i32_0 = arith.constant 0 : i32
    %c0_i32_1 = arith.constant 0 : i32
    %c0_i32_2 = arith.constant 0 : i32
    return %c0_i32, %c0_i32_0, %c0_i32_1 : i32, i32, i32
  }
  func.func @transform_7(%arg0: i32) -> (i32, i32, i32) {
    %c0_i32 = arith.constant 0 : i32
    %c0_i32_0 = arith.constant 0 : i32
    %c0_i32_1 = arith.constant 0 : i32
    return %arg0, %c0_i32, %c0_i32_0 : i32, i32, i32
  }
}

</mosaic_0001>

<bundles_post_ra>
// kernel: tpu_custom_call.1
= control target key start
LH: loop header
LB: loop body
LE: loop exit
PB: predicated region body
PF: predicated region fallthrough
CT: control target
= control target key end

     0   :  { %12 = vsyncpa [#allocation3], 0  ;;  %s8548_s0 = inlined_call_operand.vmem [shape: f32[2,128,128], index: 0, kind: input, shape index: {}]   ;;  %s8549_s1 = inlined_call_operand.vmem [shape: f32[1,128], index: 1, kind: input, shape index: {}]   ;;  %s8550_s2 = inlined_call_operand.vmem [shape: f32[1,128], index: 2, kind: input, shape index: {}]   ;;  %s8551_s3 = inlined_call_operand.vmem [shape: bf16[4,128,64], index: 3, kind: input, shape index: {}]   ;;  %s8552_s4 = inlined_call_operand.vmem [shape: bf16[4,128,64], index: 4, kind: input, shape index: {}]   ;;  %s8553_s5 = inlined_call_operand.vmem [shape: bf16[4,128,64], index: 5, kind: input, shape index: {}]   ;;  %s8554_s6 = inlined_call_operand.vmem [shape: bf16[4,64,128], index: 6, kind: input, shape index: {}]   ;;  %s8555_s7 = inlined_call_operand.hbm [shape: f32[2,128,128], index: 7, kind: output, shape index: {}]  }
   0x1   :  { %14 = vsyncpa [#allocation3 + $0x1], 0  ;;  %s6067_s24 = smov 0   ;;  %s6069_s25 = smov 0  }
   0x2   :  { %s6071_s26 = smov 0   ;;  %s6073_s27 = smov 0  }
   0x3 LB: > { %s6088_s28 = sadd.s32 4294967295, %s6022_s27   ;;  %s4988_s29 = sadd.s32 4294967294, %s6022_s27   ;;  %s6022_s27 = sphi %s6073_s27, %s8985_s27   ;;  %s6018_s26 = sphi %s6071_s26, %s8984_s26   ;;  %s6014_s25 = sphi %s6069_s25, %s8983_s25   ;;  %s6010_s24 = sphi %s6067_s24, %s8982_s24  }
   0x4   : > { %s6092_s30 = sadd.s32 1, %s6022_s27   ;;  %s179_s8 = sadd.s32 1, %s6018_s26 }
   0x5   : > { %s176_s9 = ssub.s32 %s6022_s27, %s6092_s30  ;;  %p189_p0 = scmp.ne.s32.totalorder %s6018_s26, %s6014_s25 }
   0x6   : > { %p177_p1 = scmp.eq.s32.totalorder %s176_s9, 0  ;;  %p190_p2 = scmp.eq.s32.totalorder %s6088_s28, 1 }
   0x7   : > { %p195_p3 = scmp.ne.s32.totalorder %s6014_s25, %s6010_s24  ;;  %p196_p4 = scmp.eq.s32.totalorder %s4988_s29, 1 }
   0x8   : > { %s6103_s10 = scalar_select %p177_p1, %s6018_s26, %s179_s8  }
   0x9   : > { %p6105_p5 = por %p190_p2, %p189_p0  ;;  %p6109_p6 = por %p196_p4, %p195_p3 }
   0xa   : > { %p4991_p7 = scmp.ge.s32.totalorder %s6022_s27, 1  ;;  %p240_p8 = scmp.lt.s32.totalorder %s6022_s27, 3 }
   0xc   : > { %p241_p9 = pnand %p4991_p7, %p240_p8 }
   0xe   : > { %244 = sbr.rel (%p241_p9) target bundleno = 1781 (0x6f5), region = 48 }
  0x13   : > { %p272_p10 = scmp.lt.s32.totalorder %s6088_s28, 1  ;;  %v6024_v7 = vmov 128.0   ;;  %v5520_v50 = vld [vmem:[%s8551_s3 + $0x38] sm:$0xff]  ;;  %v5519_v54 = vld [vmem:[%s8551_s3 + $0x30] sm:$0xff]  ;;  %v5518_v58 = vld [vmem:[%s8551_s3 + $0x28] sm:$0xff]  ;;  %s269_s9 = sand.u32 1, %s6014_s25  }
  0x14   : > { %5670 = vrcp.f32 %v6024_v7  ;;  %v5528_v51 = vld [vmem:[%s8551_s3 + $0x78] sm:$0xff]  ;;  %997 = vmatpush.bf16.msra.mxu0 %v5520_v50  ;;  %v5527_v55 = vld [vmem:[%s8551_s3 + $0x70] sm:$0xff]  ;;  %v5526_v59 = vld [vmem:[%s8551_s3 + $0x68] sm:$0xff]  ;;  %s5625_s15 = sshll.u32 %s6088_s28, 7  ;;  %s5980_s8 = scalar_lea.hbm %s8555_s7, 256 }
  0x15   : > { %s273_s13 = scalar_select %p272_p10, %s6088_s28, 1  ;;  %v5536_v52 = vld [vmem:[%s8551_s3 + $0xb8] sm:$0xff]  ;;  %1094 = vmatpush.bf16.msra.mxu1 %v5528_v51  ;;  %v5535_v56 = vld [vmem:[%s8551_s3 + $0xb0] sm:$0xff]  ;;  %v5534_v60 = vld [vmem:[%s8551_s3 + $0xa8] sm:$0xff] }
  0x16   : > { %v5544_v53 = vld [vmem:[%s8551_s3 + $0xf8] sm:$0xff]  ;;  %1191 = vmatpush.bf16.msra.mxu2 %v5536_v52  ;;  %v5543_v57 = vld [vmem:[%s8551_s3 + $0xf0] sm:$0xff]  ;;  %v5542_v61 = vld [vmem:[%s8551_s3 + $0xe8] sm:$0xff]  ;;  %s4922_s19 = scalar_lea.hbm %s8555_s7, %s5625_s15  ;;  %s4911_s28 = scalar_lea.sflag [#allocation3], %s269_s9 }
  0x17   : > { %s5512_s14 = sshll.u32 %s273_s13, 7  ;;  %1288 = vmatpush.bf16.msra.mxu3 %v5544_v53  ;;  %v5517_v62 = vld [vmem:[%s8551_s3 + $0x20] sm:$0xff]  ;;  %s4992_s13 = sshll.u32 %s269_s9, 7 }
  0x18   : > { %s6120_s17 = scalar_lea.vmem %s8548_s0, %s5512_s14  ;;  %998 = vmatpush.bf16.msra.mxu0 %v5519_v54  ;;  %v5525_v63 = vld [vmem:[%s8551_s3 + $0x60] sm:$0xff]  ;;  %s8496_s14 = scalar_lea.vmem [#allocation2], %s4992_s13 }
  0x19   : > { %v280_v0 = vld [vmem:[%s6120_s17 + $0x10] sm:$0xff]  ;;  %v278_v1 = vld [vmem:[%s6120_s17] sm:$0xff]  ;;  %v281_v3 = vld [vmem:[%s6120_s17 + $0x18] sm:$0xff]  ;;  %1095 = vmatpush.bf16.msra.mxu1 %v5527_v55  ;;  %s4923_s20 = sshll.u32 %s8496_s14, 4  ;;  %s4924_s20 = int_to_ptr.vmem [resolvable:$true] %s4923_s20 }
  0x1a   : > { %300 = vadd.xlane.f32.xlu1 %v280_v0  ;;  %296 = vadd.xlane.f32.xlu0 %v278_v1  ;;  %v282_v2 = vld [vmem:[%s6120_s17 + $0x20] sm:$0xff]  ;;  %v279_v4 = vld [vmem:[%s6120_s17 + $0x8] sm:$0xff]  ;;  %v284_v6 = vld [vmem:[%s6120_s17 + $0x30] sm:$0xff]  ;;  %v5671_v8 = vpop.eup %5670 }
  0x1b   : > { %304 = vadd.xlane.f32.xlu2 %v282_v2  ;;  %v283_v5 = vld [vmem:[%s6120_s17 + $0x28] sm:$0xff]  ;;  %v329_v9 = vmul.f32 128.0, %v5671_v8  ;;  %vm333_vm0 = vweird.f32 %v5671_v8  ;;  %v6145_v28 = vld [vmem:[%s6120_s17 + $0x38] sm:$0xff]  ;;  %v6160_v36 = vld [vmem:[%s6120_s17 + $0x40] sm:$0xff]  ;;  %1192 = vmatpush.bf16.msra.mxu2 %v5535_v56 }
  0x1c   : > { %v6171_v42 = vld [vmem:[%s6120_s17 + $0x58] sm:$0xff]  ;;  %v6174_v43 = vld [vmem:[%s6120_s17 + $0x48] sm:$0xff]  ;;  %v6183_v46 = vld [vmem:[%s6120_s17 + $0x60] sm:$0xff]  ;;  %1289 = vmatpush.bf16.msra.mxu3 %v5543_v57  ;;  %999 = vmatpush.bf16.msra.mxu0 %v5518_v58 }
  0x1d   : > { %v330_v10 = vsub.f32 1.0, %v329_v9  ;;  %v6186_v47 = vld [vmem:[%s6120_s17 + $0x50] sm:$0xff]  ;;  %v6191_v48 = vld [vmem:[%s6120_s17 + $0x68] sm:$0xff]  ;;  %1096 = vmatpush.bf16.msra.mxu1 %v5526_v59 }
  0x1e   : > { %v6195_v49 = vld [vmem:[%s6120_s17 + $0x70] sm:$0xff] }
  0x1f   : > { %v331_v11 = vmul.f32 %v5671_v8, %v330_v10  ;;  %1193 = vmatpush.bf16.msra.mxu2 %v5534_v60  ;;  %v5523_v9 = vld [vmem:[%s8551_s3 + $0x50] sm:$0xff] }
  0x20   : > { %1290 = vmatpush.bf16.msra.mxu3 %v5542_v61  ;;  %1000 = vmatpush.bf16.msra.mxu0 %v5517_v62  ;;  %v5531_v10 = vld [vmem:[%s8551_s3 + $0x90] sm:$0xff] }
  0x21   : > { %v332_v12 = vadd.f32 %v5671_v8, %v331_v11  ;;  %1097 = vmatpush.bf16.msra.mxu1 %v5525_v63  ;;  %v5539_v11 = vld [vmem:[%s8551_s3 + $0xd0] sm:$0xff] }
  0x22   : > { %302 = vadd.xlane.f32.xlu1 %v281_v3  ;;  %298 = vadd.xlane.f32.xlu0 %v279_v4 }
  0x23   : > { %306 = vadd.xlane.f32.xlu2 %v283_v5  ;;  %v6129_v13 = vsel %vm333_vm0, %v5671_v8, %v332_v12  ;;  %v5515_v8 = vld [vmem:[%s8551_s3 + $0x10] sm:$0xff] }
  0x2b   : > { %308 = vadd.xlane.f32.xlu2 %v284_v6 }
  0x8d   : > { %v301_v14 = vpop.xlane.xlu1 %300  ;;  %v297_v15 = vpop.xlane.xlu0 %296 }
  0x8e   : > { %v335_v16 = vmul.f32 %v6129_v13, %v297_v15  ;;  %v305_v18 = vpop.xlane.xlu2 %304  ;;  %v337_v27 = vmul.f32 %v6129_v13, %v301_v14  ;;  %v5514_v14 = vld [vmem:[%s8551_s3 + $0x8] sm:$0xff] }
  0x8f   : > { %v339_v26 = vmul.f32 %v6129_v13, %v305_v18  ;;  %v5522_v15 = vld [vmem:[%s8551_s3 + $0x48] sm:$0xff] }
  0x90   : > { %v6132_v17 = vsub.f32 %v278_v1, %v335_v16  ;;  %v6154_v33 = vsub.f32 %v280_v0, %v337_v27  ;;  %v5533_v0 = vld [vmem:[%s8551_s3 + $0xa0] sm:$0xff]  ;;  %v5530_v16 = vld [vmem:[%s8551_s3 + $0x88] sm:$0xff] }
  0x91   : > { %v6152_v32 = vsub.f32 %v282_v2, %v339_v26  ;;  %v5541_v1 = vld [vmem:[%s8551_s3 + $0xe0] sm:$0xff]  ;;  %1194 = vmatpush.bf16.msra.mxu2 %v5533_v0  ;;  %v5516_v2 = vld [vmem:[%s8551_s3 + $0x18] sm:$0xff]  ;;  %v5538_v18 = vld [vmem:[%s8551_s3 + $0xc8] sm:$0xff] }
  0x92   : > { %v367_v19 = vmul.f32 %v6132_v17, %v6132_v17  ;;  %v369_v37 = vmul.f32 %v6154_v33, %v6154_v33  ;;  %1291 = vmatpush.bf16.msra.mxu3 %v5541_v1  ;;  %1001 = vmatpush.bf16.msra.mxu0 %v5516_v2  ;;  %v5513_v26 = vld [vmem:[%s8551_s3] sm:$0xff] }
  0x93   : > { %v371_v34 = vmul.f32 %v6152_v32, %v6152_v32  ;;  %v5521_v27 = vld [vmem:[%s8551_s3 + $0x40] sm:$0xff] }
  0x94   : > { %383 = vadd.xlane.f32.xlu0 %v367_v19 }
  0x95   : > { %v303_v20 = vpop.xlane.xlu1 %302  ;;  %v299_v21 = vpop.xlane.xlu0 %298 }
  0x96   : > { %v338_v22 = vmul.f32 %v6129_v13, %v303_v20  ;;  %v336_v23 = vmul.f32 %v6129_v13, %v299_v21  ;;  %v307_v31 = vpop.xlane.xlu2 %306  ;;  %1002 = vmatpush.bf16.msra.mxu0 %v5515_v8 }
  0x97   : > { %v340_v35 = vmul.f32 %v6129_v13, %v307_v31  ;;  %v5537_v31 = vld [vmem:[%s8551_s3 + $0xc0] sm:$0xff] }
  0x98   : > { %v6138_v24 = vsub.f32 %v281_v3, %v338_v22  ;;  %v6140_v25 = vsub.f32 %v279_v4, %v336_v23  ;;  %v5524_v3 = vld [vmem:[%s8551_s3 + $0x58] sm:$0xff] }
  0x99   : > { %v6165_v38 = vsub.f32 %v283_v5, %v340_v35  ;;  %v5532_v4 = vld [vmem:[%s8551_s3 + $0x98] sm:$0xff]  ;;  %1098 = vmatpush.bf16.msra.mxu1 %v5524_v3 }
  0x9a   : > { %v370_v29 = vmul.f32 %v6138_v24, %v6138_v24  ;;  %v368_v30 = vmul.f32 %v6140_v25, %v6140_v25  ;;  %v5540_v5 = vld [vmem:[%s8551_s3 + $0xd8] sm:$0xff]  ;;  %1195 = vmatpush.bf16.msra.mxu2 %v5532_v4  ;;  %1003 = vmatpush.bf16.msra.mxu0 %v5514_v14  ;;  %v6337_v14 = vld [vmem:[%s8550_s2] ss:$0 sm:$0xff] }
  0x9b   : > { %v372_v40 = vmul.f32 %v6165_v38, %v6165_v38  ;;  %1292 = vmatpush.bf16.msra.mxu3 %v5540_v5 }
  0x9c   : > { %389 = vadd.xlane.f32.xlu2 %v370_v29  ;;  %310 = vadd.xlane.f32.xlu0 %v6145_v28  ;;  %v5529_v29 = vld [vmem:[%s8551_s3 + $0x80] sm:$0xff] }
  0x9d   : > { %385 = vadd.xlane.f32.xlu1 %v368_v30  ;;  %1099 = vmatpush.bf16.msra.mxu1 %v5523_v9 }
  0x9e   : > { %v309_v39 = vpop.xlane.xlu2 %308  ;;  %1196 = vmatpush.bf16.msra.mxu2 %v5531_v10  ;;  %1004 = vmatpush.bf16.msra.mxu0 %v5513_v26 }
  0x9f   : > { %v341_v41 = vmul.f32 %v6129_v13, %v309_v39  ;;  %1293 = vmatpush.bf16.msra.mxu3 %v5539_v11 }
  0xa1   : > { %v6177_v44 = vsub.f32 %v284_v6, %v341_v41  ;;  %1100 = vmatpush.bf16.msra.mxu1 %v5522_v15 }
  0xa2   : > { %1197 = vmatpush.bf16.msra.mxu2 %v5530_v16 }
  0xa3   : > { %v373_v45 = vmul.f32 %v6177_v44, %v6177_v44  ;;  %1294 = vmatpush.bf16.msra.mxu3 %v5538_v18 }
  0xa4   : > { %391 = vadd.xlane.f32.xlu2 %v371_v34  ;;  %312 = vadd.xlane.f32.xlu0 %v6160_v36 }
  0xa5   : > { %387 = vadd.xlane.f32.xlu1 %v369_v37  ;;  %1101 = vmatpush.bf16.msra.mxu1 %v5521_v27 }
  0xa6   : > { %1198 = vmatpush.bf16.msra.mxu2 %v5529_v29  ;;  %v6356_v29 = vld [vmem:[%s6120_s17 + $0x78] sm:$0xff]  ;;  %s4925_s17 = sshll.u32 %s4922_s19, 4  ;;  %s4926_s17 = int_to_ptr.hbm [resolvable:$true] %s4925_s17 }
  0xa7   : > { %1295 = vmatpush.bf16.msra.mxu3 %v5537_v31  ;;  %s5974_s21 = sshra.s32 %s4926_s17, 4  ;;  %s5975_s21 = int_to_ptr.hbm [resolvable:$true] %s5974_s21 }
  0xa8   : > { %s5976_s22 = scalar_lea.hbm %s5975_s21, 128  ;;  %p5981_p0 = scmp.lt.s32.totalorder %s5975_s21, %s8555_s7 }
  0xa9   : > { %p5977_p11 = scmp.ne.s32.totalorder %s5975_s21, %s5976_s22  ;;  %p5982_p1 = scmp.lt.s32.totalorder %s5980_s8, %s5976_s22 }
  0xab   : > { %p5978_p12 = pnand %p5977_p11, %p6105_p5  ;;  %p5983_p2 = por %p5982_p1, %p5981_p0 }
  0xac   : > { %318 = vadd.xlane.f32.xlu2 %v6171_v42  ;;  %393 = vadd.xlane.f32.xlu0 %v372_v40 }
  0xad   : > { %314 = vadd.xlane.f32.xlu1 %v6174_v43  ;;  %p5979_p13 = pneg %p5978_p12 }
  0xaf   : > { %p5984_p3 = pnand %p5983_p2, %p5979_p13 }
  0xb4   : > { %320 = vadd.xlane.f32.xlu2 %v6183_v46  ;;  %395 = vadd.xlane.f32.xlu0 %v373_v45 }
  0xb5   : > { %316 = vadd.xlane.f32.xlu1 %v6186_v47 }
  0xbc   : > { %322 = vadd.xlane.f32.xlu0 %v6191_v48 }
  0xc4   : > { %324 = vadd.xlane.f32.xlu0 %v6195_v49 }
 0x107   : > { %v384_v6 = vpop.xlane.xlu0 %383 }
 0x108   : > { %v415_v7 = vmul.f32 %v384_v6, %v6129_v13 }
 0x10a   : > { %v431_v12 = vadd.f32 1e-05, %v415_v7 }
 0x10c   : > { %5672 = vrsqrt.f32 %v431_v12  ;;  %vm453_vm2 = vweird.f32 %v431_v12 }
 0x10f   : > { %v390_v19 = vpop.xlane.xlu2 %389  ;;  %v311_v20 = vpop.xlane.xlu0 %310 }
 0x110   : > { %v418_v21 = vmul.f32 %v390_v19, %v6129_v13  ;;  %v386_v22 = vpop.xlane.xlu1 %385  ;;  %v342_v23 = vmul.f32 %v6129_v13, %v311_v20 }
 0x111   : > { %v416_v30 = vmul.f32 %v386_v22, %v6129_v13 }
 0x112   : > { %v5673_v34 = vpop.eup %5672  ;;  %v6298_v35 = vadd.f32 1e-05, %v418_v21  ;;  %v6301_v37 = vsub.f32 %v6145_v28, %v342_v23 }
 0x113   : > { %v448_v39 = vmul.f32 %v5673_v34, %v431_v12  ;;  %v432_v40 = vadd.f32 1e-05, %v416_v30  ;;  %vm454_vm1 = vweird.f32 %v5673_v34 }
 0x114   : > { %5674 = vrsqrt.f32 %v6298_v35  ;;  %v374_v41 = vmul.f32 %v6301_v37, %v6301_v37  ;;  %vm455_vm3 = vmor %vm453_vm2, %vm454_vm1  ;;  %vm483_vm7 = vweird.f32 %v6298_v35 }
 0x115   : > { %v449_v45 = vmul.f32 %v5673_v34, %v448_v39  ;;  %5676 = vrsqrt.f32 %v432_v40  ;;  %vm463_vm4 = vweird.f32 %v432_v40 }
 0x116   : > { %397 = vadd.xlane.f32.xlu1 %v374_v41 }
 0x117   : > { %v450_v50 = vmul.f32 0.5, %v449_v45  ;;  %v392_v51 = vpop.xlane.xlu2 %391  ;;  %v313_v52 = vpop.xlane.xlu0 %312 }
 0x118   : > { %v419_v28 = vmul.f32 %v392_v51, %v6129_v13  ;;  %v388_v53 = vpop.xlane.xlu1 %387  ;;  %v343_v54 = vmul.f32 %v6129_v13, %v313_v52 }
 0x119   : > { %v451_v55 = vsub.f32 1.5, %v450_v50  ;;  %v417_v56 = vmul.f32 %v388_v53, %v6129_v13 }
 0x11a   : > { %v6309_v57 = vpop.eup %5674  ;;  %v6312_v58 = vsub.f32 %v6160_v36, %v343_v54  ;;  %v6316_v62 = vadd.f32 1e-05, %v419_v28  ;;  %v6325_v36 = vld [vmem:[%s8549_s1] ss:$0 sm:$0xff] }
 0x11b   : > { %v5677_v59 = vpop.eup %5676  ;;  %v452_v60 = vmul.f32 %v5673_v34, %v451_v55  ;;  %v478_v61 = vmul.f32 %v6309_v57, %v6298_v35  ;;  %v6318_v63 = vadd.f32 1e-05, %v417_v56  ;;  %vm484_vm8 = vweird.f32 %v6309_v57 }
 0x11c   : > { %v458_v0 = vmul.f32 %v5677_v59, %v432_v40  ;;  %v375_v5 = vmul.f32 %v6312_v58, %v6312_v58  ;;  %vm464_vm5 = vweird.f32 %v5677_v59  ;;  %vm6368_vm10 = vmor %vm483_vm7, %vm484_vm8  ;;  %vm493_vm15 = vweird.f32 %v6316_v62 }
 0x11d   : > { %v456_v1 = vsel %vm455_vm3, %v5673_v34, %v452_v60  ;;  %v479_v2 = vmul.f32 %v6309_v57, %v478_v61  ;;  %5678 = vrsqrt.f32 %v6318_v63  ;;  %vm465_vm6 = vmor %vm463_vm4, %vm464_vm5  ;;  %vm473_vm9 = vweird.f32 %v6318_v63 }
 0x11e   : > { %v607_v3 = vmul.f32 %v456_v1, %v6132_v17  ;;  %v459_v4 = vmul.f32 %v5677_v59, %v458_v0  ;;  %5680 = vrsqrt.f32 %v6316_v62  ;;  %399 = vadd.xlane.f32.xlu1 %v375_v5 }
 0x11f   : > { %v480_v6 = vmul.f32 0.5, %v479_v2  ;;  %v319_v7 = vpop.xlane.xlu2 %318  ;;  %v394_v8 = vpop.xlane.xlu0 %393 }
 0x120   : > { %v460_v9 = vmul.f32 0.5, %v459_v4  ;;  %v346_v10 = vmul.f32 %v6129_v13, %v319_v7  ;;  %v315_v11 = vpop.xlane.xlu1 %314  ;;  %v420_v12 = vmul.f32 %v394_v8, %v6129_v13  ;;  %v626_v15 = vmul.f32 %v6325_v36, %v607_v3 }
 0x121   : > { %v344_v17 = vmul.f32 %v6129_v13, %v315_v11  ;;  %v481_v20 = vsub.f32 1.5, %v480_v6 }
 0x122   : > { %v461_v16 = vsub.f32 1.5, %v460_v9  ;;  %v6340_v18 = vadd.f32 1e-05, %v420_v12  ;;  %v6344_v21 = vsub.f32 %v6171_v42, %v346_v10  ;;  %v645_v30 = vadd.f32 %v6337_v14, %v626_v15 }
 0x123   : > { %v5679_v19 = vpop.eup %5678  ;;  %v6347_v22 = vsub.f32 %v6174_v43, %v344_v17  ;;  %v482_v43 = vmul.f32 %v6309_v57, %v481_v20 }
 0x124   : > { %v462_v23 = vmul.f32 %v5677_v59, %v461_v16  ;;  %v468_v26 = vmul.f32 %v5679_v19, %v6318_v63  ;;  %v6350_v27 = vpop.eup %5680  ;;  %5682 = vrsqrt.f32 %v6340_v18  ;;  %v378_v39 = vmul.f32 %v6344_v21, %v6344_v21 }
 0x125   : > { %v376_v35 = vmul.f32 %v6347_v22, %v6347_v22  ;;  %v488_v50 = vmul.f32 %v6350_v27, %v6316_v62  ;;  %vm474_vm11 = vweird.f32 %v5679_v19  ;;  %v661_v54 = vpack.c.bf16 %v645_v30, %v645_v30 }
 0x126   : > { %v466_v42 = vsel %vm465_vm6, %v5677_v59, %v462_v23  ;;  %v469_v31 = vmul.f32 %v5679_v19, %v468_v26  ;;  %326 = vadd.xlane.f32.xlu1 %v6356_v29  ;;  %405 = vadd.xlane.f32.xlu0 %v378_v39  ;;  %v486_v59 = vsel %vm6368_vm10, %v6309_v57, %v482_v43  ;;  %vm475_vm12 = vmor %vm473_vm9, %vm474_vm11  ;;  %vm503_vm13 = vweird.f32 %v6340_v18 }
 0x127   : > { %v608_v34 = vmul.f32 %v466_v42, %v6140_v25  ;;  %v321_v40 = vpop.xlane.xlu2 %320  ;;  %v6366_v41 = vpop.xlane.xlu0 %395  ;;  %401 = vadd.xlane.f32.xlu2 %v376_v35  ;;  %v489_v1 = vmul.f32 %v6350_v27, %v488_v50  ;;  %v917_v5 = vunpack.c.l.b16 %v661_v54  ;;  %v610_v57 = vmul.f32 %v486_v59, %v6138_v24 }
 0x128   : > { %v470_v51 = vmul.f32 0.5, %v469_v31  ;;  %v347_v25 = vmul.f32 %v6129_v13, %v321_v40  ;;  %v317_v52 = vpop.xlane.xlu1 %316  ;;  %vm494_vm0 = vweird.f32 %v6350_v27 }
 0x129   : > { %v627_v28 = vmul.f32 %v6325_v36, %v608_v34  ;;  %v345_v53 = vmul.f32 %v6129_v13, %v317_v52  ;;  %v490_v10 = vmul.f32 0.5, %v489_v1  ;;  %v629_v16 = vmul.f32 %v6325_v36, %v610_v57  ;;  %vm495_vm2 = vmor %vm493_vm15, %vm494_vm0 }
 0x12a   : > { %v471_v55 = vsub.f32 1.5, %v470_v51  ;;  %v5683_v56 = vpop.eup %5682  ;;  %v6385_v61 = vsub.f32 %v6183_v46, %v347_v25 }
 0x12b   : > { %v646_v60 = vadd.f32 %v6337_v14, %v627_v28  ;;  %v6388_v0 = vsub.f32 %v6186_v47, %v345_v53  ;;  %v498_v3 = vmul.f32 %v5683_v56, %v6340_v18  ;;  %vm504_vm14 = vweird.f32 %v5683_v56 }
 0x12c   : > { %v472_v2 = vmul.f32 %v5679_v19, %v471_v55  ;;  %v379_v47 = vmul.f32 %v6385_v61, %v6385_v61  ;;  %v648_v26 = vadd.f32 %v6337_v14, %v629_v16  ;;  %vm505_vm1 = vmor %vm503_vm13, %vm504_vm14 }
 0x12d   : > { %v662_v4 = vpack.c.bf16 %v646_v60, %v646_v60  ;;  %v499_v7 = vmul.f32 %v5683_v56, %v498_v3  ;;  %v377_v46 = vmul.f32 %v6388_v0, %v6388_v0 }
 0x12e   : > { %v476_v6 = vsel %vm475_vm12, %v5679_v19, %v472_v2  ;;  %407 = vadd.xlane.f32.xlu1 %v379_v47  ;;  %v491_v19 = vsub.f32 1.5, %v490_v10  ;;  %v664_v39 = vpack.c.bf16 %v648_v26, %v648_v26 }
 0x12f   : > { %v918_v8 = vunpack.c.l.b16 %v662_v4  ;;  %v609_v63 = vmul.f32 %v476_v6, %v6154_v33  ;;  %v323_v9 = vpop.xlane.xlu0 %322  ;;  %v500_v11 = vmul.f32 0.5, %v499_v7  ;;  %403 = vadd.xlane.f32.xlu2 %v377_v46 }
 0x130   : > { %v348_v12 = vmul.f32 %v6129_v13, %v323_v9  ;;  %v492_v18 = vmul.f32 %v6350_v27, %v491_v19  ;;  %v920_v50 = vunpack.c.l.b16 %v664_v39 }
 0x131   : > { %v6399_v17 = vpack.c.b16 %v918_v8, %v917_v5  ;;  %v628_v24 = vmul.f32 %v6325_v36, %v609_v63  ;;  %v501_v15 = vsub.f32 1.5, %v500_v11 }
 0x132   : > { %v6403_v33 = vsub.f32 %v6191_v48, %v348_v12  ;;  %v496_v62 = vsel %vm495_vm2, %v6350_v27, %v492_v18 }
 0x133   : > { %1005 = vmatmul.bf16.vlgmr.msra.gmra.mxu0 %v6399_v17  ;;  %1102 = vmatmul.bf16.vlgmr.msra.gmra.mxu1 %v6399_v17  ;;  %v647_v20 = vadd.f32 %v6337_v14, %v628_v24  ;;  %v502_v23 = vmul.f32 %v5683_v56, %v501_v15  ;;  %v611_v51 = vmul.f32 %v496_v62, %v6152_v32 }
 0x134   : > { %1199 = vmatmul.bf16.vlgmr.msra.gmra.mxu2 %v6399_v17  ;;  %1296 = vmatmul.bf16.vlgmr.msra.gmra.mxu3 %v6399_v17  ;;  %v380_v48 = vmul.f32 %v6403_v33, %v6403_v33 }
 0x135   : > { %v663_v31 = vpack.c.bf16 %v647_v20, %v647_v20  ;;  %v506_v43 = vsel %vm505_vm1, %v5683_v56, %v502_v23  ;;  %v421_v56 = vmul.f32 %v6366_v41, %v6129_v13 }
 0x136   : > { %v612_v45 = vmul.f32 %v506_v43, %v6165_v38 }
 0x137   : > { %v325_v30 = vpop.xlane.xlu0 %324  ;;  %409 = vadd.xlane.f32.xlu2 %v380_v48  ;;  %v919_v40 = vunpack.c.l.b16 %v663_v31  ;;  %v437_v59 = vadd.f32 1e-05, %v421_v56 }
 0x138   : > { %v349_v42 = vmul.f32 %v6129_v13, %v325_v30  ;;  %v631_v52 = vmul.f32 %v6325_v36, %v612_v45 }
 0x139   : > { %v6427_v25 = vpack.c.b16 %v920_v50, %v919_v40  ;;  %5684 = vrsqrt.f32 %v437_v59  ;;  %vm513_vm3 = vweird.f32 %v437_v59 }
 0x13a   : > { %v6420_v34 = vsub.f32 %v6195_v49, %v349_v42  ;;  %v630_v49 = vmul.f32 %v6325_v36, %v611_v51  ;;  %v650_v38 = vadd.f32 %v6337_v14, %v631_v52 }
 0x13c   : > { %v381_v35 = vmul.f32 %v6420_v34, %v6420_v34  ;;  %v649_v27 = vadd.f32 %v6337_v14, %v630_v49  ;;  %v666_v28 = vpack.c.bf16 %v650_v38, %v650_v38 }
 0x13e   : > { %411 = vadd.xlane.f32.xlu0 %v381_v35  ;;  %v665_v32 = vpack.c.bf16 %v649_v27, %v649_v27  ;;  %v922_v53 = vunpack.c.l.b16 %v666_v28 }
 0x13f   : > { %v5685_v60 = vpop.eup %5684 }
 0x140   : > { %v921_v54 = vunpack.c.l.b16 %v665_v32  ;;  %v508_v1 = vmul.f32 %v5685_v60, %v437_v59  ;;  %vm514_vm4 = vweird.f32 %v5685_v60 }
 0x141   : > { %vm515_vm5 = vmor %vm513_vm3, %vm514_vm4 }
 0x142   : > { %v6437_v55 = vpack.c.b16 %v922_v53, %v921_v54  ;;  %v509_v2 = vmul.f32 %v5685_v60, %v508_v1 }
 0x143   : > { %1010 = vmatmul.bf16.gmra.mxu0 %v6427_v25  ;;  %1107 = vmatmul.bf16.gmra.mxu1 %v6427_v25 }
 0x144   : > { %1204 = vmatmul.bf16.gmra.mxu2 %v6427_v25  ;;  %1301 = vmatmul.bf16.gmra.mxu3 %v6427_v25  ;;  %v510_v3 = vmul.f32 0.5, %v509_v2 }
 0x146   : > { %v511_v6 = vsub.f32 1.5, %v510_v3 }
 0x148   : > { %v512_v7 = vmul.f32 %v5685_v60, %v511_v6 }
 0x14a   : > { %v516_v46 = vsel %vm515_vm5, %v5685_v60, %v512_v7 }
 0x14b   : > { %v613_v11 = vmul.f32 %v516_v46, %v6177_v44 }
 0x14d   : > { %v632_v16 = vmul.f32 %v6325_v36, %v613_v11 }
 0x14f   : > { %v651_v39 = vadd.f32 %v6337_v14, %v632_v16 }
 0x151   : > { %v667_v51 = vpack.c.bf16 %v651_v39, %v651_v39 }
 0x153   : > { %1015 = vmatmul.bf16.gmra.mxu0 %v6437_v55  ;;  %1112 = vmatmul.bf16.gmra.mxu1 %v6437_v55  ;;  %v923_v1 = vunpack.c.l.b16 %v667_v51 }
 0x154   : > { %1209 = vmatmul.bf16.gmra.mxu2 %v6437_v55  ;;  %1306 = vmatmul.bf16.gmra.mxu3 %v6437_v55 }
 0x189   : > { %v398_v4 = vpop.xlane.xlu1 %397 }
 0x18a   : > { %v422_v5 = vmul.f32 %v398_v4, %v6129_v13 }
 0x18c   : > { %v438_v57 = vadd.f32 1e-05, %v422_v5 }
 0x18e   : > { %5686 = vrsqrt.f32 %v438_v57  ;;  %vm523_vm7 = vweird.f32 %v438_v57 }
 0x191   : > { %v400_v8 = vpop.xlane.xlu1 %399 }
 0x192   : > { %v423_v41 = vmul.f32 %v400_v8, %v6129_v13 }
 0x194   : > { %v5687_v63 = vpop.eup %5686  ;;  %v439_v9 = vadd.f32 1e-05, %v423_v41 }
 0x195   : > { %v518_v47 = vmul.f32 %v5687_v63, %v438_v57  ;;  %vm524_vm6 = vweird.f32 %v5687_v63 }
 0x196   : > { %5688 = vrsqrt.f32 %v439_v9  ;;  %vm525_vm8 = vmor %vm523_vm7, %vm524_vm6  ;;  %vm533_vm10 = vweird.f32 %v439_v9 }
 0x197   : > { %v519_v10 = vmul.f32 %v5687_v63, %v518_v47 }
 0x199   : > { %v520_v12 = vmul.f32 0.5, %v519_v10  ;;  %v327_v15 = vpop.xlane.xlu1 %326  ;;  %v406_v48 = vpop.xlane.xlu0 %405 }
 0x19a   : > { %v402_v19 = vpop.xlane.xlu2 %401  ;;  %v350_v20 = vmul.f32 %v6129_v13, %v327_v15  ;;  %v426_v30 = vmul.f32 %v406_v48, %v6129_v13 }
 0x19b   : > { %v521_v24 = vsub.f32 1.5, %v520_v12  ;;  %v424_v26 = vmul.f32 %v402_v19, %v6129_v13 }
 0x19c   : > { %v5689_v18 = vpop.eup %5688  ;;  %v6453_v44 = vsub.f32 %v6356_v29, %v350_v20  ;;  %v6457_v35 = vadd.f32 1e-05, %v426_v30 }
 0x19d   : > { %v522_v23 = vmul.f32 %v5687_v63, %v521_v24  ;;  %v528_v31 = vmul.f32 %v5689_v18, %v439_v9  ;;  %v440_v43 = vadd.f32 1e-05, %v424_v26  ;;  %vm534_vm9 = vweird.f32 %v5689_v18 }
 0x19e   : > { %v382_v40 = vmul.f32 %v6453_v44, %v6453_v44  ;;  %vm535_vm11 = vmor %vm533_vm10, %vm534_vm9  ;;  %vm563_vm15 = vweird.f32 %v6457_v35 }
 0x19f   : > { %v526_v42 = vsel %vm525_vm8, %v5687_v63, %v522_v23  ;;  %v529_v45 = vmul.f32 %v5689_v18, %v528_v31  ;;  %5690 = vrsqrt.f32 %v440_v43  ;;  %vm543_vm12 = vweird.f32 %v440_v43 }
 0x1a0   : > { %v614_v62 = vmul.f32 %v526_v42, %v6301_v37  ;;  %5692 = vrsqrt.f32 %v6457_v35  ;;  %413 = vadd.xlane.f32.xlu1 %v382_v40 }
 0x1a1   : > { %v530_v29 = vmul.f32 0.5, %v529_v45  ;;  %v408_v38 = vpop.xlane.xlu1 %407 }
 0x1a2   : > { %v633_v50 = vmul.f32 %v6325_v36, %v614_v62  ;;  %v404_v49 = vpop.xlane.xlu2 %403  ;;  %v427_v28 = vmul.f32 %v408_v38, %v6129_v13 }
 0x1a3   : > { %v531_v27 = vsub.f32 1.5, %v530_v29  ;;  %v425_v37 = vmul.f32 %v404_v49, %v6129_v13 }
 0x1a4   : > { %v652_v52 = vadd.f32 %v6337_v14, %v633_v50  ;;  %v6466_v59 = vadd.f32 1e-05, %v427_v28 }
 0x1a5   : > { %v5691_v53 = vpop.eup %5690  ;;  %v532_v54 = vmul.f32 %v5689_v18, %v531_v27  ;;  %v441_v56 = vadd.f32 1e-05, %v425_v37 }
 0x1a6   : > { %v668_v32 = vpack.c.bf16 %v652_v52, %v652_v52  ;;  %v5693_v60 = vpop.eup %5692  ;;  %v538_v3 = vmul.f32 %v5691_v53, %v440_v43  ;;  %vm544_vm13 = vweird.f32 %v5691_v53  ;;  %vm573_vm7 = vweird.f32 %v6466_v59 }
 0x1a7   : > { %v536_v4 = vsel %vm535_vm11, %v5689_v18, %v532_v54  ;;  %v558_v5 = vmul.f32 %v5693_v60, %v6457_v35  ;;  %5694 = vrsqrt.f32 %v441_v56  ;;  %vm545_vm14 = vmor %vm543_vm12, %vm544_vm13  ;;  %vm564_vm0 = vweird.f32 %v5693_v60 }
 0x1a8   : > { %v924_v2 = vunpack.c.l.b16 %v668_v32  ;;  %v539_v6 = vmul.f32 %v5691_v53, %v538_v3  ;;  %v615_v7 = vmul.f32 %v536_v4, %v6312_v58  ;;  %5696 = vrsqrt.f32 %v6466_v59  ;;  %vm565_vm3 = vmor %vm563_vm15, %vm564_vm0  ;;  %v5568_v4 = vld [vmem:[%s8552_s4 + $0xb8] sm:$0xff] }
 0x1a9   : > { %v559_v8 = vmul.f32 %v5693_v60, %v558_v5  ;;  %vm553_vm1 = vweird.f32 %v441_v56  ;;  %v5552_v5 = vld [vmem:[%s8552_s4 + $0x38] sm:$0xff]  ;;  %1579 = vmatpush.bf16.msrb.mxu2 %v5568_v4  ;;  %v5571_v4 = vld [vmem:[%s8552_s4 + $0xd0] sm:$0xff] }
 0x1aa   : > { %v6469_v57 = vpack.c.b16 %v924_v2, %v923_v1  ;;  %v540_v63 = vmul.f32 0.5, %v539_v6  ;;  %v410_v41 = vpop.xlane.xlu2 %409  ;;  %v634_v10 = vmul.f32 %v6325_v36, %v615_v7  ;;  %v5576_v7 = vld [vmem:[%s8552_s4 + $0xf8] sm:$0xff]  ;;  %1385 = vmatpush.bf16.msrb.mxu0 %v5552_v5  ;;  %v5563_v2 = vld [vmem:[%s8552_s4 + $0x90] sm:$0xff] }
 0x1ab   : > { %v560_v46 = vmul.f32 0.5, %v559_v8  ;;  %v428_v47 = vmul.f32 %v410_v41, %v6129_v13  ;;  %1676 = vmatpush.bf16.msrb.mxu3 %v5576_v7 }
 0x1ac   : > { %1020 = vmatmul.bf16.gmra.mxu0 %v6469_v57  ;;  %1117 = vmatmul.bf16.gmra.mxu1 %v6469_v57  ;;  %v541_v9 = vsub.f32 1.5, %v540_v63  ;;  %v653_v48 = vadd.f32 %v6337_v14, %v634_v10 }
 0x1ad   : > { %1214 = vmatmul.bf16.gmra.mxu2 %v6469_v57  ;;  %1311 = vmatmul.bf16.gmra.mxu3 %v6469_v57  ;;  %v5695_v58 = vpop.eup %5694  ;;  %v444_v11 = vadd.f32 1e-05, %v428_v47  ;;  %v561_v24 = vsub.f32 1.5, %v560_v46 }
 0x1ae   : > { %v542_v12 = vmul.f32 %v5691_v53, %v541_v9  ;;  %v548_v15 = vmul.f32 %v5695_v58, %v441_v56  ;;  %v6479_v16 = vpop.eup %5696  ;;  %vm554_vm2 = vweird.f32 %v5695_v58  ;;  %v669_v39 = vpack.c.bf16 %v653_v48, %v653_v48 }
 0x1af   : > { %5698 = vrsqrt.f32 %v444_v11  ;;  %v562_v26 = vmul.f32 %v5693_v60, %v561_v24  ;;  %v568_v18 = vmul.f32 %v6479_v16, %v6466_v59  ;;  %vm555_vm4 = vmor %vm553_vm1, %vm554_vm2  ;;  %vm583_vm5 = vweird.f32 %v444_v11  ;;  %v5560_v59 = vld [vmem:[%s8552_s4 + $0x78] sm:$0xff] }
 0x1b0   : > { %v546_v19 = vsel %vm545_vm14, %v5691_v53, %v542_v12  ;;  %v549_v20 = vmul.f32 %v5695_v58, %v548_v15  ;;  %v925_v52 = vunpack.c.l.b16 %v669_v39  ;;  %vm574_vm8 = vweird.f32 %v6479_v16  ;;  %1482 = vmatpush.bf16.msrb.mxu1 %v5560_v59 }
 0x1b1   : > { %v616_v23 = vmul.f32 %v546_v19, %v6347_v22  ;;  %v566_v35 = vsel %vm565_vm3, %v5693_v60, %v562_v26  ;;  %v569_v22 = vmul.f32 %v6479_v16, %v568_v18  ;;  %vm575_vm10 = vmor %vm573_vm7, %vm574_vm8  ;;  %v412_v48 = vpop.xlane.xlu0 %411  ;;  %vm2321_vm1 = vcmask 523264  }
 0x1b2   : > { %v550_v30 = vmul.f32 0.5, %v549_v20  ;;  %v618_v38 = vmul.f32 %v566_v35, %v6344_v21  ;;  %v5566_v35 = vld [vmem:[%s8552_s4 + $0xa8] sm:$0xff] }
 0x1b3   : > { %v635_v42 = vmul.f32 %v6325_v36, %v616_v23  ;;  %v570_v37 = vmul.f32 0.5, %v569_v22  ;;  %v429_v23 = vmul.f32 %v412_v48, %v6129_v13  ;;  %v5558_v22 = vld [vmem:[%s8552_s4 + $0x68] sm:$0xff]  ;;  %v6639_v48 = vpop.f32.mrf.mxu1 }
 0x1b4   : > { %v551_v31 = vsub.f32 1.5, %v550_v30  ;;  %v637_v56 = vmul.f32 %v6325_v36, %v618_v38  ;;  %v5557_v38 = vld [vmem:[%s8552_s4 + $0x60] sm:$0xff]  ;;  %8639 = vst [vmem:[#allocation6_spill] sm:$0xff] %v6639_v48 }
 0x1b5   : > { %v5699_v43 = vpop.eup %5698  ;;  %v654_v62 = vadd.f32 %v6337_v14, %v635_v42  ;;  %v571_v60 = vsub.f32 1.5, %v570_v37  ;;  %v445_v26 = vadd.f32 1e-05, %v429_v23  ;;  %v5567_v42 = vld [vmem:[%s8552_s4 + $0xb0] sm:$0xff] }
 0x1b6   : > { %v552_v40 = vmul.f32 %v5695_v58, %v551_v31  ;;  %v578_v45 = vmul.f32 %v5699_v43, %v444_v11  ;;  %vm584_vm6 = vweird.f32 %v5699_v43  ;;  %v656_v1 = vadd.f32 %v6337_v14, %v637_v56  ;;  %v5551_v31 = vld [vmem:[%s8552_s4 + $0x30] sm:$0xff]  ;;  %1580 = vmatpush.bf16.msrb.mxu2 %v5567_v42 }
 0x1b7   : > { %v670_v50 = vpack.c.bf16 %v654_v62, %v654_v62  ;;  %vm6503_vm9 = vmor %vm583_vm5, %vm584_vm6  ;;  %v572_v3 = vmul.f32 %v6479_v16, %v571_v60  ;;  %5700 = vrsqrt.f32 %v445_v26  ;;  %v5575_v62 = vld [vmem:[%s8552_s4 + $0xf0] sm:$0xff]  ;;  %1386 = vmatpush.bf16.msrb.mxu0 %v5551_v31  ;;  %vm593_vm11 = vweird.f32 %v445_v26  ;;  %v5572_v60 = vld [vmem:[%s8552_s4 + $0xd8] sm:$0xff]  ;;  %v6643_v31 = vpop.f32.mrf.mxu2 }
 0x1b8   : > { %v556_v29 = vsel %vm555_vm4, %v5695_v58, %v552_v40  ;;  %v579_v51 = vmul.f32 %v5699_v43, %v578_v45  ;;  %v672_v63 = vpack.c.bf16 %v656_v1, %v656_v1  ;;  %1677 = vmatpush.bf16.msrb.mxu3 %v5575_v62  ;;  %v5550_v40 = vld [vmem:[%s8552_s4 + $0x28] sm:$0xff]  ;;  %v5555_v1 = vld [vmem:[%s8552_s4 + $0x50] sm:$0xff]  ;;  %8640 = vst [vmem:[#allocation7_spill] sm:$0xff] %v6643_v31 }
 0x1b9   : > { %v926_v49 = vunpack.c.l.b16 %v670_v50  ;;  %v617_v27 = vmul.f32 %v556_v29, %v6388_v0  ;;  %v576_v41 = vsel %vm575_vm10, %v6479_v16, %v572_v3  ;;  %v5574_v29 = vld [vmem:[%s8552_s4 + $0xe8] sm:$0xff] }
 0x1ba   : > { %v580_v28 = vmul.f32 0.5, %v579_v51  ;;  %v928_v9 = vunpack.c.l.b16 %v672_v63  ;;  %v619_v58 = vmul.f32 %v576_v41, %v6385_v61  ;;  %1581 = vmatpush.bf16.msrb.mxu2 %v5566_v35  ;;  %v5554_v63 = vld [vmem:[%s8552_s4 + $0x48] sm:$0xff] }
 0x1bb   : > { %v6491_v32 = vpack.c.b16 %v926_v49, %v925_v52  ;;  %v636_v53 = vmul.f32 %v6325_v36, %v617_v27  ;;  %1387 = vmatpush.bf16.msrb.mxu0 %v5550_v40  ;;  %v5549_v52 = vld [vmem:[%s8552_s4 + $0x20] sm:$0xff]  ;;  %v5562_v41 = vld [vmem:[%s8552_s4 + $0x88] sm:$0xff] }
 0x1bc   : > { %v581_v54 = vsub.f32 1.5, %v580_v28  ;;  %v638_v12 = vmul.f32 %v6325_v36, %v619_v58  ;;  %v5565_v49 = vld [vmem:[%s8552_s4 + $0xa0] sm:$0xff]  ;;  %1678 = vmatpush.bf16.msrb.mxu3 %v5574_v29  ;;  %v5548_v28 = vld [vmem:[%s8552_s4 + $0x18] sm:$0xff] }
 0x1bd   : > { %1025 = vmatmul.bf16.gmra.mxu0 %v6491_v32  ;;  %1122 = vmatmul.bf16.gmra.mxu1 %v6491_v32  ;;  %v655_v21 = vadd.f32 %v6337_v14, %v636_v53  ;;  %v5701_v30 = vpop.eup %5700  ;;  %v5556_v53 = vld [vmem:[%s8552_s4 + $0x58] sm:$0xff]  ;;  %v5545_v58 = vld [vmem:[%s8552_s4] sm:$0xff] }
 0x1be   : > { %1219 = vmatmul.bf16.gmra.mxu2 %v6491_v32  ;;  %1316 = vmatmul.bf16.gmra.mxu3 %v6491_v32  ;;  %v582_v0 = vmul.f32 %v5699_v43, %v581_v54  ;;  %v588_v18 = vmul.f32 %v5701_v30, %v445_v26  ;;  %vm594_vm12 = vweird.f32 %v5701_v30  ;;  %v5564_v54 = vld [vmem:[%s8552_s4 + $0x98] sm:$0xff] }
 0x1bf   : > { %v671_v6 = vpack.c.bf16 %v655_v21, %v655_v21  ;;  %1388 = vmatpush.bf16.msrb.mxu0 %v5549_v52  ;;  %1582 = vmatpush.bf16.msrb.mxu2 %v5565_v49  ;;  %vm6591_vm13 = vmor %vm593_vm11, %vm594_vm12 }
 0x1c0   : > { %v586_v8 = vsel %vm6503_vm9, %v5699_v43, %v582_v0  ;;  %v5559_v43 = vld [vmem:[%s8552_s4 + $0x70] sm:$0xff]  ;;  %v589_v39 = vmul.f32 %v5701_v30, %v588_v18 }
 0x1c1   : > { %v927_v46 = vunpack.c.l.b16 %v671_v6  ;;  %v620_v47 = vmul.f32 %v586_v8, %v6403_v33  ;;  %v657_v33 = vadd.f32 %v6337_v14, %v638_v12  ;;  %1483 = vmatpush.bf16.msrb.mxu1 %v5559_v43  ;;  %v5547_v0 = vld [vmem:[%s8552_s4 + $0x10] sm:$0xff]  ;;  %v5546_v8 = vld [vmem:[%s8552_s4 + $0x8] sm:$0xff]  ;;  %v5561_v12 = vld [vmem:[%s8552_s4 + $0x80] sm:$0xff]  ;;  %v6645_v43 = vpop.f32.mrf.mxu3 }
 0x1c2   : > { %v590_v45 = vmul.f32 0.5, %v589_v39  ;;  %8641 = vst [vmem:[#allocation8_spill] sm:$0xff] %v6645_v43 }
 0x1c3   : > { %v6525_v10 = vpack.c.b16 %v928_v9, %v927_v46  ;;  %v639_v11 = vmul.f32 %v6325_v36, %v620_v47  ;;  %v673_v61 = vpack.c.bf16 %v657_v33, %v657_v33  ;;  %1389 = vmatpush.bf16.msrb.mxu0 %v5548_v28  ;;  %1583 = vmatpush.bf16.msrb.mxu2 %v5564_v54  ;;  %v5570_v47 = vld [vmem:[%s8552_s4 + $0xc8] sm:$0xff]  ;;  %v5569_v33 = vld [vmem:[%s8552_s4 + $0xc0] sm:$0xff] }
 0x1c4   : > { %v591_v37 = vsub.f32 1.5, %v590_v45 }
 0x1c5   : > { %v658_v24 = vadd.f32 %v6337_v14, %v639_v11  ;;  %v929_v19 = vunpack.c.l.b16 %v673_v61  ;;  %1484 = vmatpush.bf16.msrb.mxu1 %v5558_v22  ;;  %v5553_v11 = vld [vmem:[%s8552_s4 + $0x40] sm:$0xff] }
 0x1c6   : > { %v592_v56 = vmul.f32 %v5701_v30, %v591_v37 }
 0x1c7   : > { %v674_v15 = vpack.c.bf16 %v658_v24, %v658_v24  ;;  %1390 = vmatpush.bf16.msrb.mxu0 %v5547_v0  ;;  %1584 = vmatpush.bf16.msrb.mxu2 %v5563_v2 }
 0x1c8   : > { %v596_v5 = vsel %vm6591_vm13, %v5701_v30, %v592_v56 }
 0x1c9   : > { %v930_v16 = vunpack.c.l.b16 %v674_v15  ;;  %1485 = vmatpush.bf16.msrb.mxu1 %v5557_v38  ;;  %v621_v7 = vmul.f32 %v596_v5, %v6420_v34 }
 0x1cb   : > { %v6535_v20 = vpack.c.b16 %v930_v16, %v929_v19  ;;  %1391 = vmatpush.bf16.msrb.mxu0 %v5546_v8  ;;  %1585 = vmatpush.bf16.msrb.mxu2 %v5562_v41  ;;  %v640_v9 = vmul.f32 %v6325_v36, %v621_v7  ;;  %v6637_v19 = vpop.f32.mrf.mxu0 }
 0x1cc   : > { %8638 = vst [vmem:[#allocation5_spill] sm:$0xff] %v6637_v19 }
 0x1cd   : > { %1030 = vmatmul.bf16.gmra.mxu0 %v6525_v10  ;;  %1127 = vmatmul.bf16.gmra.mxu1 %v6525_v10  ;;  %v659_v61 = vadd.f32 %v6337_v14, %v640_v9  ;;  %v5608_v9 = vld [vmem:[%s8553_s5 + $0xf8] sm:$0xff] }
 0x1ce   : > { %1224 = vmatmul.bf16.gmra.mxu2 %v6525_v10  ;;  %1321 = vmatmul.bf16.gmra.mxu3 %v6525_v10 }
 0x1cf   : > { %1486 = vmatpush.bf16.msrb.mxu1 %v5556_v53  ;;  %1392 = vmatpush.bf16.msrb.mxu0 %v5545_v58  ;;  %v675_v26 = vpack.c.bf16 %v659_v61, %v659_v61  ;;  %v5583_v58 = vld [vmem:[%s8553_s5 + $0x30] sm:$0xff] }
 0x1d0   : > { %1586 = vmatpush.bf16.msrb.mxu2 %v5561_v12 }
 0x1d1   : > { %v931_v42 = vunpack.c.l.b16 %v675_v26  ;;  %v5590_v26 = vld [vmem:[%s8553_s5 + $0x68] sm:$0xff] }
 0x1d3   : > { %1487 = vmatpush.bf16.msrb.mxu1 %v5555_v1  ;;  %v6649_v35 = vpop.f32.mrf.mxu0 }
 0x1d4   : > { %8642 = vst [vmem:[#allocation9_spill] sm:$0xff] %v6649_v35 }
 0x1d7   : > { %1488 = vmatpush.bf16.msrb.mxu1 %v5554_v63 }
 0x1db   : > { %1489 = vmatpush.bf16.msrb.mxu1 %v5553_v11  ;;  %v6661_v40 = vpop.f32.mrf.mxu0  ;;  %v5591_v11 = vld [vmem:[%s8553_s5 + $0x70] sm:$0xff] }
 0x1dc   : > { %8646 = vst [vmem:[#allocation13_spill] sm:$0xff] %v6661_v40 }
 0x1dd   : > { %1035 = vmatmul.bf16.gmra.mxu0 %v6535_v20  ;;  %1132 = vmatmul.bf16.gmra.mxu1 %v6535_v20 }
 0x1de   : > { %1229 = vmatmul.bf16.gmra.mxu2 %v6535_v20  ;;  %1326 = vmatmul.bf16.gmra.mxu3 %v6535_v20 }
 0x1e3   : > { %v6673_v29 = vpop.f32.mrf.mxu0 }
 0x1e4   : > { %8650 = vst [vmem:[#allocation17_spill] sm:$0xff] %v6673_v29 }
 0x1eb   : > { %v6681_v38 = vpop.f32.mrf.mxu0 }
 0x1ec   : > { %8654 = vst [vmem:[#allocation21_spill] sm:$0xff] %v6681_v38 }
 0x1f3   : > { %v6693_v28 = vpop.f32.mrf.mxu0 }
 0x1f4   : > { %8658 = vst [vmem:[#allocation25_spill] sm:$0xff] %v6693_v28 }
 0x213   : > { %v414_v50 = vpop.xlane.xlu1 %413 }
 0x214   : > { %v430_v51 = vmul.f32 %v414_v50, %v6129_v13  ;;  %v5573_v13 = vld [vmem:[%s8552_s4 + $0xe0] sm:$0xff] }
 0x215   : > { %1679 = vmatpush.bf16.msrb.mxu3 %v5573_v13 }
 0x216   : > { %v446_v27 = vadd.f32 1e-05, %v430_v51 }
 0x218   : > { %5702 = vrsqrt.f32 %v446_v27  ;;  %vm603_vm15 = vweird.f32 %v446_v27 }
 0x219   : > { %1680 = vmatpush.bf16.msrb.mxu3 %v5572_v60 }
 0x21d   : > { %1681 = vmatpush.bf16.msrb.mxu3 %v5571_v4 }
 0x21e   : > { %v5703_v3 = vpop.eup %5702 }
 0x21f   : > { %v598_v59 = vmul.f32 %v5703_v3, %v446_v27  ;;  %vm604_vm14 = vweird.f32 %v5703_v3 }
 0x220   : > { %vm605_vm0 = vmor %vm603_vm15, %vm604_vm14 }
 0x221   : > { %v599_v6 = vmul.f32 %v5703_v3, %v598_v59  ;;  %1682 = vmatpush.bf16.msrb.mxu3 %v5570_v47  ;;  %v5592_v47 = vld [vmem:[%s8553_s5 + $0x78] sm:$0xff] }
 0x222   : > { %1870 = vmatpush.bf16.msra.mxu1 %v5592_v47  ;;  %v5589_v47 = vld [vmem:[%s8553_s5 + $0x60] sm:$0xff] }
 0x223   : > { %v600_v46 = vmul.f32 0.5, %v599_v6 }
 0x225   : > { %v601_v34 = vsub.f32 1.5, %v600_v46  ;;  %1683 = vmatpush.bf16.msrb.mxu3 %v5569_v33  ;;  %v5584_v46 = vld [vmem:[%s8553_s5 + $0x38] sm:$0xff]  ;;  %v5599_v33 = vld [vmem:[%s8553_s5 + $0xb0] sm:$0xff] }
 0x226   : > { %1773 = vmatpush.bf16.msra.mxu0 %v5584_v46  ;;  %1871 = vmatpush.bf16.msra.mxu1 %v5591_v11  ;;  %v5581_v46 = vld [vmem:[%s8553_s5 + $0x20] sm:$0xff] }
 0x227   : > { %v602_v24 = vmul.f32 %v5703_v3, %v601_v34  ;;  %v5600_v34 = vld [vmem:[%s8553_s5 + $0xb8] sm:$0xff]  ;;  %v5605_v11 = vld [vmem:[%s8553_s5 + $0xe0] sm:$0xff] }
 0x228   : > { %1967 = vmatpush.bf16.msra.mxu2 %v5600_v34  ;;  %v5597_v34 = vld [vmem:[%s8553_s5 + $0xa0] sm:$0xff] }
 0x229   : > { %v606_v15 = vsel %vm605_vm0, %v5703_v3, %v602_v24  ;;  %v6701_v60 = vpop.f32.mrf.mxu0  ;;  %2064 = vmatpush.bf16.msra.mxu3 %v5608_v9 }
 0x22a   : > { %v622_v16 = vmul.f32 %v606_v15, %v6453_v44  ;;  %v6651_v44 = vpop.f32.mrf.mxu1  ;;  %8662 = vst [vmem:[#allocation29_spill] sm:$0xff] %v6701_v60  ;;  %v5607_v15 = vld [vmem:[%s8553_s5 + $0xf0] sm:$0xff]  ;;  %1774 = vmatpush.bf16.msra.mxu0 %v5583_v58  ;;  %1872 = vmatpush.bf16.msra.mxu1 %v5590_v26  ;;  %v5604_v26 = vld [vmem:[%s8553_s5 + $0xd8] sm:$0xff] }
 0x22b   : > { %8643 = vst [vmem:[#allocation10_spill] sm:$0xff] %v6651_v44 }
 0x22c   : > { %v641_v23 = vmul.f32 %v6325_v36, %v622_v16  ;;  %v6657_v36 = vpop.f32.mrf.mxu2  ;;  %1968 = vmatpush.bf16.msra.mxu2 %v5599_v33  ;;  %v5580_v33 = vld [vmem:[%s8553_s5 + $0x18] sm:$0xff] }
 0x22d   : > { %8644 = vst [vmem:[#allocation11_spill] sm:$0xff] %v6657_v36  ;;  %2065 = vmatpush.bf16.msra.mxu3 %v5607_v15  ;;  %v5588_v15 = vld [vmem:[%s8553_s5 + $0x58] sm:$0xff] }
 0x22e   : > { %v660_v30 = vadd.f32 %v6337_v14, %v641_v23  ;;  %v6659_v14 = vpop.f32.mrf.mxu3  ;;  %v5582_v23 = vld [vmem:[%s8553_s5 + $0x28] sm:$0xff]  ;;  %1873 = vmatpush.bf16.msra.mxu1 %v5589_v47  ;;  %v5587_v47 = vld [vmem:[%s8553_s5 + $0x50] sm:$0xff] }
 0x22f   : > { %8645 = vst [vmem:[#allocation12_spill] sm:$0xff] %v6659_v14  ;;  %1775 = vmatpush.bf16.msra.mxu0 %v5582_v23  ;;  %v5596_v23 = vld [vmem:[%s8553_s5 + $0x98] sm:$0xff] }
 0x230   : > { %v676_v18 = vpack.c.bf16 %v660_v30, %v660_v30  ;;  %v5598_v30 = vld [vmem:[%s8553_s5 + $0xa8] sm:$0xff] }
 0x231   : > { %v6713_v2 = vpop.f32.mrf.mxu0  ;;  %1969 = vmatpush.bf16.msra.mxu2 %v5598_v30 }
 0x232   : > { %v932_v39 = vunpack.c.l.b16 %v676_v18  ;;  %v6663_v22 = vpop.f32.mrf.mxu1  ;;  %8666 = vst [vmem:[#allocation33_spill] sm:$0xff] %v6713_v2  ;;  %v5606_v18 = vld [vmem:[%s8553_s5 + $0xe8] sm:$0xff]  ;;  %1874 = vmatpush.bf16.msra.mxu1 %v5588_v15 }
 0x233   : > { %8647 = vst [vmem:[#allocation14_spill] sm:$0xff] %v6663_v22  ;;  %2066 = vmatpush.bf16.msra.mxu3 %v5606_v18  ;;  %1776 = vmatpush.bf16.msra.mxu0 %v5581_v46  ;;  %v5579_v46 = vld [vmem:[%s8553_s5 + $0x10] sm:$0xff]  ;;  %v5586_v15 = vld [vmem:[%s8553_s5 + $0x48] sm:$0xff] }
 0x234   : > { %v6647_v62 = vpack.c.b16 %v932_v39, %v931_v42  ;;  %v6665_v45 = vpop.f32.mrf.mxu2 }
 0x235   : > { %8648 = vst [vmem:[#allocation15_spill] sm:$0xff] %v6665_v45  ;;  %1970 = vmatpush.bf16.msra.mxu2 %v5597_v34  ;;  %v5595_v34 = vld [vmem:[%s8553_s5 + $0x90] sm:$0xff] }
 0x236   : > { %1040 = vmatmul.bf16.gmra.mxu0 %v6647_v62  ;;  %1137 = vmatmul.bf16.gmra.mxu1 %v6647_v62  ;;  %v6667_v50 = vpop.f32.mrf.mxu3 }
 0x237   : > { %1234 = vmatmul.bf16.gmra.mxu2 %v6647_v62  ;;  %1331 = vmatmul.bf16.gmra.mxu3 %v6647_v62  ;;  %8649 = vst [vmem:[#allocation16_spill] sm:$0xff] %v6667_v50 }
 0x238   : > { %2067 = vmatpush.bf16.msra.mxu3 %v5605_v11  ;;  %1777 = vmatpush.bf16.msra.mxu0 %v5580_v33  ;;  %v5603_v11 = vld [vmem:[%s8553_s5 + $0xd0] sm:$0xff]  ;;  %v5578_v33 = vld [vmem:[%s8553_s5 + $0x8] sm:$0xff] }
 0x239   : > { %1971 = vmatpush.bf16.msra.mxu2 %v5596_v23  ;;  %1875 = vmatpush.bf16.msra.mxu1 %v5587_v47  ;;  %v5577_v47 = vld [vmem:[%s8553_s5] sm:$0xff] }
 0x23a   : > { %v6675_v51 = vpop.f32.mrf.mxu1  ;;  %v6725_v59 = vpop.f32.mrf.mxu0 }
 0x23b   : > { %8651 = vst [vmem:[#allocation18_spill] sm:$0xff] %v6675_v51 }
 0x23c   : > { %v6677_v52 = vpop.f32.mrf.mxu2  ;;  %8670 = vst [vmem:[#allocation37_spill] sm:$0xff] %v6725_v59  ;;  %2068 = vmatpush.bf16.msra.mxu3 %v5604_v26  ;;  %1778 = vmatpush.bf16.msra.mxu0 %v5579_v46  ;;  %v5602_v46 = vld [vmem:[%s8553_s5 + $0xc8] sm:$0xff] }
 0x23d   : > { %8652 = vst [vmem:[#allocation19_spill] sm:$0xff] %v6677_v52  ;;  %1972 = vmatpush.bf16.msra.mxu2 %v5595_v34  ;;  %1876 = vmatpush.bf16.msra.mxu1 %v5586_v15  ;;  %v5585_v34 = vld [vmem:[%s8553_s5 + $0x40] sm:$0xff] }
 0x23e   : > { %v6679_v49 = vpop.f32.mrf.mxu3 }
 0x23f   : > { %8653 = vst [vmem:[#allocation20_spill] sm:$0xff] %v6679_v49 }
 0x240   : > { %2069 = vmatpush.bf16.msra.mxu3 %v5603_v11  ;;  %1779 = vmatpush.bf16.msra.mxu0 %v5578_v33  ;;  %v5593_v11 = vld [vmem:[%s8553_s5 + $0x80] sm:$0xff] }
 0x241   : > { %1877 = vmatpush.bf16.msra.mxu1 %v5585_v34 }
 0x242   : > { %v6683_v13 = vpop.f32.mrf.mxu1  ;;  %v6733_v63 = vpop.f32.mrf.mxu0 }
 0x243   : > { %8655 = vst [vmem:[#allocation22_spill] sm:$0xff] %v6683_v13 }
 0x244   : > { %v6689_v27 = vpop.f32.mrf.mxu2  ;;  %8674 = vst [vmem:[#allocation41_spill] sm:$0xff] %v6733_v63  ;;  %2070 = vmatpush.bf16.msra.mxu3 %v5602_v46  ;;  %1780 = vmatpush.bf16.msra.mxu0 %v5577_v47 }
 0x245   : > { %8656 = vst [vmem:[#allocation23_spill] sm:$0xff] %v6689_v27 }
 0x246   : > { %1393 = vmatmul.bf16.vlgmr.msrb.gmra.mxu0 %v6399_v17  ;;  %1490 = vmatmul.bf16.vlgmr.msrb.gmra.mxu1 %v6399_v17  ;;  %v6691_v37 = vpop.f32.mrf.mxu3 }
 0x247   : > { %1587 = vmatmul.bf16.vlgmr.msrb.gmra.mxu2 %v6399_v17  ;;  %1684 = vmatmul.bf16.vlgmr.msrb.gmra.mxu3 %v6399_v17  ;;  %8657 = vst [vmem:[#allocation24_spill] sm:$0xff] %v6691_v37 }
 0x24a   : > { %v6695_v53 = vpop.f32.mrf.mxu1  ;;  %v6769_v61 = vpop.f32.mrf.mxu0 }
 0x24b   : > { %8659 = vst [vmem:[#allocation26_spill] sm:$0xff] %v6695_v53 }
 0x24c   : > { %v6697_v54 = vpop.f32.mrf.mxu2  ;;  %8678 = vst [vmem:[#allocation45_spill] sm:$0xff] %v6769_v61 }
 0x24d   : > { %8660 = vst [vmem:[#allocation27_spill] sm:$0xff] %v6697_v54 }
 0x24e   : > { %v6699_v56 = vpop.f32.mrf.mxu3 }
 0x24f   : > { %8661 = vst [vmem:[#allocation28_spill] sm:$0xff] %v6699_v56 }
 0x252   : > { %v6703_v21 = vpop.f32.mrf.mxu1  ;;  %v6800_v9 = vpop.f32.mrf.mxu0 }
 0x253   : > { %8663 = vst [vmem:[#allocation30_spill] sm:$0xff] %v6703_v21 }
 0x254   : > { %v6709_v0 = vpop.f32.mrf.mxu2  ;;  %8682 = vst [vmem:[#allocation49_spill] sm:$0xff] %v6800_v9 }
 0x255   : > { %8664 = vst [vmem:[#allocation31_spill] sm:$0xff] %v6709_v0 }
 0x256   : > { %1398 = vmatmul.bf16.gmra.mxu0 %v6427_v25  ;;  %1495 = vmatmul.bf16.gmra.mxu1 %v6427_v25  ;;  %v6711_v1 = vpop.f32.mrf.mxu3 }
 0x257   : > { %1592 = vmatmul.bf16.gmra.mxu2 %v6427_v25  ;;  %1689 = vmatmul.bf16.gmra.mxu3 %v6427_v25  ;;  %8665 = vst [vmem:[#allocation32_spill] sm:$0xff] %v6711_v1 }
 0x25a   : > { %v6715_v3 = vpop.f32.mrf.mxu1  ;;  %v6843_v23 = vpop.f32.mrf.mxu0 }
 0x25b   : > { %8667 = vst [vmem:[#allocation34_spill] sm:$0xff] %v6715_v3 }
 0x25c   : > { %v6717_v4 = vpop.f32.mrf.mxu2  ;;  %8686 = vst [vmem:[#allocation53_spill] sm:$0xff] %v6843_v23 }
 0x25d   : > { %8668 = vst [vmem:[#allocation35_spill] sm:$0xff] %v6717_v4 }
 0x25e   : > { %v6719_v5 = vpop.f32.mrf.mxu3 }
 0x25f   : > { %8669 = vst [vmem:[#allocation36_spill] sm:$0xff] %v6719_v5 }
 0x262   : > { %v6727_v6 = vpop.f32.mrf.mxu1  ;;  %v6873_v46 = vpop.f32.mrf.mxu0 }
 0x263   : > { %8671 = vst [vmem:[#allocation38_spill] sm:$0xff] %v6727_v6 }
 0x264   : > { %v6729_v7 = vpop.f32.mrf.mxu2  ;;  %8690 = vst [vmem:[#allocation57_spill] sm:$0xff] %v6873_v46 }
 0x265   : > { %8672 = vst [vmem:[#allocation39_spill] sm:$0xff] %v6729_v7 }
 0x266   : > { %1403 = vmatmul.bf16.gmra.mxu0 %v6437_v55  ;;  %1500 = vmatmul.bf16.gmra.mxu1 %v6437_v55  ;;  %v6731_v8 = vpop.f32.mrf.mxu3 }
 0x267   : > { %1597 = vmatmul.bf16.gmra.mxu2 %v6437_v55  ;;  %1694 = vmatmul.bf16.gmra.mxu3 %v6437_v55  ;;  %8673 = vst [vmem:[#allocation40_spill] sm:$0xff] %v6731_v8 }
 0x26a   : > { %v6735_v41 = vpop.f32.mrf.mxu1 }
 0x26b   : > { %8675 = vst [vmem:[#allocation42_spill] sm:$0xff] %v6735_v41 }
 0x26c   : > { %v6759_v12 = vpop.f32.mrf.mxu2 }
 0x26d   : > { %8676 = vst [vmem:[#allocation43_spill] sm:$0xff] %v6759_v12 }
 0x26e   : > { %v6761_v24 = vpop.f32.mrf.mxu3 }
 0x26f   : > { %8677 = vst [vmem:[#allocation44_spill] sm:$0xff] %v6761_v24 }
 0x272   : > { %v6771_v16 = vpop.f32.mrf.mxu1 }
 0x273   : > { %8679 = vst [vmem:[#allocation46_spill] sm:$0xff] %v6771_v16 }
 0x274   : > { %v6785_v42 = vpop.f32.mrf.mxu2 }
 0x275   : > { %8680 = vst [vmem:[#allocation47_spill] sm:$0xff] %v6785_v42 }
 0x276   : > { %1408 = vmatmul.bf16.gmra.mxu0 %v6469_v57  ;;  %1505 = vmatmul.bf16.gmra.mxu1 %v6469_v57  ;;  %v6787_v39 = vpop.f32.mrf.mxu3 }
 0x277   : > { %1602 = vmatmul.bf16.gmra.mxu2 %v6469_v57  ;;  %1699 = vmatmul.bf16.gmra.mxu3 %v6469_v57  ;;  %8681 = vst [vmem:[#allocation48_spill] sm:$0xff] %v6787_v39  ;;  %v5594_v39 = vld [vmem:[%s8553_s5 + $0x88] sm:$0xff] }
 0x278   : > { %1973 = vmatpush.bf16.msra.mxu2 %v5594_v39  ;;  %v5601_v39 = vld [vmem:[%s8553_s5 + $0xc0] sm:$0xff] }
 0x279   : > { %2071 = vmatpush.bf16.msra.mxu3 %v5601_v39 }
 0x27a   : > { %v6802_v58 = vpop.f32.mrf.mxu1 }
 0x27b   : > { %8683 = vst [vmem:[#allocation50_spill] sm:$0xff] %v6802_v58 }
 0x27c   : > { %v6821_v30 = vpop.f32.mrf.mxu2  ;;  %1974 = vmatpush.bf16.msra.mxu2 %v5593_v11 }
 0x27d   : > { %8684 = vst [vmem:[#allocation51_spill] sm:$0xff] %v6821_v30 }
 0x27e   : > { %v6823_v18 = vpop.f32.mrf.mxu3 }
 0x27f   : > { %8685 = vst [vmem:[#allocation52_spill] sm:$0xff] %v6823_v18 }
 0x282   : > { %v6845_v26 = vpop.f32.mrf.mxu1 }
 0x283   : > { %8687 = vst [vmem:[#allocation54_spill] sm:$0xff] %v6845_v26 }
 0x284   : > { %v6869_v33 = vpop.f32.mrf.mxu2 }
 0x285   : > { %8688 = vst [vmem:[#allocation55_spill] sm:$0xff] %v6869_v33 }
 0x286   : > { %1413 = vmatmul.bf16.gmra.mxu0 %v6491_v32  ;;  %1510 = vmatmul.bf16.gmra.mxu1 %v6491_v32  ;;  %v6871_v15 = vpop.f32.mrf.mxu3 }
 0x287   : > { %1607 = vmatmul.bf16.gmra.mxu2 %v6491_v32  ;;  %1704 = vmatmul.bf16.gmra.mxu3 %v6491_v32  ;;  %8689 = vst [vmem:[#allocation56_spill] sm:$0xff] %v6871_v15 }
 0x28a   : > { %v6875_v26 = vpop.f32.mrf.mxu1 }
 0x28b   : > { %8691 = vst [vmem:[#allocation58_spill] sm:$0xff] %v6875_v26 }
 0x28c   : > { %v6877_v23 = vpop.f32.mrf.mxu2 }
 0x28d   : > { %8692 = vst [vmem:[#allocation59_spill] sm:$0xff] %v6877_v23 }
 0x28e   : > { %v6879_v42 = vpop.f32.mrf.mxu3 }
 0x28f   : > { %8693 = vst [vmem:[#allocation60_spill] sm:$0xff] %v6879_v42 }
 0x296   : > { %1418 = vmatmul.bf16.gmra.mxu0 %v6525_v10  ;;  %1515 = vmatmul.bf16.gmra.mxu1 %v6525_v10 }
 0x297   : > { %1612 = vmatmul.bf16.gmra.mxu2 %v6525_v10  ;;  %1709 = vmatmul.bf16.gmra.mxu3 %v6525_v10 }
 0x2a6   : > { %1423 = vmatmul.bf16.gmra.mxu0 %v6535_v20  ;;  %1520 = vmatmul.bf16.gmra.mxu1 %v6535_v20 }
 0x2a7   : > { %1617 = vmatmul.bf16.gmra.mxu2 %v6535_v20  ;;  %1714 = vmatmul.bf16.gmra.mxu3 %v6535_v20 }
 0x2b3   : > { %v1041_v16 = vpop.f32.mrf.mxu0  ;;  %v1138_v61 = vpop.f32.mrf.mxu1 }
 0x2b4   : > { %v2127_v47 = vpack.c.bf16 %v1041_v16, %v1041_v16  ;;  %v2143_v34 = vpack.c.bf16 %v1138_v61, %v1138_v61 }
 0x2b6   : > { %1428 = vmatmul.bf16.gmra.mxu0 %v6647_v62  ;;  %1525 = vmatmul.bf16.gmra.mxu1 %v6647_v62  ;;  %v6885_v46 = vunpack.c.l.b16 %v2127_v47  ;;  %v6887_v42 = vunpack.c.l.b16 %v2143_v34 }
 0x2b7   : > { %1622 = vmatmul.bf16.gmra.mxu2 %v6647_v62  ;;  %1719 = vmatmul.bf16.gmra.mxu3 %v6647_v62 }
 0x2b8   : > { %8694 = vst [vmem:[#allocation61_spill] sm:$0xff] %v6885_v46 }
 0x2b9   : > { %8695 = vst [vmem:[#allocation62_spill] sm:$0xff] %v6887_v42 }
 0x2ba   : > { %v1235_v11 = vpop.f32.mrf.mxu2  ;;  %v1332_v39 = vpop.f32.mrf.mxu3 }
 0x2bb   : > { %v1043_v15 = vpop.f32.mrf.mxu0  ;;  %v1140_v33 = vpop.f32.mrf.mxu1  ;;  %v2159_v16 = vpack.c.bf16 %v1235_v11, %v1235_v11  ;;  %v2175_v7 = vpack.c.bf16 %v1332_v39, %v1332_v39 }
 0x2bc   : > { %v2128_v26 = vpack.c.bf16 %v1043_v15, %v1043_v15  ;;  %v2144_v23 = vpack.c.bf16 %v1140_v33, %v1140_v33 }
 0x2bd   : > { %v6897_v34 = vunpack.c.l.b16 %v2159_v16 }
 0x2be   : > { %v6889_v18 = vunpack.c.l.b16 %v2128_v26  ;;  %v6891_v30 = vunpack.c.l.b16 %v2144_v23  ;;  %v6899_v26 = vunpack.c.l.b16 %v2175_v7 }
 0x2bf   : > { %8698 = vst [vmem:[#allocation65_spill] sm:$0xff] %v6897_v34 }
 0x2c0   : > { %8696 = vst [vmem:[#allocation63_spill] sm:$0xff] %v6889_v18 }
 0x2c1   : > { %8697 = vst [vmem:[#allocation64_spill] sm:$0xff] %v6891_v30 }
 0x2c2   : > { %v1237_v58 = vpop.f32.mrf.mxu2  ;;  %v1334_v9 = vpop.f32.mrf.mxu3  ;;  %8699 = vst [vmem:[#allocation66_spill] sm:$0xff] %v6899_v26 }
 0x2c3   : > { %v2160_v15 = vpack.c.bf16 %v1237_v58, %v1237_v58  ;;  %v2176_v33 = vpack.c.bf16 %v1334_v9, %v1334_v9  ;;  %v1394_v47 = vpop.f32.mrf.mxu0  ;;  %v1491_v6 = vpop.f32.mrf.mxu1 }
 0x2c4   : > { %v2177_v7 = vpack.c.bf16 %v1394_v47, %v1394_v47  ;;  %v2193_v58 = vpack.c.bf16 %v1491_v6, %v1491_v6 }
 0x2c5   : > { %v6901_v23 = vunpack.c.l.b16 %v2160_v15  ;;  %v6903_v59 = vunpack.c.l.b16 %v2176_v33 }
 0x2c6   : > { %1781 = vmatmul.bf16.vlgmr.msra.gmra.mxu0 %v6399_v17  ;;  %1878 = vmatmul.bf16.vlgmr.msra.gmra.mxu1 %v6399_v17  ;;  %v6913_v42 = vunpack.c.l.b16 %v2177_v7  ;;  %v6915_v30 = vunpack.c.l.b16 %v2193_v58 }
 0x2c7   : > { %8700 = vst [vmem:[#allocation67_spill] sm:$0xff] %v6901_v23  ;;  %1975 = vmatmul.bf16.vlgmr.msra.gmra.mxu2 %v6399_v17  ;;  %2072 = vmatmul.bf16.vlgmr.msra.gmra.mxu3 %v6399_v17 }
 0x2c8   : > { %8701 = vst [vmem:[#allocation68_spill] sm:$0xff] %v6903_v59 }
 0x2c9   : > { %8702 = vst [vmem:[#allocation69_spill] sm:$0xff] %v6913_v42 }
 0x2ca   : > { %v1588_v39 = vpop.f32.mrf.mxu2  ;;  %v1685_v16 = vpop.f32.mrf.mxu3  ;;  %8703 = vst [vmem:[#allocation70_spill] sm:$0xff] %v6915_v30 }
 0x2cb   : > { %v1396_v15 = vpop.f32.mrf.mxu0  ;;  %v1493_v33 = vpop.f32.mrf.mxu1  ;;  %v2209_v6 = vpack.c.bf16 %v1588_v39, %v1588_v39  ;;  %v2225_v47 = vpack.c.bf16 %v1685_v16, %v1685_v16 }
 0x2cc   : > { %v2178_v61 = vpack.c.bf16 %v1396_v15, %v1396_v15  ;;  %v2194_v8 = vpack.c.bf16 %v1493_v33, %v1493_v33 }
 0x2cd   : > { %v6925_v58 = vunpack.c.l.b16 %v2209_v6 }
 0x2ce   : > { %v6917_v11 = vunpack.c.l.b16 %v2178_v61  ;;  %v6919_v34 = vunpack.c.l.b16 %v2194_v8  ;;  %v6927_v61 = vunpack.c.l.b16 %v2225_v47 }
 0x2cf   : > { %8706 = vst [vmem:[#allocation73_spill] sm:$0xff] %v6925_v58 }
 0x2d0   : > { %8704 = vst [vmem:[#allocation71_spill] sm:$0xff] %v6917_v11 }
 0x2d1   : > { %8705 = vst [vmem:[#allocation72_spill] sm:$0xff] %v6919_v34 }
 0x2d2   : > { %v1590_v26 = vpop.f32.mrf.mxu2  ;;  %v1687_v59 = vpop.f32.mrf.mxu3  ;;  %8707 = vst [vmem:[#allocation74_spill] sm:$0xff] %v6927_v61 }
 0x2d3   : > { %v2210_v15 = vpack.c.bf16 %v1590_v26, %v1590_v26  ;;  %v2226_v33 = vpack.c.bf16 %v1687_v59, %v1687_v59  ;;  %v1399_v7 = vpop.f32.mrf.mxu0  ;;  %v1496_v23 = vpop.f32.mrf.mxu1 }
 0x2d4   : > { %v2179_v39 = vpack.c.bf16 %v1399_v7, %v1399_v7  ;;  %v2195_v16 = vpack.c.bf16 %v1496_v23, %v1496_v23 }
 0x2d5   : > { %v6929_v8 = vunpack.c.l.b16 %v2210_v15  ;;  %v6931_v46 = vunpack.c.l.b16 %v2226_v33 }
 0x2d6   : > { %1786 = vmatmul.bf16.gmra.mxu0 %v6427_v25  ;;  %1883 = vmatmul.bf16.gmra.mxu1 %v6427_v25  ;;  %v6941_v18 = vunpack.c.l.b16 %v2179_v39  ;;  %v6943_v24 = vunpack.c.l.b16 %v2195_v16 }
 0x2d7   : > { %8708 = vst [vmem:[#allocation75_spill] sm:$0xff] %v6929_v8  ;;  %1980 = vmatmul.bf16.gmra.mxu2 %v6427_v25  ;;  %2077 = vmatmul.bf16.gmra.mxu3 %v6427_v25 }
 0x2d8   : > { %8709 = vst [vmem:[#allocation76_spill] sm:$0xff] %v6931_v46 }
 0x2d9   : > { %8710 = vst [vmem:[#allocation77_spill] sm:$0xff] %v6941_v18 }
 0x2da   : > { %v1593_v6 = vpop.f32.mrf.mxu2  ;;  %v1690_v47 = vpop.f32.mrf.mxu3  ;;  %8711 = vst [vmem:[#allocation78_spill] sm:$0xff] %v6943_v24 }
 0x2db   : > { %v1401_v15 = vpop.f32.mrf.mxu0  ;;  %v1498_v33 = vpop.f32.mrf.mxu1  ;;  %v2211_v7 = vpack.c.bf16 %v1593_v6, %v1593_v6  ;;  %v2227_v26 = vpack.c.bf16 %v1690_v47, %v1690_v47 }
 0x2dc   : > { %v2180_v17 = vpack.c.bf16 %v1401_v15, %v1401_v15  ;;  %v2196_v9 = vpack.c.bf16 %v1498_v33, %v1498_v33 }
 0x2dd   : > { %v6953_v16 = vunpack.c.l.b16 %v2211_v7 }
 0x2de   : > { %v6945_v12 = vunpack.c.l.b16 %v2180_v17  ;;  %v6947_v25 = vunpack.c.l.b16 %v2196_v9  ;;  %v6955_v17 = vunpack.c.l.b16 %v2227_v26 }
 0x2df   : > { %8714 = vst [vmem:[#allocation81_spill] sm:$0xff] %v6953_v16 }
 0x2e0   : > { %8712 = vst [vmem:[#allocation79_spill] sm:$0xff] %v6945_v12 }
 0x2e1   : > { %8713 = vst [vmem:[#allocation80_spill] sm:$0xff] %v6947_v25 }
 0x2e2   : > { %v1595_v41 = vpop.f32.mrf.mxu2  ;;  %v1692_v63 = vpop.f32.mrf.mxu3  ;;  %8715 = vst [vmem:[#allocation82_spill] sm:$0xff] %v6955_v17 }
 0x2e3   : > { %v2212_v15 = vpack.c.bf16 %v1595_v41, %v1595_v41  ;;  %v2228_v33 = vpack.c.bf16 %v1692_v63, %v1692_v63  ;;  %v1404_v39 = vpop.f32.mrf.mxu0  ;;  %v1501_v1 = vpop.f32.mrf.mxu1 }
 0x2e4   : > { %v2181_v26 = vpack.c.bf16 %v1404_v39, %v1404_v39  ;;  %v2197_v6 = vpack.c.bf16 %v1501_v1, %v1501_v1 }
 0x2e5   : > { %v6957_v9 = vunpack.c.l.b16 %v2212_v15  ;;  %v6959_v0 = vunpack.c.l.b16 %v2228_v33 }
 0x2e6   : > { %1791 = vmatmul.bf16.gmra.mxu0 %v6437_v55  ;;  %1888 = vmatmul.bf16.gmra.mxu1 %v6437_v55  ;;  %v6969_v21 = vunpack.c.l.b16 %v2181_v26  ;;  %v6971_v60 = vunpack.c.l.b16 %v2197_v6 }
 0x2e7   : > { %8716 = vst [vmem:[#allocation83_spill] sm:$0xff] %v6957_v9  ;;  %1985 = vmatmul.bf16.gmra.mxu2 %v6437_v55  ;;  %2082 = vmatmul.bf16.gmra.mxu3 %v6437_v55 }
 0x2e8   : > { %8717 = vst [vmem:[#allocation84_spill] sm:$0xff] %v6959_v0 }
 0x2ea   : > { %v1598_v47 = vpop.f32.mrf.mxu2  ;;  %v1695_v7 = vpop.f32.mrf.mxu3 }
 0x2eb   : > { %v1406_v15 = vpop.f32.mrf.mxu0  ;;  %v1503_v33 = vpop.f32.mrf.mxu1  ;;  %v2213_v39 = vpack.c.bf16 %v1598_v47, %v1598_v47  ;;  %v2229_v41 = vpack.c.bf16 %v1695_v7, %v1695_v7 }
 0x2ec   : > { %v2182_v23 = vpack.c.bf16 %v1406_v15, %v1406_v15  ;;  %v2198_v59 = vpack.c.bf16 %v1503_v33, %v1503_v33 }
 0x2ed   : > { %v6981_v6 = vunpack.c.l.b16 %v2213_v39 }
 0x2ee   : > { %v6973_v5 = vunpack.c.l.b16 %v2182_v23  ;;  %v6975_v55 = vunpack.c.l.b16 %v2198_v59  ;;  %v6983_v23 = vunpack.c.l.b16 %v2229_v41 }
 0x2f2   : > { %v1600_v4 = vpop.f32.mrf.mxu2  ;;  %v1697_v3 = vpop.f32.mrf.mxu3 }
 0x2f3   : > { %v2214_v15 = vpack.c.bf16 %v1600_v4, %v1600_v4  ;;  %v2230_v33 = vpack.c.bf16 %v1697_v3, %v1697_v3  ;;  %v1409_v26 = vpop.f32.mrf.mxu0  ;;  %v1506_v2 = vpop.f32.mrf.mxu1 }
 0x2f4   : > { %v2183_v41 = vpack.c.bf16 %v1409_v26, %v1409_v26  ;;  %v2199_v47 = vpack.c.bf16 %v1506_v2, %v1506_v2 }
 0x2f5   : > { %v6985_v59 = vunpack.c.l.b16 %v2214_v15  ;;  %v6987_v37 = vunpack.c.l.b16 %v2230_v33 }
 0x2f6   : > { %1796 = vmatmul.bf16.gmra.mxu0 %v6469_v57  ;;  %1893 = vmatmul.bf16.gmra.mxu1 %v6469_v57  ;;  %v6997_v27 = vunpack.c.l.b16 %v2183_v41  ;;  %v6999_v56 = vunpack.c.l.b16 %v2199_v47 }
 0x2f7   : > { %1990 = vmatmul.bf16.gmra.mxu2 %v6469_v57  ;;  %2087 = vmatmul.bf16.gmra.mxu3 %v6469_v57 }
 0x2fa   : > { %v1603_v7 = vpop.f32.mrf.mxu2  ;;  %v1700_v39 = vpop.f32.mrf.mxu3 }
 0x2fb   : > { %v1411_v15 = vpop.f32.mrf.mxu0  ;;  %v1508_v33 = vpop.f32.mrf.mxu1  ;;  %v2215_v26 = vpack.c.bf16 %v1603_v7, %v1603_v7  ;;  %v2231_v4 = vpack.c.bf16 %v1700_v39, %v1700_v39 }
 0x2fc   : > { %v2184_v1 = vpack.c.bf16 %v1411_v15, %v1411_v15  ;;  %v2200_v63 = vpack.c.bf16 %v1508_v33, %v1508_v33 }
 0x2fe   : > { %v7001_v54 = vunpack.c.l.b16 %v2184_v1  ;;  %v7003_v57 = vunpack.c.l.b16 %v2200_v63  ;;  %v7013_v1 = vunpack.c.l.b16 %v2215_v26  ;;  %v7015_v63 = vunpack.c.l.b16 %v2231_v4 }
 0x302   : > { %v1605_v13 = vpop.f32.mrf.mxu2  ;;  %v1702_v38 = vpop.f32.mrf.mxu3 }
 0x303   : > { %v2216_v15 = vpack.c.bf16 %v1605_v13, %v1605_v13  ;;  %v2232_v33 = vpack.c.bf16 %v1702_v38, %v1702_v38  ;;  %v7009_v41 = vpop.f32.mrf.mxu0  ;;  %v7011_v47 = vpop.f32.mrf.mxu1 }
 0x305   : > { %v7017_v53 = vunpack.c.l.b16 %v2216_v15  ;;  %v7019_v3 = vunpack.c.l.b16 %v2232_v33 }
 0x306   : > { %1801 = vmatmul.bf16.gmra.mxu0 %v6491_v32  ;;  %1898 = vmatmul.bf16.gmra.mxu1 %v6491_v32 }
 0x307   : > { %1995 = vmatmul.bf16.gmra.mxu2 %v6491_v32  ;;  %2092 = vmatmul.bf16.gmra.mxu3 %v6491_v32 }
 0x30a   : > { %v7029_v4 = vpop.f32.mrf.mxu2  ;;  %v7031_v7 = vpop.f32.mrf.mxu3 }
 0x30b   : > { %v7033_v39 = vpop.f32.mrf.mxu0  ;;  %v7035_v26 = vpop.f32.mrf.mxu1 }
 0x312   : > { %v7037_v15 = vpop.f32.mrf.mxu2  ;;  %v7039_v33 = vpop.f32.mrf.mxu3 }
 0x313   : > { %v7041_v2 = vpop.f32.mrf.mxu0  ;;  %v7043_v32 = vpop.f32.mrf.mxu1 }
 0x316   : > { %1806 = vmatmul.bf16.gmra.mxu0 %v6525_v10  ;;  %1903 = vmatmul.bf16.gmra.mxu1 %v6525_v10 }
 0x317   : > { %2000 = vmatmul.bf16.gmra.mxu2 %v6525_v10  ;;  %2097 = vmatmul.bf16.gmra.mxu3 %v6525_v10 }
 0x31a   : > { %v7049_v13 = vpop.f32.mrf.mxu2  ;;  %v7051_v38 = vpop.f32.mrf.mxu3 }
 0x31b   : > { %v7053_v28 = vpop.f32.mrf.mxu0  ;;  %v7055_v50 = vpop.f32.mrf.mxu1 }
 0x322   : > { %v7057_v45 = vpop.f32.mrf.mxu2  ;;  %v7059_v49 = vpop.f32.mrf.mxu3 }
 0x323   : > { %v1424_v52 = vpop.f32.mrf.mxu0  ;;  %v1521_v22 = vpop.f32.mrf.mxu1 }
 0x324   : > { %v2189_v9 = vpack.c.bf16 %v1424_v52, %v1424_v52  ;;  %v2205_v44 = vpack.c.bf16 %v1521_v22, %v1521_v22 }
 0x326   : > { %1811 = vmatmul.bf16.gmra.mxu0 %v6535_v20  ;;  %1908 = vmatmul.bf16.gmra.mxu1 %v6535_v20  ;;  %v2309_v22 = vunpack.c.l.b16 %v2189_v9 }
 0x327   : > { %2005 = vmatmul.bf16.gmra.mxu2 %v6535_v20  ;;  %2102 = vmatmul.bf16.gmra.mxu3 %v6535_v20 }
 0x32a   : > { %v7065_v10 = vpop.f32.mrf.mxu2  ;;  %v7067_v40 = vpop.f32.mrf.mxu3 }
 0x32b   : > { %v1426_v51 = vpop.f32.mrf.mxu0  ;;  %v1523_v29 = vpop.f32.mrf.mxu1 }
 0x32c   : > { %v2190_v34 = vpack.c.bf16 %v1426_v51, %v1426_v51  ;;  %v2206_v42 = vpack.c.bf16 %v1523_v29, %v1523_v29 }
 0x332   : > { %v1620_v61 = vpop.f32.mrf.mxu2  ;;  %v1717_v46 = vpop.f32.mrf.mxu3 }
 0x333   : > { %v1429_v58 = vpop.f32.mrf.mxu0  ;;  %v1526_v8 = vpop.f32.mrf.mxu1  ;;  %v2238_v52 = vpack.c.bf16 %v1717_v46, %v1717_v46 }
 0x334   : > { %v2191_v43 = vpack.c.bf16 %v1429_v58, %v1429_v58  ;;  %v2207_v20 = vpack.c.bf16 %v1526_v8, %v1526_v8  ;;  %v2310_v58 = vunpack.c.l.b16 %v2190_v34  ;;  %v2488_v8 = vunpack.c.l.b16 %v2206_v42 }
 0x336   : > { %1816 = vmatmul.bf16.gmra.mxu0 %v6647_v62  ;;  %1913 = vmatmul.bf16.gmra.mxu1 %v6647_v62  ;;  %v2311_v11 = vunpack.c.l.b16 %v2191_v43  ;;  %v2489_v17 = vunpack.c.l.b16 %v2207_v20 }
 0x337   : > { %2010 = vmatmul.bf16.gmra.mxu2 %v6647_v62  ;;  %2107 = vmatmul.bf16.gmra.mxu3 %v6647_v62 }
 0x33a   : > { %v1623_v31 = vpop.f32.mrf.mxu2  ;;  %v1720_v14 = vpop.f32.mrf.mxu3 }
 0x33b   : > { %v1431_v36 = vpop.f32.mrf.mxu0  ;;  %v1528_v48 = vpop.f32.mrf.mxu1  ;;  %v2223_v25 = vpack.c.bf16 %v1623_v31, %v1623_v31  ;;  %v2239_v62 = vpack.c.bf16 %v1720_v14, %v1720_v14  ;;  %v2487_v31 = vunpack.c.l.b16 %v2205_v44  ;;  %v2222_v14 = vpack.c.bf16 %v1620_v61, %v1620_v61 }
 0x33c   : > { %v2192_v19 = vpack.c.bf16 %v1431_v36, %v1431_v36  ;;  %v2208_v30 = vpack.c.bf16 %v1528_v48, %v1528_v48  ;;  %v2237_v44 = vpack.c.bf16 %v7067_v40, %v7067_v40 }
 0x33d   : > { %v2843_v42 = vunpack.c.l.b16 %v2239_v62 }
 0x33e   : > { %v2312_v0 = vunpack.c.l.b16 %v2192_v19  ;;  %v2490_v16 = vunpack.c.l.b16 %v2208_v30 }
 0x340   : > { %v2320_v35 = vpack.c.b16 %v2312_v0, %v2311_v11  ;;  %v2498_v24 = vpack.c.b16 %v2490_v16, %v2489_v17  ;;  %v2666_v0 = vunpack.c.l.b16 %v2223_v25  ;;  %v2221_v11 = vpack.c.bf16 %v7065_v10, %v7065_v10 }
 0x341   : > { %v2187_v25 = vpack.c.bf16 %v7041_v2, %v7041_v2  ;;  %v2203_v16 = vpack.c.bf16 %v7043_v32, %v7043_v32  ;;  %v2842_v17 = vunpack.c.l.b16 %v2238_v52  ;;  %v2841_v32 = vunpack.c.l.b16 %v2237_v44 }
 0x342   : > { %v1625_v18 = vpop.f32.mrf.mxu2  ;;  %v1722_v12 = vpop.f32.mrf.mxu3  ;;  %v2368_v36 = vsel %vm2321_vm1, %v2320_v35, 0  ;;  %v2545_v48 = vsel %vm2321_vm1, %v2498_v24, 0  ;;  %v2188_v35 = vpack.c.bf16 %v7053_v28, %v7053_v28  ;;  %v2319_v24 = vpack.c.b16 %v2310_v58, %v2309_v22 }
 0x343   : > { %v2224_v29 = vpack.c.bf16 %v1625_v18, %v1625_v18  ;;  %v2240_v43 = vpack.c.bf16 %v1722_v12, %v1722_v12  ;;  %v7075_v51 = vpop.f32.mrf.mxu0  ;;  %v7077_v19 = vpop.f32.mrf.mxu1  ;;  %2370 = vmatpush.bf16.xpose.msrb.mxu0 %v2368_v36  ;;  %2547 = vmatpush.bf16.xpose.msrb.mxu1 %v2545_v48  ;;  %v2204_v12 = vpack.c.bf16 %v7055_v50, %v7055_v50  ;;  %v2665_v28 = vunpack.c.l.b16 %v2222_v14 }
 0x344   : > { %8718 = vst [vmem:[#allocation85_spill] sm:$0xff] %v7075_v51  ;;  %v2497_v18 = vpack.c.b16 %v2488_v8, %v2487_v31  ;;  %v2308_v20 = vunpack.c.l.b16 %v2188_v35  ;;  %v2365_v40 = vsel %vm2321_vm1, %v2319_v24, 0  ;;  %v2664_v8 = vunpack.c.l.b16 %v2221_v11 }
 0x345   : > { %8719 = vst [vmem:[#allocation86_spill] sm:$0xff] %v7077_v19  ;;  %v2667_v30 = vunpack.c.l.b16 %v2224_v29  ;;  %v2844_v34 = vunpack.c.l.b16 %v2240_v43  ;;  %v2486_v62 = vunpack.c.l.b16 %v2204_v12  ;;  %v2307_v29 = vunpack.c.l.b16 %v2187_v25 }
 0x346   : > { %v2542_v2 = vsel %vm2321_vm1, %v2497_v18, 0  ;;  %v2485_v43 = vunpack.c.l.b16 %v2203_v16  ;;  %v2220_v22 = vpack.c.bf16 %v7057_v45, %v7057_v45  ;;  %v2236_v31 = vpack.c.bf16 %v7059_v49, %v7059_v49 }
 0x347   : > { %v2675_v61 = vpack.c.b16 %v2667_v30, %v2666_v0  ;;  %v2852_v46 = vpack.c.b16 %v2844_v34, %v2843_v42  ;;  %v2674_v14 = vpack.c.b16 %v2665_v28, %v2664_v8  ;;  %v2851_v52 = vpack.c.b16 %v2842_v17, %v2841_v32 }
 0x348   : > { %v2186_v0 = vpack.c.bf16 %v7033_v39, %v7033_v39  ;;  %v2202_v42 = vpack.c.bf16 %v7035_v26, %v7035_v26  ;;  %v2318_v30 = vpack.c.b16 %v2308_v20, %v2307_v29  ;;  %v2496_v34 = vpack.c.b16 %v2486_v62, %v2485_v43 }
 0x349   : > { %v2722_v50 = vsel %vm2321_vm1, %v2675_v61, 0  ;;  %v2899_v9 = vsel %vm2321_vm1, %v2852_v46, 0  ;;  %v2219_v35 = vpack.c.bf16 %v7049_v13, %v7049_v13  ;;  %v2235_v12 = vpack.c.bf16 %v7051_v38, %v7051_v38 }
 0x34a   : > { %v7093_v10 = vpop.f32.mrf.mxu2  ;;  %v7095_v58 = vpop.f32.mrf.mxu3  ;;  %2724 = vmatpush.bf16.xpose.msrb.mxu2 %v2722_v50  ;;  %2901 = vmatpush.bf16.xpose.msrb.mxu3 %v2899_v9  ;;  %v2185_v45 = vpack.c.bf16 %v7009_v41, %v7009_v41  ;;  %v2201_v49 = vpack.c.bf16 %v7011_v47, %v7011_v47  ;;  %v2663_v24 = vunpack.c.l.b16 %v2220_v22  ;;  %v2840_v18 = vunpack.c.l.b16 %v2236_v31 }
 0x34b   : > { %8720 = vst [vmem:[#allocation87_spill] sm:$0xff] %v7093_v10  ;;  %v7099_v36 = vpop.f32.mrf.mxu0  ;;  %v7101_v48 = vpop.f32.mrf.mxu1  ;;  %2371 = vmatpush.bf16.xpose.msrb.mxu0 %v2365_v40  ;;  %2548 = vmatpush.bf16.xpose.msrb.mxu1 %v2542_v2  ;;  %v2719_v39 = vsel %vm2321_vm1, %v2674_v14, 0  ;;  %v2896_v26 = vsel %vm2321_vm1, %v2851_v52, 0  ;;  %v2306_v11 = vunpack.c.l.b16 %v2186_v0  ;;  %v2484_v44 = vunpack.c.l.b16 %v2202_v42  ;;  %v8802_v10 = vld [vmem:[#allocation29_spill] sm:$0xff] }
 0x34c   : > { %8721 = vst [vmem:[#allocation88_spill] sm:$0xff] %v7095_v58  ;;  %v2362_v38 = vsel %vm2321_vm1, %v2318_v30, 0  ;;  %v2539_v41 = vsel %vm2321_vm1, %v2496_v34, 0  ;;  %v2662_v46 = vunpack.c.l.b16 %v2219_v35  ;;  %v2839_v47 = vunpack.c.l.b16 %v2235_v12 }
 0x34d   : > { %v2305_v28 = vunpack.c.l.b16 %v2185_v45  ;;  %v2483_v17 = vunpack.c.l.b16 %v2201_v49  ;;  %v2218_v50 = vpack.c.bf16 %v7037_v15, %v7037_v15  ;;  %v2234_v9 = vpack.c.bf16 %v7039_v33, %v7039_v33 }
 0x34e   : > { %v2673_v20 = vpack.c.b16 %v2663_v24, %v2662_v46  ;;  %v2850_v62 = vpack.c.b16 %v2840_v18, %v2839_v47  ;;  %v2217_v8 = vpack.c.bf16 %v7029_v4, %v7029_v4  ;;  %v2233_v32 = vpack.c.bf16 %v7031_v7, %v7031_v7 }
 0x34f   : > { %v2317_v40 = vpack.c.b16 %v2306_v11, %v2305_v28  ;;  %v2495_v2 = vpack.c.b16 %v2484_v44, %v2483_v17  ;;  %v2661_v29 = vunpack.c.l.b16 %v2218_v50  ;;  %v2838_v43 = vunpack.c.l.b16 %v2234_v9  ;;  %v8741_v9 = vld [vmem:[#allocation77_spill] sm:$0xff] }
 0x350   : > { %v2716_v22 = vsel %vm2321_vm1, %v2673_v20, 0  ;;  %v2893_v31 = vsel %vm2321_vm1, %v2850_v62, 0  ;;  %v2660_v4 = vunpack.c.l.b16 %v2217_v8  ;;  %v2837_v0 = vunpack.c.l.b16 %v2233_v32 }
 0x351   : > { %v2359_v33 = vsel %vm2321_vm1, %v2317_v40, 0  ;;  %v2536_v52 = vsel %vm2321_vm1, %v2495_v2, 0  ;;  %v8728_v24 = vpack.c.b16 %v7001_v54, %v6997_v27  ;;  %v8731_v27 = vpack.c.b16 %v7019_v3, %v7015_v63  ;;  %v8743_v40 = vld [vmem:[#allocation80_spill] sm:$0xff] }
 0x352   : > { %v7121_v61 = vpop.f32.mrf.mxu2  ;;  %v7123_v13 = vpop.f32.mrf.mxu3  ;;  %2725 = vmatpush.bf16.xpose.msrb.mxu2 %v2719_v39  ;;  %2902 = vmatpush.bf16.xpose.msrb.mxu3 %v2896_v26  ;;  %v2672_v30 = vpack.c.b16 %v2661_v29, %v2660_v4  ;;  %v2849_v34 = vpack.c.b16 %v2838_v43, %v2837_v0  ;;  %v8729_v39 = vpack.c.b16 %v7003_v57, %v6999_v56  ;;  %v8747_v29 = vld [vmem:[#allocation10_spill] sm:$0xff]  ;;  %v8751_v4 = vld [vmem:[#allocation84_spill] sm:$0xff] }
 0x353   : > { %8722 = vst [vmem:[#allocation89_spill] sm:$0xff] %v7121_v61  ;;  %v7127_v25 = vpop.f32.mrf.mxu0  ;;  %v7129_v16 = vpop.f32.mrf.mxu1  ;;  %2372 = vmatpush.bf16.xpose.msrb.mxu0 %v2362_v38  ;;  %2549 = vmatpush.bf16.xpose.msrb.mxu1 %v2539_v41  ;;  %v2356_v18 = vsel %vm2321_vm1, %v8728_v24, 0  ;;  %v8730_v38 = vpack.c.b16 %v7017_v53, %v7013_v1  ;;  %v2887_v54 = vsel %vm2321_vm1, %v8731_v27, 0  ;;  %v8734_v57 = vpack.c.b16 %v6973_v5, %v6969_v21  ;;  %v8752_v0 = vld [vmem:[#allocation82_spill] sm:$0xff]  ;;  %v8756_v24 = vld [vmem:[#allocation71_spill] sm:$0xff] }
 0x354   : > { %8723 = vst [vmem:[#allocation90_spill] sm:$0xff] %v7123_v13  ;;  %v2713_v35 = vsel %vm2321_vm1, %v2672_v30, 0  ;;  %v2890_v12 = vsel %vm2321_vm1, %v2849_v34, 0  ;;  %v2533_v26 = vsel %vm2321_vm1, %v8729_v39, 0  ;;  %v8735_v53 = vpack.c.b16 %v6975_v55, %v6971_v60  ;;  %v8740_v55 = vld [vmem:[#allocation79_spill] sm:$0xff]  ;;  %v8803_v13 = vld [vmem:[#allocation30_spill] sm:$0xff] }
 0x355   : > { %v2710_v41 = vsel %vm2321_vm1, %v8730_v38, 0  ;;  %v2353_v47 = vsel %vm2321_vm1, %v8734_v57, 0  ;;  %v8736_v63 = vpack.c.b16 %v6985_v59, %v6981_v6  ;;  %v8737_v21 = vpack.c.b16 %v6987_v37, %v6983_v23  ;;  %v8744_v6 = vld [vmem:[#allocation78_spill] sm:$0xff]  ;;  %v8746_v23 = vld [vmem:[#allocation9_spill] sm:$0xff]  ;;  %v8759_v38 = vld [vmem:[#allocation72_spill] sm:$0xff] }
 0x356   : > { %v2530_v1 = vsel %vm2321_vm1, %v8735_v53, 0  ;;  %v8742_v20 = vpack.c.b16 %v8740_v55, %v8741_v9  ;;  %v8745_v59 = vpack.c.b16 %v8743_v40, %v8744_v6  ;;  %v2114_v32 = vpack.c.bf16 %v8746_v23, %v8746_v23  ;;  %v8762_v57 = vld [vmem:[#allocation5_spill] sm:$0xff]  ;;  %v8763_v53 = vld [vmem:[#allocation6_spill] sm:$0xff]  ;;  %v8765_v40 = vld [vmem:[#allocation12_spill] sm:$0xff] }
 0x357   : > { %v2707_v17 = vsel %vm2321_vm1, %v8736_v63, 0  ;;  %v2884_v5 = vsel %vm2321_vm1, %v8737_v21, 0  ;;  %v2130_v43 = vpack.c.bf16 %v8747_v29, %v8747_v29  ;;  %v8753_v30 = vpack.c.b16 %v8751_v4, %v8752_v0  ;;  %v8767_v23 = vld [vmem:[#allocation8_spill] sm:$0xff]  ;;  %v8772_v0 = vld [vmem:[#allocation74_spill] sm:$0xff] }
 0x358   : > { %v2350_v62 = vsel %vm2321_vm1, %v8742_v20, 0  ;;  %v2527_v2 = vsel %vm2321_vm1, %v8745_v59, 0  ;;  %v2258_v21 = vunpack.c.l.b16 %v2114_v32  ;;  %v8764_v20 = vld [vmem:[#allocation11_spill] sm:$0xff]  ;;  %v2162_v6 = vpack.c.bf16 %v8765_v40, %v8765_v40  ;;  %v8771_v4 = vld [vmem:[#allocation76_spill] sm:$0xff]  ;;  %v8781_v40 = vld [vmem:[#allocation14_spill] sm:$0xff] }
 0x359   : > { %v2881_v34 = vsel %vm2321_vm1, %v8753_v30, 0  ;;  %v8766_v59 = vld [vmem:[#allocation7_spill] sm:$0xff]  ;;  %v2161_v29 = vpack.c.bf16 %v8767_v23, %v8767_v23  ;;  %v8773_v30 = vpack.c.b16 %v8771_v4, %v8772_v0  ;;  %v2135_v61 = vpack.c.bf16 %v8803_v13, %v8803_v13 }
 0x35a   : > { %v7141_v15 = vpop.f32.mrf.mxu2  ;;  %v7143_v14 = vpop.f32.mrf.mxu3  ;;  %2726 = vmatpush.bf16.xpose.msrb.mxu2 %v2716_v22  ;;  %2903 = vmatpush.bf16.xpose.msrb.mxu3 %v2893_v31  ;;  %v8748_v22 = vld [vmem:[#allocation83_spill] sm:$0xff]  ;;  %v8749_v31 = vld [vmem:[#allocation81_spill] sm:$0xff] }
 0x35b   : > { %8724 = vst [vmem:[#allocation91_spill] sm:$0xff] %v7141_v15  ;;  %v7147_v42 = vpop.f32.mrf.mxu0  ;;  %v7149_v7 = vpop.f32.mrf.mxu1  ;;  %2373 = vmatpush.bf16.xpose.msrb.mxu0 %v2359_v33  ;;  %2550 = vmatpush.bf16.xpose.msrb.mxu1 %v2536_v52  ;;  %v8750_v33 = vpack.c.b16 %v8748_v22, %v8749_v31  ;;  %v8784_v4 = vld [vmem:[#allocation15_spill] sm:$0xff]  ;;  %v2441_v13 = vunpack.c.l.b16 %v2135_v61 }
 0x35c   : > { %8725 = vst [vmem:[#allocation92_spill] sm:$0xff] %v7143_v14  ;;  %v2147_v0 = vpack.c.bf16 %v8784_v4, %v8784_v4 }
 0x35d   : > { %v2704_v52 = vsel %vm2321_vm1, %v8750_v33, 0  ;;  %v8768_v33 = vld [vmem:[#allocation75_spill] sm:$0xff] }
 0x362   : > { %v7153_v45 = vpop.f32.mrf.mxu2  ;;  %v7155_v49 = vpop.f32.mrf.mxu3  ;;  %2727 = vmatpush.bf16.xpose.msrb.mxu2 %v2713_v35  ;;  %2904 = vmatpush.bf16.xpose.msrb.mxu3 %v2890_v12 }
 0x363   : > { %8726 = vst [vmem:[#allocation93_spill] sm:$0xff] %v7153_v45  ;;  %v7165_v11 = vpop.f32.mrf.mxu0  ;;  %v7167_v44 = vpop.f32.mrf.mxu1  ;;  %2374 = vmatpush.bf16.xpose.msrb.mxu0 %v2356_v18  ;;  %2551 = vmatpush.bf16.xpose.msrb.mxu1 %v2533_v26  ;;  %v8757_v18 = vld [vmem:[#allocation69_spill] sm:$0xff] }
 0x364   : > { %8727 = vst [vmem:[#allocation94_spill] sm:$0xff] %v7155_v49  ;;  %v8758_v39 = vpack.c.b16 %v8756_v24, %v8757_v18 }
 0x366   : > { %v2347_v26 = vsel %vm2321_vm1, %v8758_v39, 0 }
 0x36a   : > { %v7177_v46 = vpop.f32.mrf.mxu2  ;;  %v7179_v56 = vpop.f32.mrf.mxu3  ;;  %2728 = vmatpush.bf16.xpose.msrb.mxu2 %v2710_v41  ;;  %2905 = vmatpush.bf16.xpose.msrb.mxu3 %v2887_v54  ;;  %v8760_v41 = vld [vmem:[#allocation70_spill] sm:$0xff] }
 0x36b   : > { %8732 = vst [vmem:[#allocation95_spill] sm:$0xff] %v7177_v46  ;;  %v7189_v28 = vpop.f32.mrf.mxu0  ;;  %v7191_v3 = vpop.f32.mrf.mxu1  ;;  %2375 = vmatpush.bf16.xpose.msrb.mxu0 %v2353_v47  ;;  %2552 = vmatpush.bf16.xpose.msrb.mxu1 %v2530_v1  ;;  %v8761_v27 = vpack.c.b16 %v8759_v38, %v8760_v41  ;;  %v2113_v47 = vpack.c.bf16 %v8762_v57, %v8762_v57 }
 0x36c   : > { %8733 = vst [vmem:[#allocation96_spill] sm:$0xff] %v7179_v56  ;;  %v2129_v1 = vpack.c.bf16 %v8763_v53, %v8763_v53  ;;  %v8776_v53 = vld [vmem:[#allocation17_spill] sm:$0xff] }
 0x36d   : > { %v2524_v54 = vsel %vm2321_vm1, %v8761_v27, 0  ;;  %v2257_v55 = vunpack.c.l.b16 %v2113_v47 }
 0x36e   : > { %v2435_v9 = vunpack.c.l.b16 %v2129_v1  ;;  %v2116_v1 = vpack.c.bf16 %v8776_v53, %v8776_v53 }
 0x36f   : > { %v2273_v22 = vpack.c.b16 %v2258_v21, %v2257_v55  ;;  %v8777_v21 = vld [vmem:[#allocation18_spill] sm:$0xff] }
 0x370   : > { %v2260_v23 = vunpack.c.l.b16 %v2116_v1 }
 0x372   : > { %v7201_v50 = vpop.f32.mrf.mxu2  ;;  %v7203_v60 = vpop.f32.mrf.mxu3  ;;  %2729 = vmatpush.bf16.xpose.msrb.mxu2 %v2707_v17  ;;  %2906 = vmatpush.bf16.xpose.msrb.mxu3 %v2884_v5  ;;  %v2436_v5 = vunpack.c.l.b16 %v2130_v43 }
 0x373   : > { %8738 = vst [vmem:[#allocation97_spill] sm:$0xff] %v7201_v50  ;;  %v7213_v8 = vpop.f32.mrf.mxu0  ;;  %v7215_v37 = vpop.f32.mrf.mxu1  ;;  %2376 = vmatpush.bf16.xpose.msrb.mxu0 %v2350_v62  ;;  %2553 = vmatpush.bf16.xpose.msrb.mxu1 %v2527_v2  ;;  %v2146_v62 = vpack.c.bf16 %v8764_v20, %v8764_v20  ;;  %v2145_v2 = vpack.c.bf16 %v8766_v59, %v8766_v59  ;;  %v8780_v20 = vld [vmem:[#allocation13_spill] sm:$0xff]  ;;  %v8816_v50 = vld [vmem:[#allocation51_spill] sm:$0xff] }
 0x374   : > { %8739 = vst [vmem:[#allocation98_spill] sm:$0xff] %v7203_v60  ;;  %v2451_v31 = vpack.c.b16 %v2436_v5, %v2435_v9  ;;  %v2132_v5 = vpack.c.bf16 %v8777_v21, %v8777_v21  ;;  %v2614_v21 = vunpack.c.l.b16 %v2147_v0  ;;  %v8813_v60 = vld [vmem:[#allocation50_spill] sm:$0xff] }
 0x375   : > { %v2613_v39 = vunpack.c.l.b16 %v2146_v62  ;;  %v2612_v27 = vunpack.c.l.b16 %v2145_v2  ;;  %v2115_v62 = vpack.c.bf16 %v8780_v20, %v8780_v20 }
 0x377   : > { %v2628_v57 = vpack.c.b16 %v2613_v39, %v2612_v27 }
 0x37a   : > { %v7229_v35 = vpop.f32.mrf.mxu2  ;;  %v7231_v12 = vpop.f32.mrf.mxu3  ;;  %2730 = vmatpush.bf16.xpose.msrb.mxu2 %v2704_v52  ;;  %2907 = vmatpush.bf16.xpose.msrb.mxu3 %v2881_v34  ;;  %v8769_v52 = vld [vmem:[#allocation73_spill] sm:$0xff]  ;;  %v2878_v34 = vsel %vm2321_vm1, %v8773_v30, 0  ;;  %v8785_v30 = vld [vmem:[#allocation16_spill] sm:$0xff] }
 0x37b   : > { %8754 = vst [vmem:[#allocation79_spill] sm:$0xff] %v7229_v35  ;;  %v7245_v63 = vpop.f32.mrf.mxu0  ;;  %v7247_v17 = vpop.f32.mrf.mxu1  ;;  %2377 = vmatpush.bf16.xpose.msrb.mxu0 %v2347_v26  ;;  %2554 = vmatpush.bf16.xpose.msrb.mxu1 %v2524_v54  ;;  %v8770_v32 = vpack.c.b16 %v8768_v33, %v8769_v52  ;;  %v2790_v26 = vunpack.c.l.b16 %v2162_v6  ;;  %v2789_v54 = vunpack.c.l.b16 %v2161_v29  ;;  %v2131_v6 = vpack.c.bf16 %v8781_v40, %v8781_v40  ;;  %v8782_v33 = vld [vmem:[#allocation19_spill] sm:$0xff]  ;;  %v8788_v40 = vld [vmem:[#allocation25_spill] sm:$0xff] }
 0x37c   : > { %8755 = vst [vmem:[#allocation77_spill] sm:$0xff] %v7231_v12  ;;  %v2438_v29 = vunpack.c.l.b16 %v2132_v5  ;;  %v2148_v52 = vpack.c.bf16 %v8782_v33, %v8782_v33  ;;  %v8792_v33 = vld [vmem:[#allocation21_spill] sm:$0xff]  ;;  %v8817_v12 = vld [vmem:[#allocation52_spill] sm:$0xff] }
 0x37d   : > { %v2701_v43 = vsel %vm2321_vm1, %v8770_v32, 0  ;;  %v2805_v47 = vpack.c.b16 %v2790_v26, %v2789_v54  ;;  %v8783_v32 = vld [vmem:[#allocation20_spill] sm:$0xff] }
 0x382   : > { %v7265_v24 = vpop.f32.mrf.mxu2  ;;  %v7267_v18 = vpop.f32.mrf.mxu3  ;;  %2731 = vmatpush.bf16.xpose.msrb.mxu2 %v2701_v43  ;;  %2908 = vmatpush.bf16.xpose.msrb.mxu3 %v2878_v34  ;;  %v2164_v43 = vpack.c.bf16 %v8783_v32, %v8783_v32  ;;  %v2163_v34 = vpack.c.bf16 %v8785_v30, %v8785_v30  ;;  %v8793_v32 = vld [vmem:[#allocation22_spill] sm:$0xff] }
 0x383   : > { %8774 = vst [vmem:[#allocation80_spill] sm:$0xff] %v7265_v24  ;;  %5379 = vmatmul.msk.bf16.vlgmr.msrb.gmra.mxu0 %vm2321_vm1, %v2273_v22  ;;  %5387 = vmatmul.msk.bf16.vlgmr.msrb.gmra.mxu1 %vm2321_vm1, %v2451_v31  ;;  %v7271_v38 = vpop.f32.mrf.mxu0  ;;  %v7273_v41 = vpop.f32.mrf.mxu1  ;;  %v2259_v22 = vunpack.c.l.b16 %v2115_v62  ;;  %v2437_v31 = vunpack.c.l.b16 %v2131_v6  ;;  %v2118_v6 = vpack.c.bf16 %v8788_v40, %v8788_v40  ;;  %v8797_v40 = vld [vmem:[#allocation24_spill] sm:$0xff] }
 0x384   : > { %8775 = vst [vmem:[#allocation78_spill] sm:$0xff] %v7267_v18  ;;  %v2791_v5 = vunpack.c.l.b16 %v2163_v34 }
 0x385   : > { %v2274_v39 = vpack.c.b16 %v2260_v23, %v2259_v22  ;;  %v2452_v26 = vpack.c.b16 %v2438_v29, %v2437_v31  ;;  %v8789_v23 = vld [vmem:[#allocation26_spill] sm:$0xff]  ;;  %v2262_v30 = vunpack.c.l.b16 %v2118_v6 }
 0x386   : > { %v2134_v29 = vpack.c.bf16 %v8789_v23, %v8789_v23  ;;  %v2165_v23 = vpack.c.bf16 %v8797_v40, %v8797_v40  ;;  %v8799_v40 = vld [vmem:[#allocation34_spill] sm:$0xff] }
 0x388   : > { %v2440_v34 = vunpack.c.l.b16 %v2134_v29 }
 0x389   : > { %5395 = vmatmul.msk.bf16.vlgmr.msrb.gmra.mxu2 %vm2321_vm1, %v2628_v57  ;;  %5403 = vmatmul.msk.bf16.vlgmr.msrb.gmra.mxu3 %vm2321_vm1, %v2805_v47  ;;  %v2615_v57 = vunpack.c.l.b16 %v2148_v52  ;;  %v2792_v47 = vunpack.c.l.b16 %v2164_v43  ;;  %v2117_v52 = vpack.c.bf16 %v8792_v33, %v8792_v33  ;;  %v2133_v43 = vpack.c.bf16 %v8793_v32, %v8793_v32 }
 0x38a   : > { %v7281_v55 = vpop.f32.mrf.mxu2  ;;  %v7283_v9 = vpop.f32.mrf.mxu3 }
 0x38b   : > { %8778 = vst [vmem:[#allocation9_spill] sm:$0xff] %v7281_v55  ;;  %v7289_v59 = vpop.f32.mrf.mxu0  ;;  %v7291_v2 = vpop.f32.mrf.mxu1  ;;  %v2629_v20 = vpack.c.b16 %v2615_v57, %v2614_v21  ;;  %v2806_v62 = vpack.c.b16 %v2792_v47, %v2791_v5  ;;  %v8794_v57 = vld [vmem:[#allocation27_spill] sm:$0xff]  ;;  %v8795_v21 = vld [vmem:[#allocation28_spill] sm:$0xff] }
 0x38c   : > { %8779 = vst [vmem:[#allocation10_spill] sm:$0xff] %v7283_v9  ;;  %v2150_v47 = vpack.c.bf16 %v8794_v57, %v8794_v57  ;;  %v2166_v5 = vpack.c.bf16 %v8795_v21, %v8795_v21  ;;  %v8798_v21 = vld [vmem:[#allocation33_spill] sm:$0xff]  ;;  %v8821_v55 = vld [vmem:[#allocation48_spill] sm:$0xff] }
 0x38e   : > { %v2617_v29 = vunpack.c.l.b16 %v2150_v47 }
 0x392   : > { %v7301_v27 = vpop.f32.mrf.mxu2  ;;  %v7303_v54 = vpop.f32.mrf.mxu3 }
 0x393   : > { %8786 = vst [vmem:[#allocation83_spill] sm:$0xff] %v7301_v27  ;;  %5380 = vmatmul.msk.bf16.gmra.mxu0 %vm2321_vm1, %v2274_v39  ;;  %5388 = vmatmul.msk.bf16.gmra.mxu1 %vm2321_vm1, %v2452_v26  ;;  %v7307_v53 = vpop.f32.mrf.mxu0  ;;  %v7309_v1 = vpop.f32.mrf.mxu1  ;;  %v2261_v39 = vunpack.c.l.b16 %v2117_v52  ;;  %v2439_v26 = vunpack.c.l.b16 %v2133_v43  ;;  %v2794_v52 = vunpack.c.l.b16 %v2166_v5  ;;  %v8801_v5 = vld [vmem:[#allocation36_spill] sm:$0xff] }
 0x394   : > { %8787 = vst [vmem:[#allocation81_spill] sm:$0xff] %v7303_v54 }
 0x395   : > { %v2275_v33 = vpack.c.b16 %v2262_v30, %v2261_v39  ;;  %v2453_v32 = vpack.c.b16 %v2440_v34, %v2439_v26  ;;  %v2136_v30 = vpack.c.bf16 %v8799_v40, %v8799_v40  ;;  %v2793_v39 = vunpack.c.l.b16 %v2165_v23  ;;  %v8800_v26 = vld [vmem:[#allocation35_spill] sm:$0xff]  ;;  %v8805_v40 = vld [vmem:[#allocation32_spill] sm:$0xff] }
 0x396   : > { %v2152_v47 = vpack.c.bf16 %v8800_v26, %v8800_v26 }
 0x397   : > { %v2807_v15 = vpack.c.b16 %v2794_v52, %v2793_v39  ;;  %v2442_v45 = vunpack.c.l.b16 %v2136_v30 }
 0x398   : > { %v7363_v26 = vunpack.c.l.b16 %v2152_v47 }
 0x399   : > { %5396 = vmatmul.msk.bf16.gmra.mxu2 %vm2321_vm1, %v2629_v20  ;;  %5404 = vmatmul.msk.bf16.gmra.mxu3 %vm2321_vm1, %v2806_v62  ;;  %v8796_v20 = vld [vmem:[#allocation23_spill] sm:$0xff] }
 0x39a   : > { %v7317_v22 = vpop.f32.mrf.mxu2  ;;  %v7319_v31 = vpop.f32.mrf.mxu3  ;;  %v2149_v62 = vpack.c.bf16 %v8796_v20, %v8796_v20  ;;  %v2120_v20 = vpack.c.bf16 %v8798_v21, %v8798_v21  ;;  %v8804_v21 = vld [vmem:[#allocation31_spill] sm:$0xff] }
 0x39b   : > { %8790 = vst [vmem:[#allocation84_spill] sm:$0xff] %v7317_v22  ;;  %v7325_v4 = vpop.f32.mrf.mxu0  ;;  %v7327_v0 = vpop.f32.mrf.mxu1  ;;  %v2151_v49 = vpack.c.bf16 %v8804_v21, %v8804_v21  ;;  %v8808_v21 = vld [vmem:[#allocation43_spill] sm:$0xff] }
 0x39c   : > { %8791 = vst [vmem:[#allocation82_spill] sm:$0xff] %v7319_v31  ;;  %v2616_v34 = vunpack.c.l.b16 %v2149_v62  ;;  %v2167_v62 = vpack.c.bf16 %v8805_v40, %v8805_v40  ;;  %v2264_v23 = vunpack.c.l.b16 %v2120_v20  ;;  %v2154_v40 = vpack.c.bf16 %v8808_v21, %v8808_v21 }
 0x39e   : > { %v2630_v14 = vpack.c.b16 %v2617_v29, %v2616_v34  ;;  %v7373_v34 = vunpack.c.l.b16 %v2151_v49  ;;  %v7375_v39 = vunpack.c.l.b16 %v2167_v62  ;;  %v8809_v62 = vld [vmem:[#allocation44_spill] sm:$0xff] }
 0x39f   : > { %v2170_v46 = vpack.c.bf16 %v8809_v62, %v8809_v62  ;;  %v2156_v62 = vpack.c.bf16 %v8816_v50, %v8816_v50 }
 0x3a1   : > { %v7419_v9 = vunpack.c.l.b16 %v2170_v46 }
 0x3a2   : > { %v7337_v58 = vpop.f32.mrf.mxu2  ;;  %v7339_v6 = vpop.f32.mrf.mxu3 }
 0x3a3   : > { %5381 = vmatmul.msk.bf16.gmra.mxu0 %vm2321_vm1, %v2275_v33  ;;  %5389 = vmatmul.msk.bf16.gmra.mxu1 %vm2321_vm1, %v2453_v32  ;;  %v7343_v43 = vpop.f32.mrf.mxu0  ;;  %v7345_v57 = vpop.f32.mrf.mxu1  ;;  %v2168_v33 = vpack.c.bf16 %v8801_v5, %v8801_v5  ;;  %v2119_v32 = vpack.c.bf16 %v8802_v10, %v8802_v10  ;;  %v2454_v5 = vpack.c.b16 %v2442_v45, %v2441_v13 }
 0x3a5   : > { %v7365_v56 = vunpack.c.l.b16 %v2168_v33  ;;  %v2263_v10 = vunpack.c.l.b16 %v2119_v32  ;;  %v8806_v33 = vld [vmem:[#allocation41_spill] sm:$0xff]  ;;  %v2631_v32 = vpack.c.b16 %v7363_v26, %v7373_v34  ;;  %v2140_v26 = vpack.c.bf16 %v8813_v60, %v8813_v60  ;;  %v8814_v34 = vld [vmem:[#allocation39_spill] sm:$0xff]  ;;  %v8819_v60 = vld [vmem:[#allocation46_spill] sm:$0xff] }
 0x3a6   : > { %v2139_v24 = vpack.c.bf16 %v8819_v60, %v8819_v60 }
 0x3a7   : > { %v2276_v47 = vpack.c.b16 %v2264_v23, %v2263_v10  ;;  %v2808_v49 = vpack.c.b16 %v7365_v56, %v7375_v39  ;;  %v8810_v23 = vld [vmem:[#allocation37_spill] sm:$0xff]  ;;  %v8811_v10 = vld [vmem:[#allocation38_spill] sm:$0xff]  ;;  %v2153_v56 = vpack.c.bf16 %v8814_v34, %v8814_v34  ;;  %v8815_v39 = vld [vmem:[#allocation40_spill] sm:$0xff]  ;;  %v7417_v34 = vunpack.c.l.b16 %v2154_v40 }
 0x3a8   : > { %v2121_v45 = vpack.c.bf16 %v8810_v23, %v8810_v23  ;;  %v2137_v13 = vpack.c.bf16 %v8811_v10, %v8811_v10  ;;  %v2169_v21 = vpack.c.bf16 %v8815_v39, %v8815_v39  ;;  %v2172_v23 = vpack.c.bf16 %v8817_v12, %v8817_v12  ;;  %v8820_v39 = vld [vmem:[#allocation47_spill] sm:$0xff] }
 0x3a9   : > { %5397 = vmatmul.msk.bf16.gmra.mxu2 %vm2321_vm1, %v2630_v14  ;;  %5405 = vmatmul.msk.bf16.gmra.mxu3 %vm2321_vm1, %v2807_v15  ;;  %v2122_v14 = vpack.c.bf16 %v8806_v33, %v8806_v33  ;;  %v8807_v15 = vld [vmem:[#allocation42_spill] sm:$0xff]  ;;  %v8812_v33 = vld [vmem:[#allocation49_spill] sm:$0xff]  ;;  %v2155_v50 = vpack.c.bf16 %v8820_v39, %v8820_v39  ;;  %v2171_v12 = vpack.c.bf16 %v8821_v55, %v8821_v55  ;;  %v7437_v46 = vunpack.c.l.b16 %v2153_v56 }
 0x3aa   : > { %v7369_v29 = vpop.f32.mrf.mxu2  ;;  %v7371_v52 = vpop.f32.mrf.mxu3  ;;  %v2138_v61 = vpack.c.bf16 %v8807_v15, %v8807_v15  ;;  %v2124_v15 = vpack.c.bf16 %v8812_v33, %v8812_v33  ;;  %v8818_v33 = vld [vmem:[#allocation45_spill] sm:$0xff]  ;;  %v7439_v60 = vunpack.c.l.b16 %v2169_v21  ;;  %v7441_v39 = vunpack.c.l.b16 %v2156_v62 }
 0x3ab   : > { %v7377_v20 = vpop.f32.mrf.mxu0  ;;  %v7379_v30 = vpop.f32.mrf.mxu1  ;;  %v7409_v35 = vunpack.c.l.b16 %v2122_v14  ;;  %v2123_v18 = vpack.c.bf16 %v8818_v33, %v8818_v33  ;;  %v7425_v14 = vunpack.c.l.b16 %v2121_v45  ;;  %v7431_v33 = vunpack.c.l.b16 %v2140_v26 }
 0x3ac   : > { %v7411_v10 = vunpack.c.l.b16 %v2138_v61  ;;  %v7427_v61 = vunpack.c.l.b16 %v2137_v13  ;;  %v7429_v54 = vunpack.c.l.b16 %v2124_v15  ;;  %8822 = vst [vmem:[#allocation71_spill] sm:$0xff] %v7439_v60  ;;  %v7443_v31 = vunpack.c.l.b16 %v2172_v23 }
 0x3ad   : > { %v7451_v26 = vunpack.c.l.b16 %v2123_v18  ;;  %v7453_v56 = vunpack.c.l.b16 %v2139_v24  ;;  %v7459_v62 = vunpack.c.l.b16 %v2155_v50 }
 0x3b2   : > { %v7433_v27 = vpop.f32.mrf.mxu2  ;;  %v7435_v40 = vpop.f32.mrf.mxu3 }
 0x3b3   : > { %5382 = vmatmul.msk.bf16.gmra.mxu0 %vm2321_vm1, %v2276_v47  ;;  %5390 = vmatmul.msk.bf16.gmra.mxu1 %vm2321_vm1, %v2454_v5  ;;  %v1817_v55 = vpop.f32.mrf.mxu0  ;;  %v1914_v45 = vpop.f32.mrf.mxu1  ;;  %v7461_v5 = vunpack.c.l.b16 %v2171_v12  ;;  %v3617_v47 = vpack.c.bf16 %v7327_v0, %v7327_v0 }
 0x3b4   : > { %v3604_v21 = vpack.c.bf16 %v1817_v55, %v1817_v55  ;;  %v3620_v22 = vpack.c.bf16 %v1914_v45, %v1914_v45  ;;  %v3603_v55 = vpack.c.bf16 %v7377_v20, %v7377_v20  ;;  %v3619_v45 = vpack.c.bf16 %v7379_v30, %v7379_v30 }
 0x3b5   : > { %8823 = vst [vmem:[#allocation69_spill] sm:$0xff] %v7461_v5 }
 0x3b6   : > { %v3732_v12 = vunpack.c.l.b16 %v3604_v21  ;;  %v3877_v19 = vunpack.c.l.b16 %v3620_v22  ;;  %v3876_v23 = vunpack.c.l.b16 %v3619_v45  ;;  %v3599_v22 = vpack.c.bf16 %v7289_v59, %v7289_v59 }
 0x3b9   : > { %5398 = vmatmul.msk.bf16.gmra.mxu2 %vm2321_vm1, %v2631_v32  ;;  %5406 = vmatmul.msk.bf16.gmra.mxu3 %vm2321_vm1, %v2808_v49  ;;  %v3602_v32 = vpack.c.bf16 %v7343_v43, %v7343_v43  ;;  %v3618_v49 = vpack.c.bf16 %v7345_v57, %v7345_v57  ;;  %v3731_v43 = vunpack.c.l.b16 %v3603_v55 }
 0x3ba   : > { %v2011_v13 = vpop.f32.mrf.mxu2  ;;  %v2108_v50 = vpop.f32.mrf.mxu3 }
 0x3bb   : > { %v1819_v24 = vpop.f32.mrf.mxu0  ;;  %v1916_v18 = vpop.f32.mrf.mxu1  ;;  %v3652_v21 = vpack.c.bf16 %v2108_v50, %v2108_v50  ;;  %v3730_v30 = vunpack.c.l.b16 %v3602_v32  ;;  %v3875_v0 = vunpack.c.l.b16 %v3618_v49 }
 0x3bc   : > { %v3605_v15 = vpack.c.bf16 %v1819_v24, %v1819_v24  ;;  %v3621_v60 = vpack.c.bf16 %v1916_v18, %v1916_v18  ;;  %v3598_v18 = vpack.c.bf16 %v7271_v38, %v7271_v38  ;;  %v3601_v24 = vpack.c.bf16 %v7325_v4, %v7325_v4 }
 0x3bd   : > { %v3600_v38 = vpack.c.bf16 %v7307_v53, %v7307_v53  ;;  %v3616_v4 = vpack.c.bf16 %v7309_v1, %v7309_v1  ;;  %v8829_v53 = vpack.c.b16 %v7411_v10, %v7427_v61  ;;  %v3635_v1 = vpack.c.bf16 %v7433_v27, %v7433_v27 }
 0x3be   : > { %v3733_v20 = vunpack.c.l.b16 %v3605_v15  ;;  %v3878_v51 = vunpack.c.l.b16 %v3621_v60  ;;  %v3615_v60 = vpack.c.bf16 %v7291_v2, %v7291_v2  ;;  %v3636_v15 = vpack.c.bf16 %v2011_v13, %v2011_v13 }
 0x3bf   : > { %v8828_v2 = vpack.c.b16 %v7409_v35, %v7425_v14  ;;  %v3651_v13 = vpack.c.bf16 %v7435_v40, %v7435_v40  ;;  %v4167_v32 = vunpack.c.l.b16 %v3652_v21  ;;  %v3614_v35 = vpack.c.bf16 %v7273_v41, %v7273_v41 }
 0x3c0   : > { %v3741_v5 = vpack.c.b16 %v3733_v20, %v3732_v12  ;;  %v3886_v57 = vpack.c.b16 %v3878_v51, %v3877_v19  ;;  %v3729_v51 = vunpack.c.l.b16 %v3601_v24  ;;  %v3874_v19 = vunpack.c.l.b16 %v3617_v47 }
 0x3c1   : > { %v3885_v47 = vpack.c.b16 %v3876_v23, %v3875_v0  ;;  %v4022_v50 = vunpack.c.l.b16 %v3636_v15  ;;  %v3634_v10 = vpack.c.bf16 %v7369_v29, %v7369_v29  ;;  %v3650_v14 = vpack.c.bf16 %v7371_v52, %v7371_v52  ;;  %v8831_v52 = vld [vmem:[#allocation71_spill] sm:$0xff] }
 0x3c2   : > { %v2013_v55 = vpop.f32.mrf.mxu2  ;;  %v2110_v45 = vpop.f32.mrf.mxu3  ;;  %3750 = vmatpush.bf16.msra.mxu0 %v3741_v5  ;;  %3895 = vmatpush.bf16.msra.mxu1 %v3886_v57  ;;  %v3740_v5 = vpack.c.b16 %v3731_v43, %v3730_v30  ;;  %v3728_v27 = vunpack.c.l.b16 %v3600_v38  ;;  %v3873_v61 = vunpack.c.l.b16 %v3616_v4  ;;  %v3633_v23 = vpack.c.bf16 %v7337_v58, %v7337_v58  ;;  %v8833_v58 = vld [vmem:[#allocation84_spill] sm:$0xff] }
 0x3c3   : > { %v3637_v59 = vpack.c.bf16 %v2013_v55, %v2013_v55  ;;  %v3653_v12 = vpack.c.bf16 %v2110_v45, %v2110_v45  ;;  %5383 = vmatmul.msk.bf16.gmra.mxu0 %vm2321_vm1, %v8828_v2  ;;  %5391 = vmatmul.msk.bf16.gmra.mxu1 %vm2321_vm1, %v8829_v53  ;;  %v3649_v24 = vpack.c.bf16 %v7339_v6, %v7339_v6  ;;  %v4021_v43 = vunpack.c.l.b16 %v3635_v1  ;;  %v8834_v6 = vld [vmem:[#allocation82_spill] sm:$0xff]  ;;  %v8835_v45 = vld [vmem:[#allocation83_spill] sm:$0xff] }
 0x3c4   : > { %v4166_v41 = vunpack.c.l.b16 %v3651_v13  ;;  %v3727_v57 = vunpack.c.l.b16 %v3599_v22  ;;  %v3872_v15 = vunpack.c.l.b16 %v3615_v60  ;;  %v8830_v29 = vpack.c.b16 %v7417_v34, %v7437_v46 }
 0x3c5   : > { %v4023_v49 = vunpack.c.l.b16 %v3637_v59  ;;  %v4168_v20 = vunpack.c.l.b16 %v3653_v12  ;;  %v8832_v21 = vpack.c.b16 %v7419_v9, %v8831_v52  ;;  %v3739_v38 = vpack.c.b16 %v3729_v51, %v3728_v27  ;;  %v8836_v9 = vld [vmem:[#allocation81_spill] sm:$0xff] }
 0x3c6   : > { %3751 = vmatpush.bf16.msra.mxu0 %v3740_v5  ;;  %3896 = vmatpush.bf16.msra.mxu1 %v3885_v47  ;;  %v3884_v4 = vpack.c.b16 %v3874_v19, %v3873_v61  ;;  %v3632_v0 = vpack.c.bf16 %v8833_v58, %v8833_v58  ;;  %v3648_v55 = vpack.c.bf16 %v8834_v6, %v8834_v6  ;;  %v4020_v22 = vunpack.c.l.b16 %v3634_v10 }
 0x3c7   : > { %v4031_v40 = vpack.c.b16 %v4023_v49, %v4022_v50  ;;  %v4176_v30 = vpack.c.b16 %v4168_v20, %v4167_v32  ;;  %v4165_v60 = vunpack.c.l.b16 %v3650_v14  ;;  %v3726_v34 = vunpack.c.l.b16 %v3598_v18  ;;  %v8839_v32 = vld [vmem:[#allocation9_spill] sm:$0xff]  ;;  %v8840_v20 = vld [vmem:[#allocation10_spill] sm:$0xff] }
 0x3c8   : > { %v3871_v46 = vunpack.c.l.b16 %v3614_v35  ;;  %v3631_v59 = vpack.c.bf16 %v8835_v45, %v8835_v45  ;;  %v3647_v12 = vpack.c.bf16 %v8836_v9, %v8836_v9  ;;  %v4019_v51 = vunpack.c.l.b16 %v3633_v23  ;;  %v8844_v23 = vld [vmem:[#allocation78_spill] sm:$0xff] }
 0x3c9   : > { %5399 = vmatmul.msk.bf16.gmra.mxu2 %vm2321_vm1, %v8830_v29  ;;  %5407 = vmatmul.msk.bf16.gmra.mxu3 %vm2321_vm1, %v8832_v21  ;;  %v4164_v19 = vunpack.c.l.b16 %v3649_v24  ;;  %v4030_v2 = vpack.c.b16 %v4021_v43, %v4020_v22  ;;  %v4175_v53 = vpack.c.b16 %v4166_v41, %v4165_v60  ;;  %v8837_v1 = vpack.c.bf16 %v7245_v63, %v7245_v63  ;;  %v8847_v21 = vld [vmem:[#allocation79_spill] sm:$0xff] }
 0x3ca   : > { %4040 = vmatpush.bf16.msra.mxu2 %v4031_v40  ;;  %4185 = vmatpush.bf16.msra.mxu3 %v4176_v30  ;;  %v8838_v18 = vpack.c.bf16 %v7247_v17, %v7247_v17  ;;  %v3738_v47 = vpack.c.b16 %v3727_v57, %v3726_v34  ;;  %v3883_v50 = vpack.c.b16 %v3872_v15, %v3871_v46  ;;  %v4018_v10 = vunpack.c.l.b16 %v3632_v0  ;;  %v8843_v40 = vld [vmem:[#allocation80_spill] sm:$0xff]  ;;  %v8851_v46 = vld [vmem:[#allocation97_spill] sm:$0xff] }
 0x3cb   : > { %3752 = vmatpush.bf16.msra.mxu0 %v3739_v38  ;;  %3897 = vmatpush.bf16.msra.mxu1 %v3884_v4  ;;  %v3725_v13 = vunpack.c.l.b16 %v8837_v1  ;;  %v3630_v49 = vpack.c.bf16 %v8839_v32, %v8839_v32  ;;  %v3646_v35 = vpack.c.bf16 %v8840_v20, %v8840_v20  ;;  %v4163_v14 = vunpack.c.l.b16 %v3648_v55  ;;  %v8848_v4 = vld [vmem:[#allocation77_spill] sm:$0xff] }
 0x3cc   : > { %v3870_v5 = vunpack.c.l.b16 %v8838_v18  ;;  %v8841_v63 = vpack.c.bf16 %v7213_v8, %v7213_v8  ;;  %v8842_v17 = vpack.c.bf16 %v7215_v37, %v7215_v37  ;;  %v3629_v30 = vpack.c.bf16 %v8843_v40, %v8843_v40 }
 0x3cd   : > { %v3645_v24 = vpack.c.bf16 %v8844_v23, %v8844_v23  ;;  %v4017_v43 = vunpack.c.l.b16 %v3631_v59  ;;  %v4162_v41 = vunpack.c.l.b16 %v3647_v12  ;;  %v4029_v57 = vpack.c.b16 %v4019_v51, %v4018_v10  ;;  %v8852_v59 = vld [vmem:[#allocation98_spill] sm:$0xff] }
 0x3ce   : > { %4041 = vmatpush.bf16.msra.mxu2 %v4030_v2  ;;  %4186 = vmatpush.bf16.msra.mxu3 %v4175_v53  ;;  %v3724_v27 = vunpack.c.l.b16 %v8841_v63  ;;  %v3869_v61 = vunpack.c.l.b16 %v8842_v17  ;;  %v4174_v15 = vpack.c.b16 %v4164_v19, %v4163_v14  ;;  %v8845_v8 = vpack.c.bf16 %v7189_v28, %v7189_v28  ;;  %v8862_v14 = vld [vmem:[#allocation94_spill] sm:$0xff] }
 0x3cf   : > { %3753 = vmatpush.bf16.msra.mxu0 %v3738_v47  ;;  %3898 = vmatpush.bf16.msra.mxu1 %v3883_v50  ;;  %v8846_v37 = vpack.c.bf16 %v7191_v3, %v7191_v3  ;;  %v3628_v38 = vpack.c.bf16 %v8847_v21, %v8847_v21  ;;  %v3644_v58 = vpack.c.bf16 %v8848_v4, %v8848_v4  ;;  %v4016_v0 = vunpack.c.l.b16 %v3630_v49  ;;  %v8870_v21 = vld [vmem:[#allocation85_spill] sm:$0xff] }
 0x3d0   : > { %v3723_v29 = vunpack.c.l.b16 %v8845_v8  ;;  %v4161_v6 = vunpack.c.l.b16 %v3646_v35  ;;  %v3737_v55 = vpack.c.b16 %v3725_v13, %v3724_v27  ;;  %v3882_v22 = vpack.c.b16 %v3870_v5, %v3869_v61  ;;  %v8857_v13 = vld [vmem:[#allocation95_spill] sm:$0xff]  ;;  %v8861_v35 = vld [vmem:[#allocation93_spill] sm:$0xff] }
 0x3d1   : > { %v3868_v52 = vunpack.c.l.b16 %v8846_v37  ;;  %v8849_v28 = vpack.c.bf16 %v7165_v11, %v7165_v11  ;;  %v8850_v3 = vpack.c.bf16 %v7167_v44, %v7167_v44  ;;  %v3627_v45 = vpack.c.bf16 %v8851_v46, %v8851_v46  ;;  %v8868_v8 = vld [vmem:[#allocation69_spill] sm:$0xff] }
 0x3d2   : > { %4042 = vmatpush.bf16.msra.mxu2 %v4029_v57  ;;  %4187 = vmatpush.bf16.msra.mxu3 %v4174_v15  ;;  %v3643_v9 = vpack.c.bf16 %v8852_v59, %v8852_v59  ;;  %v8853_v12 = vpack.c.b16 %v7429_v54, %v7451_v26  ;;  %v8854_v51 = vpack.c.b16 %v7431_v33, %v7453_v56  ;;  %v4015_v11 = vunpack.c.l.b16 %v3629_v30  ;;  %v8858_v33 = vld [vmem:[#allocation96_spill] sm:$0xff]  ;;  %v8878_v59 = vld [vmem:[#allocation58_spill] sm:$0xff] }
 0x3d3   : > { %v3722_v60 = vunpack.c.l.b16 %v8849_v28  ;;  %v3867_v34 = vunpack.c.l.b16 %v8850_v3  ;;  %v4160_v19 = vunpack.c.l.b16 %v3645_v24  ;;  %3754 = vmatpush.bf16.msra.mxu0 %v3737_v55  ;;  %3899 = vmatpush.bf16.msra.mxu1 %v3882_v22  ;;  %v4028_v44 = vpack.c.b16 %v4017_v43, %v4016_v0  ;;  %v8865_v24 = vld [vmem:[#allocation91_spill] sm:$0xff]  ;;  %v8874_v0 = vld [vmem:[#allocation89_spill] sm:$0xff] }
 0x3d4   : > { %5384 = vmatmul.msk.bf16.gmra.mxu0 %vm2321_vm1, %v8853_v12  ;;  %5392 = vmatmul.msk.bf16.gmra.mxu1 %vm2321_vm1, %v8854_v51  ;;  %v4173_v2 = vpack.c.b16 %v4162_v41, %v4161_v6  ;;  %v8855_v53 = vpack.c.bf16 %v7147_v42, %v7147_v42  ;;  %v8856_v54 = vpack.c.bf16 %v7149_v7, %v7149_v7  ;;  %v4014_v5 = vunpack.c.l.b16 %v3628_v38  ;;  %v8866_v41 = vld [vmem:[#allocation92_spill] sm:$0xff]  ;;  %v8880_v51 = vld [vmem:[#allocation87_spill] sm:$0xff] }
 0x3d5   : > { %v3626_v18 = vpack.c.bf16 %v8857_v13, %v8857_v13  ;;  %v3642_v56 = vpack.c.bf16 %v8858_v33, %v8858_v33  ;;  %v4159_v47 = vunpack.c.l.b16 %v3644_v58  ;;  %v3736_v50 = vpack.c.b16 %v3723_v29, %v3722_v60  ;;  %v8872_v58 = vld [vmem:[#allocation86_spill] sm:$0xff] }
 0x3d6   : > { %v3721_v1 = vunpack.c.l.b16 %v8855_v53  ;;  %v3866_v26 = vunpack.c.l.b16 %v8856_v54  ;;  %4043 = vmatpush.bf16.msra.mxu2 %v4028_v44  ;;  %4188 = vmatpush.bf16.msra.mxu3 %v4173_v2  ;;  %v3881_v32 = vpack.c.b16 %v3868_v52, %v3867_v34  ;;  %v8859_v42 = vpack.c.bf16 %v7127_v25, %v7127_v25  ;;  %v8876_v34 = vld [vmem:[#allocation57_spill] sm:$0xff]  ;;  %v8884_v33 = vld [vmem:[#allocation54_spill] sm:$0xff] }
 0x3d7   : > { %v8860_v7 = vpack.c.bf16 %v7129_v16, %v7129_v16  ;;  %v3625_v10 = vpack.c.bf16 %v8861_v35, %v8861_v35  ;;  %v3641_v63 = vpack.c.bf16 %v8862_v14, %v8862_v14  ;;  %v4013_v27 = vunpack.c.l.b16 %v3627_v45  ;;  %3755 = vmatpush.bf16.msra.mxu0 %v3736_v50 }
 0x3d8   : > { %v3720_v49 = vunpack.c.l.b16 %v8859_v42  ;;  %v4158_v17 = vunpack.c.l.b16 %v3643_v9  ;;  %3900 = vmatpush.bf16.msra.mxu1 %v3881_v32  ;;  %v4027_v61 = vpack.c.b16 %v4015_v11, %v4014_v5  ;;  %v4172_v40 = vpack.c.b16 %v4160_v19, %v4159_v47  ;;  %v8881_v19 = vld [vmem:[#allocation88_spill] sm:$0xff]  ;;  %v8886_v47 = vld [vmem:[#allocation59_spill] sm:$0xff] }
 0x3d9   : > { %v3865_v20 = vunpack.c.l.b16 %v8860_v7  ;;  %v8863_v25 = vpack.c.bf16 %v7099_v36, %v7099_v36  ;;  %v8864_v16 = vpack.c.bf16 %v7101_v48, %v7101_v48  ;;  %v3624_v43 = vpack.c.bf16 %v8865_v24, %v8865_v24  ;;  %v8887_v32 = vld [vmem:[#allocation60_spill] sm:$0xff] }
 0x3da   : > { %v3640_v57 = vpack.c.bf16 %v8866_v41, %v8866_v41  ;;  %v8867_v15 = vpack.c.b16 %v7441_v39, %v7459_v62  ;;  %v8869_v29 = vpack.c.b16 %v7443_v31, %v8868_v8  ;;  %v4012_v36 = vunpack.c.l.b16 %v3626_v18  ;;  %4044 = vmatpush.bf16.msra.mxu2 %v4027_v61  ;;  %4189 = vmatpush.bf16.msra.mxu3 %v4172_v40  ;;  %v8875_v31 = vld [vmem:[#allocation90_spill] sm:$0xff]  ;;  %v8890_v8 = vld [vmem:[#allocation63_spill] sm:$0xff] }
 0x3db   : > { %v3719_v30 = vunpack.c.l.b16 %v8863_v25  ;;  %v3864_v23 = vunpack.c.l.b16 %v8864_v16  ;;  %v4157_v37 = vunpack.c.l.b16 %v3642_v56  ;;  %v3735_v48 = vpack.c.b16 %v3721_v1, %v3720_v49 }
 0x3dc   : > { %5400 = vmatmul.msk.bf16.gmra.mxu2 %vm2321_vm1, %v8867_v15  ;;  %5408 = vmatmul.msk.bf16.gmra.mxu3 %vm2321_vm1, %v8869_v29  ;;  %v3880_v52 = vpack.c.b16 %v3866_v26, %v3865_v20  ;;  %v8871_v38 = vpack.c.bf16 %v8870_v21, %v8870_v21  ;;  %v8873_v39 = vpack.c.bf16 %v8872_v58, %v8872_v58  ;;  %v4011_v22 = vunpack.c.l.b16 %v3625_v10  ;;  %v8882_v26 = vld [vmem:[#allocation53_spill] sm:$0xff]  ;;  %v8888_v10 = vld [vmem:[#allocation55_spill] sm:$0xff]  ;;  %v8899_v58 = vld [vmem:[#allocation68_spill] sm:$0xff] }
 0x3dd   : > { %v3623_v6 = vpack.c.bf16 %v8874_v0, %v8874_v0  ;;  %v3639_v55 = vpack.c.bf16 %v8875_v31, %v8875_v31  ;;  %v4156_v28 = vunpack.c.l.b16 %v3641_v63  ;;  %3756 = vmatpush.bf16.msra.mxu0 %v3735_v48  ;;  %v4026_v60 = vpack.c.b16 %v4013_v27, %v4012_v36  ;;  %v8889_v63 = vld [vmem:[#allocation56_spill] sm:$0xff]  ;;  %v8891_v29 = vld [vmem:[#allocation61_spill] sm:$0xff]  ;;  %v8894_v48 = vld [vmem:[#allocation62_spill] sm:$0xff] }
 0x3de   : > { %v3718_v4 = vunpack.c.l.b16 %v8871_v38  ;;  %v3863_v62 = vunpack.c.l.b16 %v8873_v39  ;;  %3901 = vmatpush.bf16.msra.mxu1 %v3880_v52  ;;  %v4171_v3 = vpack.c.b16 %v4158_v17, %v4157_v37  ;;  %v8877_v46 = vpack.c.bf16 %v8876_v34, %v8876_v34  ;;  %v8893_v37 = vld [vmem:[#allocation64_spill] sm:$0xff]  ;;  %v8896_v21 = vld [vmem:[#allocation67_spill] sm:$0xff]  ;;  %v8897_v38 = vld [vmem:[#allocation65_spill] sm:$0xff] }
 0x3df   : > { %v8879_v9 = vpack.c.bf16 %v8878_v59, %v8878_v59  ;;  %v3622_v11 = vpack.c.bf16 %v8880_v51, %v8880_v51  ;;  %v3638_v44 = vpack.c.bf16 %v8881_v19, %v8881_v19  ;;  %v4010_v2 = vunpack.c.l.b16 %v3624_v43  ;;  %4045 = vmatpush.bf16.msra.mxu2 %v4026_v60  ;;  %v8900_v39 = vld [vmem:[#allocation66_spill] sm:$0xff] }
 0x3e0   : > { %v2270_v45 = vunpack.c.l.b16 %v8877_v46  ;;  %v4155_v53 = vunpack.c.l.b16 %v3640_v57  ;;  %4190 = vmatpush.bf16.msra.mxu3 %v4171_v3  ;;  %v3734_v1 = vpack.c.b16 %v3719_v30, %v3718_v4  ;;  %v3879_v54 = vpack.c.b16 %v3864_v23, %v3863_v62 }
 0x3e1   : > { %v2448_v12 = vunpack.c.l.b16 %v8879_v9  ;;  %v8883_v13 = vpack.c.bf16 %v8882_v26, %v8882_v26  ;;  %v8885_v56 = vpack.c.bf16 %v8884_v33, %v8884_v33  ;;  %v2158_v50 = vpack.c.bf16 %v8886_v47, %v8886_v47 }
 0x3e2   : > { %v2174_v42 = vpack.c.bf16 %v8887_v32, %v8887_v32  ;;  %v4009_v49 = vunpack.c.l.b16 %v3623_v6  ;;  %v4154_v7 = vunpack.c.l.b16 %v3639_v55  ;;  %3757 = vmatpush.bf16.msra.mxu0 %v3734_v1  ;;  %3902 = vmatpush.bf16.msra.mxu1 %v3879_v54  ;;  %v4025_v20 = vpack.c.b16 %v4011_v22, %v4010_v2 }
 0x3e3   : > { %v2269_v18 = vunpack.c.l.b16 %v8883_v13  ;;  %v2447_v5 = vunpack.c.l.b16 %v8885_v56  ;;  %v4170_v35 = vpack.c.b16 %v4156_v28, %v4155_v53  ;;  %v2157_v14 = vpack.c.bf16 %v8888_v10, %v8888_v10 }
 0x3e4   : > { %v2173_v27 = vpack.c.bf16 %v8889_v63, %v8889_v63  ;;  %v4008_v40 = vunpack.c.l.b16 %v3622_v11  ;;  %v4153_v25 = vunpack.c.l.b16 %v3638_v44  ;;  %4046 = vmatpush.bf16.msra.mxu2 %v4025_v20  ;;  %v2625_v30 = vunpack.c.l.b16 %v2158_v50 }
 0x3e5   : > { %v2279_v17 = vpack.c.b16 %v2270_v45, %v2269_v18  ;;  %v2457_v61 = vpack.c.b16 %v2448_v12, %v2447_v5  ;;  %4191 = vmatpush.bf16.msra.mxu3 %v4170_v35  ;;  %v2802_v16 = vunpack.c.l.b16 %v2174_v42  ;;  %v2624_v43 = vunpack.c.l.b16 %v2157_v14 }
 0x3e6   : > { %v4024_v23 = vpack.c.b16 %v4009_v49, %v4008_v40  ;;  %v4169_v24 = vpack.c.b16 %v4154_v7, %v4153_v25  ;;  %v2801_v41 = vunpack.c.l.b16 %v2173_v27  ;;  %v8892_v36 = vpack.c.b16 %v8890_v8, %v8891_v29 }
 0x3e7   : > { %5385 = vmatmul.msk.bf16.gmra.mxu0 %vm2321_vm1, %v2279_v17  ;;  %5393 = vmatmul.msk.bf16.gmra.mxu1 %vm2321_vm1, %v2457_v61  ;;  %v2634_v57 = vpack.c.b16 %v2625_v30, %v2624_v43  ;;  %v8895_v52 = vpack.c.b16 %v8893_v37, %v8894_v48  ;;  %v8898_v4 = vpack.c.b16 %v8896_v21, %v8897_v38 }
 0x3e8   : > { %4047 = vmatpush.bf16.msra.mxu2 %v4024_v23  ;;  %v2811_v15 = vpack.c.b16 %v2802_v16, %v2801_v41  ;;  %v8901_v62 = vpack.c.b16 %v8899_v58, %v8900_v39 }
 0x3e9   : > { %4192 = vmatpush.bf16.msra.mxu3 %v4169_v24 }
 0x3ec   : > { %5401 = vmatmul.msk.bf16.gmra.mxu2 %vm2321_vm1, %v2634_v57  ;;  %5409 = vmatmul.msk.bf16.gmra.mxu3 %vm2321_vm1, %v2811_v15 }
 0x3f7   : > { %5386 = vmatmul.msk.bf16.gmra.mxu0 %vm2321_vm1, %v8892_v36  ;;  %5394 = vmatmul.msk.bf16.gmra.mxu1 %vm2321_vm1, %v8895_v52 }
 0x3fc   : > { %5402 = vmatmul.msk.bf16.gmra.mxu2 %vm2321_vm1, %v8898_v4  ;;  %5410 = vmatmul.msk.bf16.gmra.mxu3 %vm2321_vm1, %v8901_v62 }
 0x400   : > { %v7713_v0 = vpop.f32.mrf.mxu0  ;;  %v7715_v6 = vpop.f32.mrf.mxu1 }
 0x401   : > { %2982 = vmax.xlane.f32.xlu2 %v7715_v6  ;;  %2950 = vmax.xlane.f32.xlu0 %v7713_v0 }
 0x408   : > { %v7719_v31 = vpop.f32.mrf.mxu0  ;;  %v7721_v55 = vpop.f32.mrf.mxu1 }
 0x409   : > { %2984 = vmax.xlane.f32.xlu0 %v7721_v55  ;;  %2952 = vmax.xlane.f32.xlu1 %v7719_v31 }
 0x40c   : > { %v7725_v22 = vpop.f32.mrf.mxu2  ;;  %v7727_v28 = vpop.f32.mrf.mxu3 }
 0x40d   : > { %3014 = vmax.xlane.f32.xlu2 %v7725_v22 }
 0x410   : > { %v7730_v60 = vpop.f32.mrf.mxu0  ;;  %v7733_v3 = vpop.f32.mrf.mxu1 }
 0x411   : > { %3046 = vmax.xlane.f32.xlu1 %v7727_v28 }
 0x414   : > { %v7735_v34 = vpop.f32.mrf.mxu2  ;;  %v7739_v46 = vpop.f32.mrf.mxu3 }
 0x415   : > { %3016 = vmax.xlane.f32.xlu0 %v7735_v34  ;;  %2954 = vmax.xlane.f32.xlu2 %v7730_v60 }
 0x418   : > { %v7741_v45 = vpop.f32.mrf.mxu0  ;;  %v7748_v9 = vpop.f32.mrf.mxu1 }
 0x419   : > { %2986 = vmax.xlane.f32.xlu1 %v7733_v3 }
 0x41c   : > { %v7744_v59 = vpop.f32.mrf.mxu2  ;;  %v7750_v12 = vpop.f32.mrf.mxu3 }
 0x41d   : > { %3048 = vmax.xlane.f32.xlu2 %v7739_v46  ;;  %2956 = vmax.xlane.f32.xlu0 %v7741_v45 }
 0x420   : > { %v7753_v51 = vpop.f32.mrf.mxu0  ;;  %v7759_v19 = vpop.f32.mrf.mxu1 }
 0x421   : > { %3018 = vmax.xlane.f32.xlu1 %v7744_v59 }
 0x424   : > { %v7755_v11 = vpop.f32.mrf.mxu2  ;;  %v7762_v44 = vpop.f32.mrf.mxu3 }
 0x425   : > { %2988 = vmax.xlane.f32.xlu2 %v7748_v9  ;;  %3050 = vmax.xlane.f32.xlu0 %v7750_v12 }
 0x428   : > { %v7764_v2 = vpop.f32.mrf.mxu0  ;;  %v7771_v1 = vpop.f32.mrf.mxu1 }
 0x429   : > { %2958 = vmax.xlane.f32.xlu1 %v7753_v51 }
 0x42c   : > { %v7768_v53 = vpop.f32.mrf.mxu2  ;;  %v7773_v54 = vpop.f32.mrf.mxu3 }
 0x42d   : > { %3020 = vmax.xlane.f32.xlu2 %v7755_v11  ;;  %2990 = vmax.xlane.f32.xlu0 %v7759_v19 }
 0x430   : > { %v7777_v26 = vpop.f32.mrf.mxu0  ;;  %v7782_v18 = vpop.f32.mrf.mxu1 }
 0x431   : > { %3052 = vmax.xlane.f32.xlu1 %v7762_v44 }
 0x434   : > { %v7779_v13 = vpop.f32.mrf.mxu2  ;;  %v7786_v33 = vpop.f32.mrf.mxu3 }
 0x435   : > { %3022 = vmax.xlane.f32.xlu0 %v7768_v53  ;;  %2960 = vmax.xlane.f32.xlu2 %v7764_v2 }
 0x438   : > { %v7788_v56 = vpop.f32.mrf.mxu0  ;;  %v7800_v32 = vpop.f32.mrf.mxu1 }
 0x439   : > { %2992 = vmax.xlane.f32.xlu1 %v7771_v1 }
 0x43c   : > { %v7791_v5 = vpop.f32.mrf.mxu2  ;;  %v7795_v47 = vpop.f32.mrf.mxu3 }
 0x43d   : > { %2994 = vmax.xlane.f32.xlu0 %v7782_v18  ;;  %3054 = vmax.xlane.f32.xlu2 %v7773_v54 }
 0x440   : > { %v7798_v50 = vpop.f32.mrf.mxu0  ;;  %v7813_v20 = vpop.f32.mrf.mxu1 }
 0x441   : > { %2962 = vmax.xlane.f32.xlu1 %v7777_v26 }
 0x444   : > { %v7802_v42 = vpop.f32.mrf.mxu2  ;;  %v7807_v49 = vpop.f32.mrf.mxu3 }
 0x445   : > { %3056 = vmax.xlane.f32.xlu0 %v7786_v33  ;;  %2964 = vmax.xlane.f32.xlu2 %v7788_v56 }
 0x448   : > { %v7809_v7 = vpop.f32.mrf.mxu0  ;;  %v7822_v14 = vpop.f32.mrf.mxu1 }
 0x449   : > { %3024 = vmax.xlane.f32.xlu1 %v7779_v13 }
 0x44c   : > { %v7816_v35 = vpop.f32.mrf.mxu2  ;;  %v7818_v10 = vpop.f32.mrf.mxu3 }
 0x44d   : > { %3028 = vmax.xlane.f32.xlu0 %v7802_v42  ;;  %3026 = vmax.xlane.f32.xlu2 %v7791_v5  ;;  %8902 = vst [vmem:[#allocation72_spill] sm:$0xff] %v7818_v10 }
 0x451   : > { %2996 = vmax.xlane.f32.xlu1 %v7800_v32  ;;  %v7824_v63 = vpop.f32.mrf.mxu0  ;;  %v7834_v61 = vpop.f32.mrf.mxu1 }
 0x452   : > { %8903 = vst [vmem:[#allocation70_spill] sm:$0xff] %v7824_v63 }
 0x454   : > { %v7827_v27 = vpop.f32.mrf.mxu2  ;;  %v7831_v17 = vpop.f32.mrf.mxu3 }
 0x455   : > { %2966 = vmax.xlane.f32.xlu2 %v7798_v50  ;;  %2968 = vmax.xlane.f32.xlu0 %v7809_v7  ;;  %8904 = vst [vmem:[#allocation5_spill] sm:$0xff] %v7827_v27 }
 0x456   : > { %8905 = vst [vmem:[#allocation6_spill] sm:$0xff] %v7831_v17 }
 0x459   : > { %3058 = vmax.xlane.f32.xlu1 %v7795_v47  ;;  %v7836_v40 = vpop.f32.mrf.mxu0  ;;  %v7845_v16 = vpop.f32.mrf.mxu1 }
 0x45a   : > { %8906 = vst [vmem:[#allocation11_spill] sm:$0xff] %v7836_v40 }
 0x45b   : > { %8909 = vst [vmem:[#allocation8_spill] sm:$0xff] %v7845_v16 }
 0x45d   : > { %3060 = vmax.xlane.f32.xlu2 %v7807_v49  ;;  %3030 = vmax.xlane.f32.xlu0 %v7816_v35 }
 0x45f   : > { %v7840_v25 = vpop.f32.mrf.mxu2  ;;  %v7842_v30 = vpop.f32.mrf.mxu3 }
 0x460   : > { %8907 = vst [vmem:[#allocation12_spill] sm:$0xff] %v7840_v25 }
 0x461   : > { %2998 = vmax.xlane.f32.xlu1 %v7813_v20  ;;  %8908 = vst [vmem:[#allocation7_spill] sm:$0xff] %v7842_v30 }
 0x464   : > { %v7847_v23 = vpop.f32.mrf.mxu0  ;;  %v7867_v48 = vpop.f32.mrf.mxu1 }
 0x465   : > { %3000 = vmax.xlane.f32.xlu2 %v7822_v14  ;;  %2970 = vmax.xlane.f32.xlu0 %v7824_v63  ;;  %8910 = vst [vmem:[#allocation75_spill] sm:$0xff] %v7847_v23 }
 0x466   : > { %8915 = vst [vmem:[#allocation18_spill] sm:$0xff] %v7867_v48 }
 0x467   : > { %v7853_v43 = vpop.f32.mrf.mxu2  ;;  %v7856_v57 = vpop.f32.mrf.mxu3 }
 0x468   : > { %8911 = vst [vmem:[#allocation73_spill] sm:$0xff] %v7853_v43 }
 0x469   : > { %3032 = vmax.xlane.f32.xlu1 %v7827_v27  ;;  %8912 = vst [vmem:[#allocation76_spill] sm:$0xff] %v7856_v57 }
 0x46c   : > { %v7860_v8 = vpop.f32.mrf.mxu0 }
 0x46d   : > { %3062 = vmax.xlane.f32.xlu2 %v7818_v10  ;;  %3064 = vmax.xlane.f32.xlu0 %v7831_v17  ;;  %8913 = vst [vmem:[#allocation74_spill] sm:$0xff] %v7860_v8 }
 0x46f   : > { %v7865_v37 = vpop.f32.mrf.mxu2  ;;  %v7869_v52 = vpop.f32.mrf.mxu3 }
 0x470   : > { %8914 = vst [vmem:[#allocation17_spill] sm:$0xff] %v7865_v37 }
 0x471   : > { %2972 = vmax.xlane.f32.xlu1 %v7836_v40  ;;  %8916 = vst [vmem:[#allocation13_spill] sm:$0xff] %v7869_v52 }
 0x474   : > { %v7851_v24 = vpop.xlane.xlu0 %2950  ;;  %v2983_v41 = vpop.xlane.xlu2 %2982 }
 0x475   : > { %3002 = vmax.xlane.f32.xlu2 %v7834_v61  ;;  %3004 = vmax.xlane.f32.xlu0 %v7845_v16  ;;  %v7878_v58 = vpop.f32.mrf.mxu0 }
 0x476   : > { %8917 = vst [vmem:[#allocation14_spill] sm:$0xff] %v7878_v58 }
 0x477   : > { %v7880_v39 = vpop.f32.mrf.mxu2 }
 0x478   : > { %8918 = vst [vmem:[#allocation19_spill] sm:$0xff] %v7880_v39 }
 0x479   : > { %3034 = vmax.xlane.f32.xlu1 %v7840_v25  ;;  %v3094_v25 = vsub.f32 %v7715_v6, %v2983_v41 }
 0x47c   : > { %v2953_v15 = vpop.xlane.xlu1 %2952  ;;  %v7862_v29 = vpop.xlane.xlu0 %2984 }
 0x47d   : > { %3036 = vmax.xlane.f32.xlu2 %v7853_v43  ;;  %3066 = vmax.xlane.f32.xlu0 %v7842_v30 }
 0x480   : > { %v3015_v36 = vpop.xlane.xlu2 %3014 }
 0x481   : > { %2974 = vmax.xlane.f32.xlu1 %v7847_v23  ;;  %v7886_v23 = vpop.f32.mrf.mxu1 }
 0x482   : > { %8919 = vst [vmem:[#allocation20_spill] sm:$0xff] %v7886_v23 }
 0x484   : > { %v7871_v21 = vpop.xlane.xlu1 %3046 }
 0x485   : > { %3006 = vmax.xlane.f32.xlu0 %v7867_v48  ;;  %2976 = vmax.xlane.f32.xlu2 %v7860_v8  ;;  %v7888_v48 = vpop.f32.mrf.mxu3 }
 0x486   : > { %8920 = vst [vmem:[#allocation15_spill] sm:$0xff] %v7888_v48 }
 0x488   : > { %v3017_v38 = vpop.xlane.xlu0 %3016  ;;  %v7875_v4 = vpop.xlane.xlu2 %2954 }
 0x489   : > { %3068 = vmax.xlane.f32.xlu1 %v7856_v57  ;;  %v7895_v57 = vpop.f32.mrf.mxu0  ;;  %v7906_v43 = vpop.f32.mrf.mxu1 }
 0x48a   : > { %8921 = vst [vmem:[#allocation16_spill] sm:$0xff] %v7895_v57 }
 0x48b   : > { %8922 = vst [vmem:[#allocation25_spill] sm:$0xff] %v7906_v43 }
 0x48c   : > { %v7882_v62 = vpop.xlane.xlu1 %2986 }
 0x48d   : > { %3040 = vmax.xlane.f32.xlu0 %v7880_v39  ;;  %3038 = vmax.xlane.f32.xlu2 %v7865_v37  ;;  %v7909_v40 = vpop.f32.mrf.mxu3 }
 0x490   : > { %v7890_v8 = vpop.xlane.xlu2 %3048  ;;  %v7892_v16 = vpop.xlane.xlu0 %2956 }
 0x491   : > { %3008 = vmax.xlane.f32.xlu1 %v7886_v23  ;;  %v7911_v23 = vpop.f32.mrf.mxu2  ;;  %v7923_v41 = vpop.f32.mrf.mxu1 }
 0x492   : > { %8923 = vst [vmem:[#allocation26_spill] sm:$0xff] %v7923_v41 }
 0x494   : > { %v7897_v30 = vpop.xlane.xlu1 %3018 }
 0x495   : > { %2978 = vmax.xlane.f32.xlu2 %v7878_v58  ;;  %2980 = vmax.xlane.f32.xlu0 %v7895_v57  ;;  %v3174_v57 = vmul.f32 1.442695, %v3094_v25  ;;  %v3079_v58 = vsub.f32 %v7719_v31, %v2953_v15  ;;  %v7925_v10 = vpop.f32.mrf.mxu3  ;;  %v3110_v31 = vsub.f32 %v7725_v22, %v3015_v36  ;;  %v3080_v36 = vsub.f32 %v7730_v60, %v7875_v4 }
 0x496   : > { %v3126_v60 = vsub.f32 %v7727_v28, %v7871_v21  ;;  %v3112_v21 = vsub.f32 %v7744_v59, %v7897_v30 }
 0x497   : > { %5704 = vpow2.f32 %v3174_v57  ;;  %v3144_v6 = vmul.f32 1.442695, %v3079_v58 }
 0x498   : > { %v7901_v39 = vpop.xlane.xlu2 %2988  ;;  %v7903_v37 = vpop.xlane.xlu0 %3050 }
 0x499   : > { %3070 = vmax.xlane.f32.xlu1 %v7869_v52  ;;  %5706 = vpow2.f32 %v3144_v6  ;;  %v3095_v6 = vsub.f32 %v7721_v55, %v7862_v29  ;;  %v3146_v55 = vmul.f32 1.442695, %v3080_v36  ;;  %v3081_v29 = vsub.f32 %v7741_v45, %v7892_v16 }
 0x49a   : > { %v3238_v36 = vmul.f32 1.442695, %v3126_v60  ;;  %v3097_v60 = vsub.f32 %v7748_v9, %v7901_v39  ;;  %v3128_v9 = vsub.f32 %v7750_v12, %v7903_v37 }
 0x49c   : > { %v7913_v63 = vpop.xlane.xlu1 %2958 }
 0x49d   : > { %3072 = vmax.xlane.f32.xlu2 %v7888_v48  ;;  %3042 = vmax.xlane.f32.xlu0 %v7911_v23  ;;  %v3078_v48 = vsub.f32 %v7713_v0, %v7851_v24  ;;  %v7934_v25 = vpop.eup %5704  ;;  %v3111_v0 = vsub.f32 %v7735_v34, %v3017_v38 }
 0x49f   : > { %v3142_v58 = vmul.f32 1.442695, %v3078_v48  ;;  %v7942_v24 = vpop.eup %5706  ;;  %v3208_v22 = vmul.f32 1.442695, %v3111_v0  ;;  %v7952_v48 = vpop.f32.mrf.mxu2  ;;  %v3127_v0 = vsub.f32 %v7739_v46, %v7890_v8  ;;  %v3096_v46 = vsub.f32 %v7733_v3, %v7882_v62 }
 0x4a0   : > { %v7918_v17 = vpop.xlane.xlu2 %3020  ;;  %v7920_v52 = vpop.xlane.xlu0 %2990  ;;  %v3180_v3 = vmul.f32 1.442695, %v3097_v60  ;;  %v3082_v62 = vsub.f32 %v7753_v51, %v7913_v63  ;;  %v3242_v60 = vmul.f32 1.442695, %v3128_v9 }
 0x4a1   : > { %3010 = vmax.xlane.f32.xlu1 %v7906_v43  ;;  %v3206_v43 = vmul.f32 1.442695, %v3110_v31  ;;  %5708 = vpow2.f32 %v3142_v58  ;;  %v3176_v31 = vmul.f32 1.442695, %v3095_v6  ;;  %v3148_v6 = vmul.f32 1.442695, %v3081_v29 }
 0x4a2   : > { %v3240_v28 = vmul.f32 1.442695, %v3127_v0  ;;  %v3210_v29 = vmul.f32 1.442695, %v3112_v21  ;;  %v3150_v21 = vmul.f32 1.442695, %v3082_v62 }
 0x4a3   : > { %5710 = vpow2.f32 %v3206_v43 }
 0x4a4   : > { %v7929_v27 = vpop.xlane.xlu1 %3052  ;;  %5712 = vpow2.f32 %v3208_v22 }
 0x4a5   : > { %3012 = vmax.xlane.f32.xlu2 %v7923_v41  ;;  %3076 = vmax.xlane.f32.xlu0 %v7925_v10  ;;  %5714 = vpow2.f32 %v3176_v31  ;;  %v3129_v37 = vsub.f32 %v7762_v44, %v7929_v27 }
 0x4a6   : > { %5716 = vpow2.f32 %v3146_v55 }
 0x4a7   : > { %v7961_v58 = vpop.eup %5708  ;;  %5718 = vpow2.f32 %v3148_v6  ;;  %v3178_v6 = vmul.f32 1.442695, %v3096_v46  ;;  %v3113_v46 = vsub.f32 %v7755_v11, %v7918_v17  ;;  %v3098_v11 = vsub.f32 %v7759_v19, %v7920_v52 }
 0x4a8   : > { %v7936_v57 = vpop.xlane.xlu0 %3022  ;;  %v7938_v15 = vpop.xlane.xlu2 %2960  ;;  %5720 = vpow2.f32 %v3238_v36  ;;  %v3244_v62 = vmul.f32 1.442695, %v3129_v37 }
 0x4a9   : > { %3302 = vadd.xlane.f32.xlu1 %v7934_v25  ;;  %v7963_v43 = vpop.eup %5710  ;;  %5722 = vpow2.f32 %v3240_v28  ;;  %v3212_v12 = vmul.f32 1.442695, %v3113_v46  ;;  %v3083_v9 = vsub.f32 %v7764_v2, %v7938_v15  ;;  %v3182_v46 = vmul.f32 1.442695, %v3098_v11 }
 0x4aa   : > { %v7973_v45 = vpop.eup %5712  ;;  %5724 = vpow2.f32 %v3210_v29  ;;  %v3114_v2 = vsub.f32 %v7768_v53, %v7936_v57 }
 0x4ab   : > { %v7982_v31 = vpop.eup %5714  ;;  %5726 = vpow2.f32 %v3178_v6  ;;  %v3152_v19 = vmul.f32 1.442695, %v3083_v9 }
 0x4ac   : > { %v7946_v41 = vpop.xlane.xlu1 %2992  ;;  %v7984_v55 = vpop.eup %5716  ;;  %5728 = vpow2.f32 %v3180_v3  ;;  %v3214_v9 = vmul.f32 1.442695, %v3114_v2 }
 0x4ad   : > { %3074 = vmax.xlane.f32.xlu2 %v7909_v40  ;;  %3272 = vadd.xlane.f32.xlu0 %v7942_v24  ;;  %v7994_v59 = vpop.eup %5718  ;;  %5730 = vpow2.f32 %v3150_v21  ;;  %v3099_v52 = vsub.f32 %v7771_v1, %v7946_v41 }
 0x4ae   : > { %v8003_v36 = vpop.eup %5720  ;;  %5732 = vpow2.f32 %v3242_v60 }
 0x4af   : > { %v8005_v28 = vpop.eup %5722  ;;  %5734 = vpow2.f32 %v3212_v12  ;;  %v3184_v37 = vmul.f32 1.442695, %v3099_v52 }
 0x4b0   : > { %v7954_v34 = vpop.xlane.xlu0 %2994  ;;  %v7956_v38 = vpop.xlane.xlu2 %3054  ;;  %5736 = vpow2.f32 %v3244_v62 }
 0x4b1   : > { %3044 = vmax.xlane.f32.xlu1 %v7952_v48  ;;  %v8015_v51 = vpop.eup %5724  ;;  %5738 = vpow2.f32 %v3182_v46  ;;  %v3130_v53 = vsub.f32 %v7773_v54, %v7956_v38 }
 0x4b2   : > { %v8024_v6 = vpop.eup %5726  ;;  %5740 = vpow2.f32 %v3152_v19 }
 0x4b3   : > { %v8026_v3 = vpop.eup %5728  ;;  %5742 = vpow2.f32 %v3184_v37  ;;  %v3246_v52 = vmul.f32 1.442695, %v3130_v53 }
 0x4b4   : > { %v7967_v4 = vpop.xlane.xlu1 %2962  ;;  %v8036_v44 = vpop.eup %5730  ;;  %5744 = vpow2.f32 %v3214_v9 }
 0x4b5   : > { %3270 = vadd.xlane.f32.xlu2 %v7961_v58  ;;  %3334 = vadd.xlane.f32.xlu0 %v7963_v43  ;;  %v8045_v60 = vpop.eup %5732 }
 0x4b6   : > { %v8047_v12 = vpop.eup %5734 }
 0x4b7   : > { %v8057_v1 = vpop.eup %5736 }
 0x4b8   : > { %v7975_v16 = vpop.xlane.xlu0 %3056  ;;  %v7977_v22 = vpop.xlane.xlu2 %2964 }
 0x4b9   : > { %3336 = vadd.xlane.f32.xlu1 %v7973_v45  ;;  %v8066_v46 = vpop.eup %5738  ;;  %v3085_v2 = vsub.f32 %v7788_v56, %v7977_v22  ;;  %v3131_v56 = vsub.f32 %v7786_v33, %v7975_v16 }
 0x4ba   : > { %v8068_v19 = vpop.eup %5740 }
 0x4bb   : > { %v8078_v54 = vpop.eup %5742 }
 0x4bc   : > { %v7988_v8 = vpop.xlane.xlu1 %3024  ;;  %v8087_v9 = vpop.eup %5744 }
 0x4bd   : > { %3304 = vadd.xlane.f32.xlu2 %v7982_v31  ;;  %3274 = vadd.xlane.f32.xlu0 %v7984_v55  ;;  %v3115_v11 = vsub.f32 %v7779_v13, %v7988_v8  ;;  %v3084_v13 = vsub.f32 %v7777_v26, %v7967_v4  ;;  %v3100_v26 = vsub.f32 %v7782_v18, %v7954_v34  ;;  %v3156_v4 = vmul.f32 1.442695, %v3085_v2 }
 0x4be   : > { %v3248_v2 = vmul.f32 1.442695, %v3131_v56 }
 0x4bf   : > { %v3216_v57 = vmul.f32 1.442695, %v3115_v11  ;;  %v3154_v11 = vmul.f32 1.442695, %v3084_v13 }
 0x4c0   : > { %v7996_v30 = vpop.xlane.xlu0 %3028  ;;  %v7998_v0 = vpop.xlane.xlu2 %3026 }
 0x4c1   : > { %3276 = vadd.xlane.f32.xlu1 %v7994_v59  ;;  %5746 = vpow2.f32 %v3216_v57  ;;  %v3186_v57 = vmul.f32 1.442695, %v3100_v26  ;;  %v3116_v18 = vsub.f32 %v7791_v5, %v7998_v0  ;;  %v3117_v33 = vsub.f32 %v7802_v42, %v7996_v30 }
 0x4c2   : > { %5748 = vpow2.f32 %v3246_v52 }
 0x4c3   : > { %5750 = vpow2.f32 %v3154_v11  ;;  %v3218_v16 = vmul.f32 1.442695, %v3116_v18 }
 0x4c4   : > { %v8009_v39 = vpop.xlane.xlu1 %2996  ;;  %5752 = vpow2.f32 %v3156_v4  ;;  %v3220_v4 = vmul.f32 1.442695, %v3117_v33 }
 0x4c5   : > { %3366 = vadd.xlane.f32.xlu2 %v8003_v36  ;;  %3368 = vadd.xlane.f32.xlu0 %v8005_v28  ;;  %5754 = vpow2.f32 %v3186_v57  ;;  %v3101_v5 = vsub.f32 %v7800_v32, %v8009_v39 }
 0x4c6   : > { %5756 = vpow2.f32 %v3248_v2 }
 0x4c7   : > { %v8089_v53 = vpop.eup %5746  ;;  %5758 = vpow2.f32 %v3218_v16  ;;  %v3188_v18 = vmul.f32 1.442695, %v3101_v5 }
 0x4c8   : > { %v8017_v63 = vpop.xlane.xlu2 %2966  ;;  %v8019_v29 = vpop.xlane.xlu0 %2968  ;;  %5760 = vpow2.f32 %v3220_v4 }
 0x4c9   : > { %3338 = vadd.xlane.f32.xlu1 %v8015_v51  ;;  %v8099_v34 = vpop.eup %5748  ;;  %v3086_v42 = vsub.f32 %v7798_v50, %v8017_v63  ;;  %v3087_v39 = vsub.f32 %v7809_v7, %v8019_v29  ;;  %5762 = vpow2.f32 %v3188_v18 }
 0x4ca   : > { %v8108_v11 = vpop.eup %5750 }
 0x4cb   : > { %v8110_v26 = vpop.eup %5752  ;;  %v3158_v32 = vmul.f32 1.442695, %v3086_v42  ;;  %v3160_v16 = vmul.f32 1.442695, %v3087_v39 }
 0x4cc   : > { %v8030_v17 = vpop.xlane.xlu1 %3058  ;;  %v8120_v30 = vpop.eup %5754 }
 0x4cd   : > { %3306 = vadd.xlane.f32.xlu2 %v8024_v6  ;;  %3308 = vadd.xlane.f32.xlu0 %v8026_v3  ;;  %v8129_v2 = vpop.eup %5756  ;;  %v3132_v50 = vsub.f32 %v7795_v47, %v8030_v17  ;;  %5764 = vpow2.f32 %v3158_v32 }
 0x4ce   : > { %v8131_v33 = vpop.eup %5758  ;;  %5766 = vpow2.f32 %v3160_v16 }
 0x4cf   : > { %v8141_v7 = vpop.eup %5760  ;;  %v3250_v42 = vmul.f32 1.442695, %v3132_v50 }
 0x4d0   : > { %v8038_v27 = vpop.xlane.xlu2 %3060  ;;  %v8040_v21 = vpop.xlane.xlu0 %3030 }
 0x4d1   : > { %3278 = vadd.xlane.f32.xlu1 %v8036_v44  ;;  %v3133_v5 = vsub.f32 %v7807_v49, %v8038_v27  ;;  %v3118_v17 = vsub.f32 %v7816_v35, %v8040_v21  ;;  %v8150_v18 = vpop.eup %5762  ;;  %5768 = vpow2.f32 %v3250_v42 }
 0x4d2   : > { %8924 = vst [vmem:[#allocation21_spill] sm:$0xff] %v8150_v18 }
 0x4d3   : > { %v3252_v47 = vmul.f32 1.442695, %v3133_v5  ;;  %v8152_v32 = vpop.eup %5764  ;;  %v3222_v39 = vmul.f32 1.442695, %v3118_v17 }
 0x4d4   : > { %v8051_v15 = vpop.xlane.xlu1 %2998  ;;  %8925 = vst [vmem:[#allocation22_spill] sm:$0xff] %v8152_v32  ;;  %v8162_v35 = vpop.eup %5766 }
 0x4d5   : > { %3340 = vadd.xlane.f32.xlu2 %v8047_v12  ;;  %3370 = vadd.xlane.f32.xlu0 %v8045_v60  ;;  %v3102_v49 = vsub.f32 %v7813_v20, %v8051_v15  ;;  %5770 = vpow2.f32 %v3252_v47  ;;  %8926 = vst [vmem:[#allocation27_spill] sm:$0xff] %v8162_v35 }
 0x4d6   : > { %5772 = vpow2.f32 %v3222_v39 }
 0x4d7   : > { %v3190_v5 = vmul.f32 1.442695, %v3102_v49  ;;  %v8171_v42 = vpop.eup %5768  ;;  %v8930_v49 = vld [vmem:[#allocation72_spill] sm:$0xff] }
 0x4d8   : > { %v8059_v41 = vpop.xlane.xlu2 %3000  ;;  %v8061_v62 = vpop.xlane.xlu0 %2970  ;;  %8927 = vst [vmem:[#allocation28_spill] sm:$0xff] %v8171_v42 }
 0x4d9   : > { %3372 = vadd.xlane.f32.xlu1 %v8057_v1  ;;  %v3103_v50 = vsub.f32 %v7822_v14, %v8059_v41  ;;  %5774 = vpow2.f32 %v3190_v5  ;;  %v8929_v14 = vld [vmem:[#allocation5_spill] sm:$0xff] }
 0x4db   : > { %v3192_v20 = vmul.f32 1.442695, %v3103_v50  ;;  %v8173_v47 = vpop.eup %5770 }
 0x4dc   : > { %v8072_v8 = vpop.xlane.xlu1 %3032  ;;  %8928 = vst [vmem:[#allocation23_spill] sm:$0xff] %v8173_v47 }
 0x4dd   : > { %3280 = vadd.xlane.f32.xlu2 %v8068_v19  ;;  %3310 = vadd.xlane.f32.xlu0 %v8066_v46  ;;  %v3119_v41 = vsub.f32 %v8929_v14, %v8072_v8  ;;  %5776 = vpow2.f32 %v3192_v20  ;;  %v8932_v14 = vld [vmem:[#allocation6_spill] sm:$0xff] }
 0x4df   : > { %v3224_v5 = vmul.f32 1.442695, %v3119_v41 }
 0x4e0   : > { %v8080_v38 = vpop.xlane.xlu2 %3062  ;;  %v8082_v37 = vpop.xlane.xlu0 %3064 }
 0x4e1   : > { %3312 = vadd.xlane.f32.xlu1 %v8078_v54  ;;  %v3134_v39 = vsub.f32 %v8930_v49, %v8080_v38  ;;  %v8935_v38 = vld [vmem:[#allocation70_spill] sm:$0xff] }
 0x4e3   : > { %v3254_v8 = vmul.f32 1.442695, %v3134_v39  ;;  %v8936_v39 = vld [vmem:[#allocation11_spill] sm:$0xff] }
 0x4e4   : > { %v8093_v22 = vpop.xlane.xlu1 %2972 }
 0x4e5   : > { %3342 = vadd.xlane.f32.xlu2 %v8087_v9  ;;  %3344 = vadd.xlane.f32.xlu0 %v8089_v53 }
 0x4e8   : > { %v8101_v13 = vpop.xlane.xlu2 %3002  ;;  %v8103_v52 = vpop.xlane.xlu0 %3004 }
 0x4e9   : > { %3374 = vadd.xlane.f32.xlu1 %v8099_v34  ;;  %v3104_v15 = vsub.f32 %v7834_v61, %v8101_v13  ;;  %v8183_v61 = vpop.eup %5772 }
 0x4ea   : > { %8931 = vst [vmem:[#allocation24_spill] sm:$0xff] %v8183_v61 }
 0x4eb   : > { %v3194_v50 = vmul.f32 1.442695, %v3104_v15  ;;  %v3088_v15 = vsub.f32 %v8935_v38, %v8061_v62 }
 0x4ec   : > { %v8114_v0 = vpop.xlane.xlu1 %3034 }
 0x4ed   : > { %3282 = vadd.xlane.f32.xlu2 %v8108_v11  ;;  %3284 = vadd.xlane.f32.xlu0 %v8110_v26  ;;  %5778 = vpow2.f32 %v3194_v50 }
 0x4ee   : > { %5780 = vpow2.f32 %v3224_v5  ;;  %v8938_v5 = vld [vmem:[#allocation12_spill] sm:$0xff] }
 0x4ef   : > { %5782 = vpow2.f32 %v3254_v8  ;;  %v3120_v38 = vsub.f32 %v8938_v5, %v8114_v0 }
 0x4f0   : > { %v8122_v56 = vpop.xlane.xlu2 %3036  ;;  %v8124_v57 = vpop.xlane.xlu0 %3066 }
 0x4f1   : > { %3314 = vadd.xlane.f32.xlu1 %v8120_v30 }
 0x4f4   : > { %v8135_v63 = vpop.xlane.xlu1 %2974 }
 0x4f5   : > { %3376 = vadd.xlane.f32.xlu2 %v8129_v2  ;;  %3346 = vadd.xlane.f32.xlu0 %v8131_v33 }
 0x4f8   : > { %v8143_v29 = vpop.xlane.xlu0 %3006  ;;  %v8145_v4 = vpop.xlane.xlu2 %2976 }
 0x4f9   : > { %3348 = vadd.xlane.f32.xlu1 %v8141_v7 }
 0x4fc   : > { %v8156_v27 = vpop.xlane.xlu1 %3068 }
 0x4fd   : > { %3316 = vadd.xlane.f32.xlu2 %v8150_v18  ;;  %3286 = vadd.xlane.f32.xlu0 %v8152_v32  ;;  %v3162_v32 = vmul.f32 1.442695, %v3088_v15  ;;  %v3226_v15 = vmul.f32 1.442695, %v3120_v38 }
 0x500   : > { %v8164_v21 = vpop.xlane.xlu0 %3040  ;;  %v8166_v16 = vpop.xlane.xlu2 %3038 }
 0x501   : > { %3288 = vadd.xlane.f32.xlu1 %v8162_v35 }
 0x504   : > { %v8177_v17 = vpop.xlane.xlu1 %3008 }
 0x505   : > { %3378 = vadd.xlane.f32.xlu2 %v8171_v42  ;;  %3380 = vadd.xlane.f32.xlu0 %v8173_v47  ;;  %v3135_v42 = vsub.f32 %v8932_v14, %v8082_v37  ;;  %v8192_v47 = vpop.eup %5774  ;;  %v3089_v37 = vsub.f32 %v8936_v39, %v8093_v22  ;;  %v8941_v22 = vld [vmem:[#allocation73_spill] sm:$0xff] }
 0x506   : > { %8933 = vst [vmem:[#allocation33_spill] sm:$0xff] %v8192_v47  ;;  %v8194_v20 = vpop.eup %5776  ;;  %v3121_v8 = vsub.f32 %v8941_v22, %v8122_v56  ;;  %v8944_v22 = vld [vmem:[#allocation76_spill] sm:$0xff] }
 0x507   : > { %8934 = vst [vmem:[#allocation34_spill] sm:$0xff] %v8194_v20  ;;  %v3256_v41 = vmul.f32 1.442695, %v3135_v42  ;;  %v8204_v50 = vpop.eup %5778  ;;  %v3164_v62 = vmul.f32 1.442695, %v3089_v37 }
 0x508   : > { %v8185_v13 = vpop.xlane.xlu2 %2978  ;;  %v8187_v35 = vpop.xlane.xlu0 %2980  ;;  %8937 = vst [vmem:[#allocation35_spill] sm:$0xff] %v8204_v50 }
 0x509   : > { %3350 = vadd.xlane.f32.xlu1 %v8183_v61  ;;  %5784 = vpow2.f32 %v3256_v41  ;;  %v8942_v41 = vld [vmem:[#allocation7_spill] sm:$0xff] }
 0x50a   : > { %5786 = vpow2.f32 %v3162_v32  ;;  %v3136_v37 = vsub.f32 %v8942_v41, %v8124_v57  ;;  %v3228_v32 = vmul.f32 1.442695, %v3121_v8  ;;  %v8946_v57 = vld [vmem:[#allocation8_spill] sm:$0xff] }
 0x50b   : > { %5788 = vpow2.f32 %v3164_v62  ;;  %v3105_v38 = vsub.f32 %v8946_v57, %v8103_v52 }
 0x50c   : > { %v8198_v49 = vpop.xlane.xlu1 %3070  ;;  %5790 = vpow2.f32 %v3226_v15  ;;  %v3258_v56 = vmul.f32 1.442695, %v3136_v37  ;;  %v8947_v15 = vld [vmem:[#allocation17_spill] sm:$0xff] }
 0x50d   : > { %3318 = vadd.xlane.f32.xlu2 %v8192_v47  ;;  %3320 = vadd.xlane.f32.xlu0 %v8194_v20  ;;  %v8213_v20 = vpop.eup %5780  ;;  %5792 = vpow2.f32 %v3228_v32  ;;  %v3122_v37 = vsub.f32 %v8947_v15, %v8166_v16  ;;  %v3196_v52 = vmul.f32 1.442695, %v3105_v38  ;;  %v8950_v16 = vld [vmem:[#allocation18_spill] sm:$0xff] }
 0x50e   : > { %8939 = vst [vmem:[#allocation36_spill] sm:$0xff] %v8213_v20  ;;  %v8215_v42 = vpop.eup %5782  ;;  %5794 = vpow2.f32 %v3258_v56  ;;  %v3106_v56 = vsub.f32 %v8950_v16, %v8143_v29 }
 0x50f   : > { %8940 = vst [vmem:[#allocation29_spill] sm:$0xff] %v8215_v42  ;;  %v8225_v0 = vpop.eup %5784  ;;  %v3230_v32 = vmul.f32 1.442695, %v3122_v37 }
 0x510   : > { %v8206_v14 = vpop.xlane.xlu2 %3072  ;;  %v8208_v61 = vpop.xlane.xlu0 %3042  ;;  %8943 = vst [vmem:[#allocation30_spill] sm:$0xff] %v8225_v0 }
 0x511   : > { %3322 = vadd.xlane.f32.xlu1 %v8204_v50 }
 0x514   : > { %v8219_v39 = vpop.xlane.xlu1 %3010 }
 0x515   : > { %3352 = vadd.xlane.f32.xlu2 %v8213_v20  ;;  %3382 = vadd.xlane.f32.xlu0 %v8215_v42  ;;  %v3137_v20 = vsub.f32 %v8944_v22, %v8156_v27  ;;  %v8234_v42 = vpop.eup %5786  ;;  %v8949_v27 = vld [vmem:[#allocation19_spill] sm:$0xff] }
 0x516   : > { %v8236_v62 = vpop.eup %5788  ;;  %v3123_v22 = vsub.f32 %v8949_v27, %v8164_v21  ;;  %v8951_v21 = vld [vmem:[#allocation13_spill] sm:$0xff] }
 0x517   : > { %8945 = vst [vmem:[#allocation31_spill] sm:$0xff] %v8236_v62  ;;  %v3260_v8 = vmul.f32 1.442695, %v3137_v20  ;;  %v3138_v27 = vsub.f32 %v8951_v21, %v8198_v49  ;;  %v8953_v49 = vld [vmem:[#allocation75_spill] sm:$0xff] }
 0x518   : > { %v8227_v5 = vpop.xlane.xlu2 %3012  ;;  %v8229_v50 = vpop.xlane.xlu0 %3076  ;;  %v3232_v15 = vmul.f32 1.442695, %v3123_v22  ;;  %v3090_v22 = vsub.f32 %v8953_v49, %v8135_v63 }
 0x519   : > { %3384 = vadd.xlane.f32.xlu1 %v8225_v0  ;;  %v8244_v0 = vpop.eup %5790  ;;  %5796 = vpow2.f32 %v3260_v8  ;;  %v3262_v29 = vmul.f32 1.442695, %v3138_v27 }
 0x51a   : > { %8948 = vst [vmem:[#allocation32_spill] sm:$0xff] %v8244_v0  ;;  %v8251_v57 = vpop.eup %5792  ;;  %v3166_v63 = vmul.f32 1.442695, %v3090_v22 }
 0x51b   : > { %v8253_v20 = vpop.eup %5794 }
 0x51c   : > { %v3303_v41 = vpop.xlane.xlu1 %3302 }
 0x51d   : > { %3290 = vadd.xlane.f32.xlu2 %v8234_v42  ;;  %3292 = vadd.xlane.f32.xlu0 %v8236_v62 }
 0x51f   : > { %v8263_v38 = vpop.eup %5796 }
 0x520   : > { %v8248_v47 = vpop.xlane.xlu2 %3074  ;;  %v3273_v18 = vpop.xlane.xlu0 %3272  ;;  %8952 = vst [vmem:[#allocation41_spill] sm:$0xff] %v8263_v38 }
 0x521   : > { %3354 = vadd.xlane.f32.xlu1 %v8244_v0  ;;  %5798 = vrcp.f32 %v3273_v18  ;;  %v3198_v18 = vmul.f32 1.442695, %v3106_v56  ;;  %v8956_v56 = vld [vmem:[#allocation74_spill] sm:$0xff] }
 0x522   : > { %5800 = vpow2.f32 %v3196_v52 }
 0x523   : > { %5802 = vpow2.f32 %v3230_v32 }
 0x524   : > { %v8259_v62 = vpop.xlane.xlu1 %3044  ;;  %5804 = vpow2.f32 %v3232_v15  ;;  %v3091_v15 = vsub.f32 %v8956_v56, %v8145_v4 }
 0x525   : > { %3356 = vadd.xlane.f32.xlu2 %v8251_v57  ;;  %3386 = vadd.xlane.f32.xlu0 %v8253_v20 }
 0x527   : > { %v5799_v0 = vpop.eup %5798 }
 0x528   : > { %v3271_v8 = vpop.xlane.xlu2 %3270  ;;  %v3335_v37 = vpop.xlane.xlu0 %3334  ;;  %v3463_v32 = vmul.f32 %v5799_v0, %v7942_v24  ;;  %v8959_v24 = vld [vmem:[#allocation20_spill] sm:$0xff] }
 0x529   : > { %5806 = vrcp.f32 %v3271_v8  ;;  %3388 = vadd.xlane.f32.xlu1 %v8263_v38  ;;  %v8268_v52 = vpop.eup %5800  ;;  %v8958_v8 = vld [vmem:[#allocation15_spill] sm:$0xff]  ;;  %v3107_v0 = vsub.f32 %v8959_v24, %v8177_v17  ;;  %v3168_v38 = vmul.f32 1.442695, %v3091_v15 }
 0x52a   : > { %5808 = vrcp.f32 %v3303_v41  ;;  %8954 = vst [vmem:[#allocation42_spill] sm:$0xff] %v8268_v52  ;;  %v8270_v16 = vpop.eup %5802  ;;  %v3527_v49 = vpack.c.bf16 %v3463_v32, %v3463_v32 }
 0x52b   : > { %5810 = vrcp.f32 %v3335_v37  ;;  %8955 = vst [vmem:[#allocation43_spill] sm:$0xff] %v8270_v16  ;;  %v8277_v27 = vpop.eup %5804  ;;  %v3139_v37 = vsub.f32 %v8958_v8, %v8206_v14  ;;  %v3200_v32 = vmul.f32 1.442695, %v3107_v0 }
 0x52c   : > { %5812 = vpow2.f32 %v3198_v18  ;;  %v3337_v21 = vpop.xlane.xlu1 %3336  ;;  %8957 = vst [vmem:[#allocation44_spill] sm:$0xff] %v8277_v27 }
 0x52d   : > { %5814 = vpow2.f32 %v3262_v29  ;;  %3324 = vadd.xlane.f32.xlu2 %v8268_v52  ;;  %3358 = vadd.xlane.f32.xlu0 %v8270_v16  ;;  %v3264_v16 = vmul.f32 1.442695, %v3139_v37 }
 0x52e   : > { %5816 = vrcp.f32 %v3337_v21 }
 0x52f   : > { %v5807_v41 = vpop.eup %5806 }
 0x530   : > { %v5809_v18 = vpop.eup %5808  ;;  %v3462_v4 = vmul.f32 %v5807_v41, %v7961_v58  ;;  %v3305_v29 = vpop.xlane.xlu2 %3304  ;;  %v3671_v41 = vunpack.c.l.b16 %v3527_v49 }
 0x531   : > { %v3275_v56 = vpop.xlane.xlu0 %3274  ;;  %v5811_v52 = vpop.eup %5810  ;;  %5818 = vrcp.f32 %v3305_v29  ;;  %3360 = vadd.xlane.f32.xlu1 %v8277_v27  ;;  %v3478_v58 = vmul.f32 %v5809_v18, %v7934_v25  ;;  %v3125_v25 = vsub.f32 %v7952_v48, %v8259_v62  ;;  %v3140_v18 = vsub.f32 %v7909_v40, %v8248_v47 }
 0x532   : > { %v8285_v22 = vpop.eup %5812  ;;  %5820 = vpow2.f32 %v3166_v63  ;;  %v3526_v21 = vpack.c.bf16 %v3462_v4, %v3462_v4  ;;  %v3494_v14 = vmul.f32 %v5811_v52, %v7963_v43  ;;  %v3124_v43 = vsub.f32 %v7911_v23, %v8208_v61 }
 0x533   : > { %v8288_v8 = vpop.eup %5814  ;;  %5822 = vrcp.f32 %v3275_v56  ;;  %v3236_v56 = vmul.f32 1.442695, %v3125_v25  ;;  %v3266_v47 = vmul.f32 1.442695, %v3140_v18 }
 0x534   : > { %v5817_v17 = vpop.eup %5816  ;;  %v3670_v24 = vunpack.c.l.b16 %v3526_v21  ;;  %5824 = vpow2.f32 %v3168_v38  ;;  %v3558_v15 = vpack.c.bf16 %v3494_v14, %v3494_v14  ;;  %v3277_v27 = vpop.xlane.xlu1 %3276  ;;  %v3234_v48 = vmul.f32 1.442695, %v3124_v43 }
 0x535   : > { %v3495_v29 = vmul.f32 %v5817_v17, %v7973_v45  ;;  %3390 = vadd.xlane.f32.xlu2 %v8288_v8  ;;  %3326 = vadd.xlane.f32.xlu0 %v8285_v22  ;;  %5826 = vrcp.f32 %v3277_v27  ;;  %v3542_v45 = vpack.c.bf16 %v3478_v58, %v3478_v58 }
 0x536   : > { %v3686_v52 = vpack.c.b16 %v3671_v41, %v3670_v24  ;;  %5828 = vpow2.f32 %v3264_v16  ;;  %v3960_v27 = vunpack.c.l.b16 %v3558_v15  ;;  %v3141_v15 = vsub.f32 %v7925_v10, %v8229_v50 }
 0x537   : > { %v5819_v63 = vpop.eup %5818  ;;  %v3559_v37 = vpack.c.bf16 %v3495_v29, %v3495_v29  ;;  %5830 = vpow2.f32 %v3200_v32  ;;  %v3815_v40 = vunpack.c.l.b16 %v3542_v45 }
 0x538   : > { %v8298_v38 = vpop.eup %5820  ;;  %v3479_v0 = vmul.f32 %v5819_v63, %v7982_v31  ;;  %v3367_v49 = vpop.xlane.xlu2 %3366  ;;  %3758 = vmatmul.bf16.vlgmr.msra.gmra.mxu0 %v3686_v52 }
 0x539   : > { %v3369_v23 = vpop.xlane.xlu0 %3368  ;;  %v5823_v61 = vpop.eup %5822  ;;  %v3961_v4 = vunpack.c.l.b16 %v3559_v37  ;;  %5832 = vrcp.f32 %v3367_v49  ;;  %3294 = vadd.xlane.f32.xlu1 %v8298_v38  ;;  %v8961_v37 = vld [vmem:[#allocation16_spill] sm:$0xff]  ;;  %v3268_v49 = vmul.f32 1.442695, %v3141_v15 }
 0x53a   : > { %v3543_v62 = vpack.c.bf16 %v3479_v0, %v3479_v0  ;;  %5834 = vrcp.f32 %v3369_v23  ;;  %v8304_v16 = vpop.eup %5824  ;;  %v3464_v17 = vmul.f32 %v5823_v61, %v7984_v55  ;;  %v8960_v55 = vld [vmem:[#allocation14_spill] sm:$0xff]  ;;  %v3093_v45 = vsub.f32 %v8961_v37, %v8187_v35 }
 0x53b   : > { %v3976_v21 = vpack.c.b16 %v3961_v4, %v3960_v27  ;;  %v5827_v14 = vpop.eup %5826  ;;  %5836 = vpow2.f32 %v3234_v48  ;;  %v3092_v52 = vsub.f32 %v8960_v55, %v8185_v13 }
 0x53c   : > { %v3816_v31 = vunpack.c.l.b16 %v3543_v62  ;;  %v8307_v32 = vpop.eup %5828  ;;  %v3339_v58 = vpop.xlane.xlu1 %3338  ;;  %v3465_v41 = vmul.f32 %v5827_v14, %v7994_v59  ;;  %5838 = vpow2.f32 %v3236_v56  ;;  %v3528_v10 = vpack.c.bf16 %v3464_v17, %v3464_v17  ;;  %v8962_v56 = vld [vmem:[#allocation25_spill] sm:$0xff]  ;;  %v8963_v17 = vld [vmem:[#allocation26_spill] sm:$0xff] }
 0x53d   : > { %4048 = vmatmul.bf16.vlgmr.msra.gmra.mxu2 %v3976_v21  ;;  %3296 = vadd.xlane.f32.xlu2 %v8304_v16  ;;  %v8311_v24 = vpop.eup %5830  ;;  %5840 = vpow2.f32 %v3266_v47  ;;  %v3170_v61 = vmul.f32 1.442695, %v3092_v52  ;;  %v3172_v4 = vmul.f32 1.442695, %v3093_v45 }
 0x53e   : > { %v3831_v29 = vpack.c.b16 %v3816_v31, %v3815_v40  ;;  %3392 = vadd.xlane.f32.xlu0 %v8307_v32  ;;  %v3529_v63 = vpack.c.bf16 %v3465_v41, %v3465_v41  ;;  %v3672_v48 = vunpack.c.l.b16 %v3528_v10 }
 0x53f   : > { %v5833_v43 = vpop.eup %5832 }
 0x540   : > { %v5835_v25 = vpop.eup %5834  ;;  %v3510_v59 = vmul.f32 %v5833_v43, %v8003_v36  ;;  %3903 = vmatmul.bf16.vlgmr.msra.gmra.mxu1 %v3831_v29  ;;  %v3307_v18 = vpop.xlane.xlu2 %3306  ;;  %v3673_v23 = vunpack.c.l.b16 %v3529_v63 }
 0x541   : > { %v3309_v0 = vpop.xlane.xlu0 %3308  ;;  %v3511_v50 = vmul.f32 %v5835_v25, %v8005_v28  ;;  %5842 = vrcp.f32 %v3307_v18  ;;  %3328 = vadd.xlane.f32.xlu1 %v8311_v24  ;;  %v8323_v35 = vpop.eup %5836  ;;  %v3108_v28 = vsub.f32 %v8962_v56, %v8219_v39 }
 0x542   : > { %v3574_v13 = vpack.c.bf16 %v3510_v59, %v3510_v59  ;;  %5844 = vrcp.f32 %v3309_v0  ;;  %v8325_v62 = vpop.eup %5838  ;;  %v3687_v47 = vpack.c.b16 %v3673_v23, %v3672_v48 }
 0x543   : > { %v3575_v27 = vpack.c.bf16 %v3511_v50, %v3511_v50  ;;  %5846 = vrcp.f32 %v3339_v58  ;;  %v8330_v40 = vpop.eup %5840  ;;  %v3109_v58 = vsub.f32 %v8963_v17, %v8227_v5  ;;  %v3202_v52 = vmul.f32 1.442695, %v3108_v28 }
 0x544   : > { %v4105_v36 = vunpack.c.l.b16 %v3574_v13  ;;  %v3279_v14 = vpop.xlane.xlu1 %3278  ;;  %5848 = vpow2.f32 %v3268_v49 }
 0x545   : > { %v4106_v21 = vunpack.c.l.b16 %v3575_v27  ;;  %3362 = vadd.xlane.f32.xlu2 %v8323_v35  ;;  %5850 = vpow2.f32 %v3170_v61  ;;  %v3204_v37 = vmul.f32 1.442695, %v3109_v58 }
 0x546   : > { %3364 = vadd.xlane.f32.xlu0 %v8325_v62  ;;  %5852 = vpow2.f32 %v3172_v4 }
 0x547   : > { %v5843_v31 = vpop.eup %5842  ;;  %v4121_v41 = vpack.c.b16 %v4106_v21, %v4105_v36 }
 0x548   : > { %v5845_v15 = vpop.eup %5844  ;;  %v3341_v29 = vpop.xlane.xlu2 %3340  ;;  %3763 = vmatmul.bf16.gmra.mxu0 %v3687_v47  ;;  %v3480_v43 = vmul.f32 %v5843_v31, %v8024_v6 }
 0x549   : > { %v3371_v39 = vpop.xlane.xlu0 %3370  ;;  %v5847_v55 = vpop.eup %5846  ;;  %5854 = vrcp.f32 %v3341_v29  ;;  %4193 = vmatmul.bf16.vlgmr.msra.gmra.mxu3 %v4121_v41  ;;  %3394 = vadd.xlane.f32.xlu1 %v8330_v40  ;;  %v3481_v63 = vmul.f32 %v5845_v15, %v8026_v3 }
 0x54a   : > { %5856 = vrcp.f32 %v3371_v39  ;;  %v3544_v25 = vpack.c.bf16 %v3480_v43, %v3480_v43  ;;  %v8338_v45 = vpop.eup %5848  ;;  %v3496_v18 = vmul.f32 %v5847_v55, %v8015_v51 }
 0x54b   : > { %5858 = vrcp.f32 %v3279_v14  ;;  %v3545_v5 = vpack.c.bf16 %v3481_v63, %v3481_v63  ;;  %v8341_v0 = vpop.eup %5850 }
 0x54c   : > { %v3817_v59 = vunpack.c.l.b16 %v3544_v25  ;;  %5860 = vpow2.f32 %v3202_v52  ;;  %v3373_v6 = vpop.xlane.xlu1 %3372  ;;  %v8344_v50 = vpop.eup %5852  ;;  %v3560_v27 = vpack.c.bf16 %v3496_v18, %v3496_v18 }
 0x54d   : > { %3396 = vadd.xlane.f32.xlu2 %v8338_v45  ;;  %v3818_v10 = vunpack.c.l.b16 %v3545_v5  ;;  %5862 = vrcp.f32 %v3373_v6 }
 0x54e   : > { %3298 = vadd.xlane.f32.xlu0 %v8341_v0  ;;  %5864 = vpow2.f32 %v3204_v37  ;;  %v3962_v21 = vunpack.c.l.b16 %v3560_v27 }
 0x54f   : > { %v5855_v3 = vpop.eup %5854  ;;  %v3832_v49 = vpack.c.b16 %v3818_v10, %v3817_v59 }
 0x550   : > { %v5857_v13 = vpop.eup %5856  ;;  %v3281_v23 = vpop.xlane.xlu2 %3280  ;;  %v3497_v51 = vmul.f32 %v5855_v3, %v8047_v12 }
 0x551   : > { %v3311_v61 = vpop.xlane.xlu0 %3310  ;;  %v5859_v4 = vpop.eup %5858  ;;  %5866 = vrcp.f32 %v3281_v23  ;;  %3908 = vmatmul.bf16.gmra.mxu1 %v3832_v49  ;;  %3300 = vadd.xlane.f32.xlu1 %v8344_v50  ;;  %v3512_v36 = vmul.f32 %v5857_v13, %v8045_v60 }
 0x552   : > { %5868 = vrcp.f32 %v3311_v61  ;;  %v3561_v48 = vpack.c.bf16 %v3497_v51, %v3497_v51  ;;  %v8350_v56 = vpop.eup %5860  ;;  %v3466_v47 = vmul.f32 %v5859_v4, %v8036_v44 }
 0x553   : > { %v5863_v28 = vpop.eup %5862  ;;  %v3576_v58 = vpack.c.bf16 %v3512_v36, %v3512_v36 }
 0x554   : > { %v3963_v14 = vunpack.c.l.b16 %v3561_v48  ;;  %v8353_v31 = vpop.eup %5864  ;;  %v3313_v12 = vpop.xlane.xlu1 %3312  ;;  %v3513_v17 = vmul.f32 %v5863_v28, %v8057_v1  ;;  %v3530_v55 = vpack.c.bf16 %v3466_v47, %v3466_v47 }
 0x555   : > { %3330 = vadd.xlane.f32.xlu2 %v8350_v56  ;;  %5870 = vrcp.f32 %v3313_v12  ;;  %v4107_v52 = vunpack.c.l.b16 %v3576_v58 }
 0x556   : > { %3332 = vadd.xlane.f32.xlu0 %v8353_v31  ;;  %v3977_v60 = vpack.c.b16 %v3963_v14, %v3962_v21  ;;  %v3577_v15 = vpack.c.bf16 %v3513_v17, %v3513_v17  ;;  %v3674_v59 = vunpack.c.l.b16 %v3530_v55 }
 0x557   : > { %v5867_v41 = vpop.eup %5866 }
 0x558   : > { %v5869_v29 = vpop.eup %5868  ;;  %v3343_v39 = vpop.xlane.xlu2 %3342  ;;  %4053 = vmatmul.bf16.gmra.mxu2 %v3977_v60  ;;  %v3467_v44 = vmul.f32 %v5867_v41, %v8068_v19  ;;  %v4108_v63 = vunpack.c.l.b16 %v3577_v15 }
 0x559   : > { %v3345_v43 = vpop.xlane.xlu0 %3344  ;;  %5872 = vrcp.f32 %v3343_v39  ;;  %v3482_v25 = vmul.f32 %v5869_v29, %v8066_v46 }
 0x55a   : > { %5874 = vrcp.f32 %v3345_v43  ;;  %v3531_v1 = vpack.c.bf16 %v3467_v44, %v3467_v44  ;;  %v4122_v37 = vpack.c.b16 %v4108_v63, %v4107_v52 }
 0x55b   : > { %v5871_v5 = vpop.eup %5870  ;;  %v3546_v3 = vpack.c.bf16 %v3482_v25, %v3482_v25 }
 0x55c   : > { %v3675_v18 = vunpack.c.l.b16 %v3531_v1  ;;  %v3375_v6 = vpop.xlane.xlu1 %3374  ;;  %4198 = vmatmul.bf16.gmra.mxu3 %v4122_v37  ;;  %v3483_v10 = vmul.f32 %v5871_v5, %v8078_v54 }
 0x55d   : > { %v3819_v27 = vunpack.c.l.b16 %v3546_v3 }
 0x55e   : > { %v3688_v49 = vpack.c.b16 %v3675_v18, %v3674_v59  ;;  %v3547_v19 = vpack.c.bf16 %v3483_v10, %v3483_v10 }
 0x55f   : > { %v5873_v13 = vpop.eup %5872 }
 0x560   : > { %v5875_v23 = vpop.eup %5874  ;;  %v3283_v61 = vpop.xlane.xlu2 %3282  ;;  %3768 = vmatmul.bf16.gmra.mxu0 %v3688_v49  ;;  %v3498_v46 = vmul.f32 %v5873_v13, %v8087_v9  ;;  %v3820_v4 = vunpack.c.l.b16 %v3547_v19 }
 0x561   : > { %v3285_v51 = vpop.xlane.xlu0 %3284  ;;  %5876 = vrcp.f32 %v3283_v61  ;;  %v3499_v36 = vmul.f32 %v5875_v23, %v8089_v53 }
 0x562   : > { %5878 = vrcp.f32 %v3285_v51  ;;  %v3562_v48 = vpack.c.bf16 %v3498_v46, %v3498_v46  ;;  %v3833_v28 = vpack.c.b16 %v3820_v4, %v3819_v27 }
 0x563   : > { %5880 = vrcp.f32 %v3375_v6  ;;  %v3563_v54 = vpack.c.bf16 %v3499_v36, %v3499_v36 }
 0x564   : > { %v3964_v21 = vunpack.c.l.b16 %v3562_v48  ;;  %v3315_v14 = vpop.xlane.xlu1 %3314  ;;  %3913 = vmatmul.bf16.gmra.mxu1 %v3833_v28 }
 0x565   : > { %v3965_v47 = vunpack.c.l.b16 %v3563_v54 }
 0x567   : > { %v5877_v12 = vpop.eup %5876  ;;  %v3978_v17 = vpack.c.b16 %v3965_v47, %v3964_v21  ;;  %v8965_v21 = vld [vmem:[#allocation22_spill] sm:$0xff] }
 0x568   : > { %v5879_v58 = vpop.eup %5878  ;;  %v3377_v60 = vpop.xlane.xlu2 %3376  ;;  %v3468_v9 = vmul.f32 %v5877_v12, %v8108_v11 }
 0x569   : > { %v3347_v41 = vpop.xlane.xlu0 %3346  ;;  %v5881_v15 = vpop.eup %5880  ;;  %5882 = vrcp.f32 %v3377_v60  ;;  %4058 = vmatmul.bf16.gmra.mxu2 %v3978_v17  ;;  %v3469_v53 = vmul.f32 %v5879_v58, %v8110_v26  ;;  %v8966_v60 = vld [vmem:[#allocation27_spill] sm:$0xff] }
 0x56a   : > { %5884 = vrcp.f32 %v3347_v41  ;;  %v3532_v29 = vpack.c.bf16 %v3468_v9, %v3468_v9  ;;  %v3514_v44 = vmul.f32 %v5881_v15, %v8099_v34 }
 0x56b   : > { %5886 = vrcp.f32 %v3315_v14  ;;  %v3533_v39 = vpack.c.bf16 %v3469_v53, %v3469_v53 }
 0x56c   : > { %v3676_v43 = vunpack.c.l.b16 %v3532_v29  ;;  %v3349_v55 = vpop.xlane.xlu1 %3348  ;;  %v3578_v59 = vpack.c.bf16 %v3514_v44, %v3514_v44 }
 0x56d   : > { %v3677_v52 = vunpack.c.l.b16 %v3533_v39  ;;  %5888 = vrcp.f32 %v3349_v55  ;;  %v8967_v55 = vld [vmem:[#allocation28_spill] sm:$0xff] }
 0x56e   : > { %v4109_v34 = vunpack.c.l.b16 %v3578_v59 }
 0x56f   : > { %v5883_v63 = vpop.eup %5882  ;;  %v3689_v25 = vpack.c.b16 %v3677_v52, %v3676_v43 }
 0x570   : > { %v5885_v1 = vpop.eup %5884  ;;  %v3317_v37 = vpop.xlane.xlu2 %3316  ;;  %v3515_v5 = vmul.f32 %v5883_v63, %v8129_v2 }
 0x571   : > { %v3287_v11 = vpop.xlane.xlu0 %3286  ;;  %v5887_v18 = vpop.eup %5886  ;;  %5890 = vrcp.f32 %v3317_v37  ;;  %3773 = vmatmul.bf16.gmra.mxu0 %v3689_v25  ;;  %v3500_v26 = vmul.f32 %v5885_v1, %v8131_v33  ;;  %v8964_v33 = vld [vmem:[#allocation21_spill] sm:$0xff]  ;;  %v8968_v1 = vld [vmem:[#allocation23_spill] sm:$0xff] }
 0x572   : > { %5892 = vrcp.f32 %v3287_v11  ;;  %v3579_v6 = vpack.c.bf16 %v3515_v5, %v3515_v5  ;;  %v3484_v49 = vmul.f32 %v5887_v18, %v8120_v30 }
 0x573   : > { %v5889_v10 = vpop.eup %5888  ;;  %v3564_v23 = vpack.c.bf16 %v3500_v26, %v3500_v26 }
 0x574   : > { %v4110_v3 = vunpack.c.l.b16 %v3579_v6  ;;  %v3289_v13 = vpop.xlane.xlu1 %3288  ;;  %v3501_v19 = vmul.f32 %v5889_v10, %v8141_v7  ;;  %v3548_v48 = vpack.c.bf16 %v3484_v49, %v3484_v49 }
 0x575   : > { %5894 = vrcp.f32 %v3289_v13  ;;  %v3966_v28 = vunpack.c.l.b16 %v3564_v23 }
 0x576   : > { %v4123_v61 = vpack.c.b16 %v4110_v3, %v4109_v34  ;;  %v3565_v51 = vpack.c.bf16 %v3501_v19, %v3501_v19  ;;  %v3821_v12 = vunpack.c.l.b16 %v3548_v48  ;;  %v8969_v19 = vld [vmem:[#allocation33_spill] sm:$0xff] }
 0x577   : > { %v5891_v2 = vpop.eup %5890 }
 0x578   : > { %v5893_v46 = vpop.eup %5892  ;;  %v3379_v27 = vpop.xlane.xlu2 %3378  ;;  %4203 = vmatmul.bf16.gmra.mxu3 %v4123_v61  ;;  %v3485_v36 = vmul.f32 %v5891_v2, %v8964_v33  ;;  %v3967_v54 = vunpack.c.l.b16 %v3565_v51  ;;  %v8970_v2 = vld [vmem:[#allocation34_spill] sm:$0xff]  ;;  %v8971_v33 = vld [vmem:[#allocation24_spill] sm:$0xff] }
 0x579   : > { %v3381_v4 = vpop.xlane.xlu0 %3380  ;;  %5896 = vrcp.f32 %v3379_v27  ;;  %v3470_v30 = vmul.f32 %v5893_v46, %v8965_v21 }
 0x57a   : > { %5898 = vrcp.f32 %v3381_v4  ;;  %v3549_v14 = vpack.c.bf16 %v3485_v36, %v3485_v36  ;;  %v3979_v7 = vpack.c.b16 %v3967_v54, %v3966_v28 }
 0x57b   : > { %v5895_v47 = vpop.eup %5894  ;;  %v3534_v9 = vpack.c.bf16 %v3470_v30, %v3470_v30 }
 0x57c   : > { %v3822_v17 = vunpack.c.l.b16 %v3549_v14  ;;  %v3351_v58 = vpop.xlane.xlu1 %3350  ;;  %4063 = vmatmul.bf16.gmra.mxu2 %v3979_v7  ;;  %v3471_v41 = vmul.f32 %v5895_v47, %v8966_v60  ;;  %v8972_v47 = vld [vmem:[#allocation36_spill] sm:$0xff] }
 0x57d   : > { %v3678_v63 = vunpack.c.l.b16 %v3534_v9  ;;  %v5620_v9 = vld [vmem:[%s8554_s6 + $0x58] sm:$0xff] }
 0x57e   : > { %v3834_v15 = vpack.c.b16 %v3822_v17, %v3821_v12  ;;  %v3535_v29 = vpack.c.bf16 %v3471_v41, %v3471_v41  ;;  %4664 = vmatpush.bf16.msrb.mxu2 %v5620_v9 }
 0x57f   : > { %v5897_v53 = vpop.eup %5896 }
 0x580   : > { %v5899_v39 = vpop.eup %5898  ;;  %v3319_v43 = vpop.xlane.xlu2 %3318  ;;  %3918 = vmatmul.bf16.gmra.mxu1 %v3834_v15  ;;  %v3516_v52 = vmul.f32 %v5897_v53, %v8967_v55  ;;  %v3679_v25 = vunpack.c.l.b16 %v3535_v29  ;;  %v5624_v15 = vld [vmem:[%s8554_s6 + $0x78] sm:$0xff] }
 0x581   : > { %v3321_v44 = vpop.xlane.xlu0 %3320  ;;  %5900 = vrcp.f32 %v3319_v43  ;;  %v3517_v37 = vmul.f32 %v5899_v39, %v8968_v1  ;;  %4801 = vmatpush.bf16.msrb.mxu3 %v5624_v15 }
 0x582   : > { %5902 = vrcp.f32 %v3321_v44  ;;  %v3580_v11 = vpack.c.bf16 %v3516_v52, %v3516_v52  ;;  %v3690_v5 = vpack.c.b16 %v3679_v25, %v3678_v63  ;;  %v8974_v44 = vld [vmem:[#allocation30_spill] sm:$0xff] }
 0x583   : > { %5904 = vrcp.f32 %v3351_v58  ;;  %v3581_v59 = vpack.c.bf16 %v3517_v37, %v3517_v37  ;;  %v8973_v58 = vld [vmem:[#allocation29_spill] sm:$0xff] }
 0x584   : > { %v4111_v18 = vunpack.c.l.b16 %v3580_v11  ;;  %v3323_v26 = vpop.xlane.xlu1 %3322  ;;  %3778 = vmatmul.bf16.gmra.mxu0 %v3690_v5 }
 0x585   : > { %v4112_v6 = vunpack.c.l.b16 %v3581_v59 }
 0x587   : > { %v5901_v10 = vpop.eup %5900  ;;  %v4124_v34 = vpack.c.b16 %v4112_v6, %v4111_v18  ;;  %v5612_v18 = vld [vmem:[%s8554_s6 + $0x18] sm:$0xff] }
 0x588   : > { %v5903_v3 = vpop.eup %5902  ;;  %v3353_v49 = vpop.xlane.xlu2 %3352  ;;  %v3486_v23 = vmul.f32 %v5901_v10, %v8969_v19  ;;  %v5616_v6 = vld [vmem:[%s8554_s6 + $0x38] sm:$0xff]  ;;  %4390 = vmatpush.bf16.msrb.mxu0 %v5612_v18  ;;  %v8980_v18 = vld [vmem:[#allocation43_spill] sm:$0xff] }
 0x589   : > { %v3383_v13 = vpop.xlane.xlu0 %3382  ;;  %v5905_v61 = vpop.eup %5904  ;;  %5906 = vrcp.f32 %v3353_v49  ;;  %4208 = vmatmul.bf16.gmra.mxu3 %v4124_v34  ;;  %v3487_v51 = vmul.f32 %v5903_v3, %v8970_v2  ;;  %v8975_v3 = vld [vmem:[#allocation31_spill] sm:$0xff]  ;;  %4527 = vmatpush.bf16.msrb.mxu1 %v5616_v6 }
 0x58a   : > { %5908 = vrcp.f32 %v3383_v13  ;;  %v3550_v46 = vpack.c.bf16 %v3486_v23, %v3486_v23  ;;  %v3502_v36 = vmul.f32 %v5905_v61, %v8971_v33 }
 0x58b   : > { %v3551_v27 = vpack.c.bf16 %v3487_v51, %v3487_v51 }
 0x58c   : > { %v3823_v4 = vunpack.c.l.b16 %v3550_v46  ;;  %v3385_v48 = vpop.xlane.xlu1 %3384  ;;  %v3566_v17 = vpack.c.bf16 %v3502_v36, %v3502_v36  ;;  %v8976_v46 = vld [vmem:[#allocation32_spill] sm:$0xff] }
 0x58d   : > { %v3824_v28 = vunpack.c.l.b16 %v3551_v27  ;;  %5910 = vrcp.f32 %v3385_v48 }
 0x58e   : > { %v3968_v29 = vunpack.c.l.b16 %v3566_v17  ;;  %v8977_v17 = vld [vmem:[#allocation35_spill] sm:$0xff] }
 0x58f   : > { %v5907_v54 = vpop.eup %5906  ;;  %v3835_v21 = vpack.c.b16 %v3824_v28, %v3823_v4 }
 0x590   : > { %v5909_v30 = vpop.eup %5908  ;;  %v3291_v14 = vpop.xlane.xlu2 %3290  ;;  %v3503_v12 = vmul.f32 %v5907_v54, %v8972_v47 }
 0x591   : > { %v3293_v7 = vpop.xlane.xlu0 %3292  ;;  %5912 = vrcp.f32 %v3291_v14  ;;  %3923 = vmatmul.bf16.gmra.mxu1 %v3835_v21  ;;  %v3518_v60 = vmul.f32 %v5909_v30, %v8973_v58 }
 0x592   : > { %5914 = vrcp.f32 %v3293_v7  ;;  %v3567_v41 = vpack.c.bf16 %v3503_v12, %v3503_v12 }
 0x593   : > { %v5911_v53 = vpop.eup %5910  ;;  %v3582_v52 = vpack.c.bf16 %v3518_v60, %v3518_v60 }
 0x594   : > { %v3969_v39 = vunpack.c.l.b16 %v3567_v41  ;;  %v3355_v43 = vpop.xlane.xlu1 %3354  ;;  %v3519_v55 = vmul.f32 %v5911_v53, %v8974_v44  ;;  %v8978_v41 = vld [vmem:[#allocation41_spill] sm:$0xff]  ;;  %v8979_v44 = vld [vmem:[#allocation42_spill] sm:$0xff] }
 0x595   : > { %5916 = vrcp.f32 %v3355_v43  ;;  %v4113_v10 = vunpack.c.l.b16 %v3582_v52 }
 0x596   : > { %v3980_v63 = vpack.c.b16 %v3969_v39, %v3968_v29  ;;  %v3583_v1 = vpack.c.bf16 %v3519_v55, %v3519_v55 }
 0x597   : > { %v5913_v25 = vpop.eup %5912 }
 0x598   : > { %v5915_v37 = vpop.eup %5914  ;;  %v3357_v11 = vpop.xlane.xlu2 %3356  ;;  %4068 = vmatmul.bf16.gmra.mxu2 %v3980_v63  ;;  %v3472_v59 = vmul.f32 %v5913_v25, %v8234_v42  ;;  %v4114_v34 = vunpack.c.l.b16 %v3583_v1 }
 0x599   : > { %v3387_v5 = vpop.xlane.xlu0 %3386  ;;  %5918 = vrcp.f32 %v3357_v11  ;;  %v3473_v49 = vmul.f32 %v5915_v37, %v8975_v3 }
 0x59a   : > { %5920 = vrcp.f32 %v3387_v5  ;;  %v3536_v13 = vpack.c.bf16 %v3472_v59, %v3472_v59  ;;  %v4125_v19 = vpack.c.b16 %v4114_v34, %v4113_v10  ;;  %v8981_v34 = vld [vmem:[#allocation44_spill] sm:$0xff] }
 0x59b   : > { %5922 = vrcp.f32 %v3323_v26  ;;  %v3537_v42 = vpack.c.bf16 %v3473_v49, %v3473_v49  ;;  %v5917_v23 = vpop.eup %5916 }
 0x59c   : > { %v3680_v61 = vunpack.c.l.b16 %v3536_v13  ;;  %v3389_v2 = vpop.xlane.xlu1 %3388  ;;  %4213 = vmatmul.bf16.gmra.mxu3 %v4125_v19  ;;  %v3504_v27 = vmul.f32 %v5917_v23, %v8976_v46  ;;  %v5619_v19 = vld [vmem:[%s8554_s6 + $0x50] sm:$0xff]  ;;  %v5618_v46 = vld [vmem:[%s8554_s6 + $0x48] sm:$0xff] }
 0x59d   : > { %v3681_v51 = vunpack.c.l.b16 %v3537_v42  ;;  %5924 = vrcp.f32 %v3389_v2  ;;  %4665 = vmatpush.bf16.msrb.mxu2 %v5619_v19 }
 0x59e   : > { %v3568_v21 = vpack.c.bf16 %v3504_v27, %v3504_v27 }
 0x59f   : > { %v5919_v4 = vpop.eup %5918  ;;  %v3691_v33 = vpack.c.b16 %v3681_v51, %v3680_v61 }
 0x5a0   : > { %v5921_v36 = vpop.eup %5920  ;;  %v3325_v48 = vpop.xlane.xlu2 %3324  ;;  %v3505_v54 = vmul.f32 %v5919_v4, %v8251_v57  ;;  %v3970_v47 = vunpack.c.l.b16 %v3568_v21 }
 0x5a1   : > { %v3359_v28 = vpop.xlane.xlu0 %3358  ;;  %v5923_v30 = vpop.eup %5922  ;;  %5926 = vrcp.f32 %v3325_v48  ;;  %3783 = vmatmul.bf16.gmra.mxu0 %v3691_v33  ;;  %v3520_v26 = vmul.f32 %v5921_v36, %v8253_v20  ;;  %4666 = vmatpush.bf16.msrb.mxu2 %v5618_v46 }
 0x5a2   : > { %v3569_v14 = vpack.c.bf16 %v3505_v54, %v3505_v54  ;;  %5928 = vrcp.f32 %v3359_v28  ;;  %v3488_v58 = vmul.f32 %v5923_v30, %v8977_v17  ;;  %v5623_v30 = vld [vmem:[%s8554_s6 + $0x70] sm:$0xff] }
 0x5a3   : > { %v5925_v7 = vpop.eup %5924  ;;  %v3584_v15 = vpack.c.bf16 %v3520_v26, %v3520_v26  ;;  %v5617_v26 = vld [vmem:[%s8554_s6 + $0x40] sm:$0xff]  ;;  %4802 = vmatpush.bf16.msrb.mxu3 %v5623_v30 }
 0x5a4   : > { %v3971_v12 = vunpack.c.l.b16 %v3569_v14  ;;  %v3361_v60 = vpop.xlane.xlu1 %3360  ;;  %v3521_v9 = vmul.f32 %v5925_v7, %v8978_v41  ;;  %v3552_v55 = vpack.c.bf16 %v3488_v58, %v3488_v58 }
 0x5a5   : > { %5930 = vrcp.f32 %v3361_v60  ;;  %v4115_v63 = vunpack.c.l.b16 %v3584_v15  ;;  %4667 = vmatpush.bf16.msrb.mxu2 %v5617_v26 }
 0x5a6   : > { %v3981_v53 = vpack.c.b16 %v3971_v12, %v3970_v47  ;;  %v3585_v29 = vpack.c.bf16 %v3521_v9, %v3521_v9  ;;  %v3825_v5 = vunpack.c.l.b16 %v3552_v55  ;;  %v5611_v9 = vld [vmem:[%s8554_s6 + $0x10] sm:$0xff] }
 0x5a7   : > { %v5927_v57 = vpop.eup %5926  ;;  %4391 = vmatpush.bf16.msrb.mxu0 %v5611_v9 }
 0x5a8   : > { %v3391_v39 = vpop.xlane.xlu2 %3390  ;;  %4073 = vmatmul.bf16.gmra.mxu2 %v3981_v53  ;;  %v3489_v20 = vmul.f32 %v5927_v57, %v8979_v44  ;;  %v5929_v52 = vpop.eup %5928  ;;  %v4116_v25 = vunpack.c.l.b16 %v3585_v29 }
 0x5a9   : > { %v3327_v43 = vpop.xlane.xlu0 %3326  ;;  %5932 = vrcp.f32 %v3391_v39  ;;  %v3506_v6 = vmul.f32 %v5929_v52, %v8980_v18 }
 0x5aa   : > { %v3553_v1 = vpack.c.bf16 %v3489_v20, %v3489_v20  ;;  %v4126_v37 = vpack.c.b16 %v4116_v25, %v4115_v63  ;;  %v5610_v25 = vld [vmem:[%s8554_s6 + $0x8] sm:$0xff] }
 0x5ab   : > { %v5931_v11 = vpop.eup %5930  ;;  %v3570_v23 = vpack.c.bf16 %v3506_v6, %v3506_v6  ;;  %4392 = vmatpush.bf16.msrb.mxu0 %v5610_v25 }
 0x5ac   : > { %v3826_v59 = vunpack.c.l.b16 %v3553_v1  ;;  %v3295_v10 = vpop.xlane.xlu1 %3294  ;;  %4218 = vmatmul.bf16.gmra.mxu3 %v4126_v37  ;;  %v3507_v3 = vmul.f32 %v5931_v11, %v8981_v34  ;;  %v5621_v1 = vld [vmem:[%s8554_s6 + $0x60] sm:$0xff] }
 0x5ad   : > { %5934 = vrcp.f32 %v3295_v10  ;;  %v3972_v4 = vunpack.c.l.b16 %v3570_v23 }
 0x5ae   : > { %v3836_v49 = vpack.c.b16 %v3826_v59, %v3825_v5  ;;  %v3571_v13 = vpack.c.bf16 %v3507_v3, %v3507_v3  ;;  %5936 = vrcp.f32 %v3327_v43 }
 0x5af   : > { %v5933_v2 = vpop.eup %5932 }
 0x5b0   : > { %v3297_v42 = vpop.xlane.xlu2 %3296  ;;  %3928 = vmatmul.bf16.gmra.mxu1 %v3836_v49  ;;  %v3973_v51 = vunpack.c.l.b16 %v3571_v13  ;;  %v3522_v48 = vmul.f32 %v5933_v2, %v8288_v8  ;;  %v5609_v13 = vld [vmem:[%s8554_s6] sm:$0xff] }
 0x5b1   : > { %5938 = vrcp.f32 %v3297_v42  ;;  %v3393_v61 = vpop.xlane.xlu0 %3392  ;;  %4393 = vmatpush.bf16.msrb.mxu0 %v5609_v13 }
 0x5b2   : > { %5940 = vrcp.f32 %v3393_v61  ;;  %v3982_v54 = vpack.c.b16 %v3973_v51, %v3972_v4  ;;  %v3586_v17 = vpack.c.bf16 %v3522_v48, %v3522_v48 }
 0x5b3   : > { %v5935_v27 = vpop.eup %5934 }
 0x5b4   : > { %v3329_v33 = vpop.xlane.xlu1 %3328  ;;  %v3474_v36 = vmul.f32 %v5935_v27, %v8298_v38  ;;  %v5937_v28 = vpop.eup %5936  ;;  %v4117_v29 = vunpack.c.l.b16 %v3586_v17  ;;  %v5613_v27 = vld [vmem:[%s8554_s6 + $0x20] sm:$0xff] }
 0x5b5   : > { %5942 = vrcp.f32 %v3329_v33  ;;  %v3490_v58 = vmul.f32 %v5937_v28, %v8285_v22  ;;  %v8436_v11 = vpop.f32.mrf.mxu0 }
 0x5b6   : > { %v3538_v47 = vpack.c.bf16 %v3474_v36, %v3474_v36 }
 0x5b7   : > { %v5939_v21 = vpop.eup %5938  ;;  %v3554_v44 = vpack.c.bf16 %v3490_v58, %v3490_v58 }
 0x5b8   : > { %v5941_v14 = vpop.eup %5940  ;;  %v3363_v7 = vpop.xlane.xlu2 %3362  ;;  %4078 = vmatmul.bf16.gmra.mxu2 %v3982_v54  ;;  %v3475_v38 = vmul.f32 %v5939_v21, %v8304_v16  ;;  %v5615_v16 = vld [vmem:[%s8554_s6 + $0x30] sm:$0xff]  ;;  %v3682_v53 = vunpack.c.l.b16 %v3538_v47 }
 0x5b9   : > { %5944 = vrcp.f32 %v3363_v7  ;;  %v3365_v8 = vpop.xlane.xlu0 %3364  ;;  %v3523_v12 = vmul.f32 %v5941_v14, %v8307_v32  ;;  %v5622_v32 = vld [vmem:[%s8554_s6 + $0x68] sm:$0xff]  ;;  %4528 = vmatpush.bf16.msrb.mxu1 %v5615_v16  ;;  %v3827_v18 = vunpack.c.l.b16 %v3554_v44 }
 0x5ba   : > { %5946 = vrcp.f32 %v3365_v8  ;;  %v3539_v60 = vpack.c.bf16 %v3475_v38, %v3475_v38  ;;  %4803 = vmatpush.bf16.msrb.mxu3 %v5622_v32 }
 0x5bb   : > { %v3587_v41 = vpack.c.bf16 %v3523_v12, %v3523_v12  ;;  %v5943_v15 = vpop.eup %5942 }
 0x5bc   : > { %v3683_v22 = vunpack.c.l.b16 %v3539_v60  ;;  %v3395_v57 = vpop.xlane.xlu1 %3394  ;;  %v3491_v43 = vmul.f32 %v5943_v15, %v8311_v24 }
 0x5bd   : > { %v4118_v39 = vunpack.c.l.b16 %v3587_v41  ;;  %5948 = vrcp.f32 %v3395_v57 }
 0x5be   : > { %v3692_v20 = vpack.c.b16 %v3683_v22, %v3682_v53  ;;  %v3555_v63 = vpack.c.bf16 %v3491_v43, %v3491_v43  ;;  %4804 = vmatpush.bf16.msrb.mxu3 %v5621_v1 }
 0x5bf   : > { %v5945_v55 = vpop.eup %5944  ;;  %v4127_v52 = vpack.c.b16 %v4118_v39, %v4117_v29 }
 0x5c0   : > { %v5947_v37 = vpop.eup %5946  ;;  %v3397_v24 = vpop.xlane.xlu2 %3396  ;;  %3788 = vmatmul.bf16.gmra.mxu0 %v3692_v20  ;;  %v3508_v5 = vmul.f32 %v5945_v55, %v8323_v35  ;;  %v3828_v6 = vunpack.c.l.b16 %v3555_v63  ;;  %v5614_v35 = vld [vmem:[%s8554_s6 + $0x28] sm:$0xff] }
 0x5c1   : > { %5950 = vrcp.f32 %v3397_v24  ;;  %4223 = vmatmul.bf16.gmra.mxu3 %v4127_v52  ;;  %v3299_v59 = vpop.xlane.xlu0 %3298  ;;  %v3509_v10 = vmul.f32 %v5947_v37, %v8325_v62  ;;  %v4049_v3 = vpop.f32.mrf.mxu2  ;;  %4529 = vmatpush.bf16.msrb.mxu1 %v5614_v35 }
 0x5c2   : > { %5952 = vrcp.f32 %v3299_v59  ;;  %v3572_v34 = vpack.c.bf16 %v3508_v5, %v3508_v5  ;;  %v3837_v49 = vpack.c.b16 %v3828_v6, %v3827_v18  ;;  %v8447_v62 = vpop.f32.mrf.mxu1  ;;  %v4266_v53 = vpack.c.bf16 %v4049_v3, %v4049_v3 }
 0x5c3   : > { %v5949_v19 = vpop.eup %5948  ;;  %v3573_v42 = vpack.c.bf16 %v3509_v10, %v3509_v10  ;;  %v4234_v5 = vpack.c.bf16 %v8436_v11, %v8436_v11  ;;  %v4250_v13 = vpack.c.bf16 %v8447_v62, %v8447_v62 }
 0x5c4   : > { %v3974_v23 = vunpack.c.l.b16 %v3572_v34  ;;  %v3301_v61 = vpop.xlane.xlu1 %3300  ;;  %3933 = vmatmul.bf16.gmra.mxu1 %v3837_v49  ;;  %v3524_v2 = vmul.f32 %v5949_v19, %v8330_v40  ;;  %v3761_v40 = vpop.f32.mrf.mxu0  ;;  %v4588_v55 = vunpack.c.l.b16 %v4266_v53 }
 0x5c5   : > { %5954 = vrcp.f32 %v3301_v61  ;;  %v3975_v51 = vunpack.c.l.b16 %v3573_v42  ;;  %4530 = vmatpush.bf16.msrb.mxu1 %v5613_v27  ;;  %v4235_v1 = vpack.c.bf16 %v3761_v40, %v3761_v40  ;;  %v4314_v49 = vunpack.c.l.b16 %v4234_v5 }
 0x5c6   : > { %v3588_v28 = vpack.c.bf16 %v3524_v2, %v3524_v2 }
 0x5c7   : > { %v5951_v46 = vpop.eup %5950  ;;  %v3983_v36 = vpack.c.b16 %v3975_v51, %v3974_v23  ;;  %v4315_v6 = vunpack.c.l.b16 %v4235_v1  ;;  %v4451_v51 = vunpack.c.l.b16 %v4250_v13 }
 0x5c8   : > { %v5953_v4 = vpop.eup %5952  ;;  %v3331_v33 = vpop.xlane.xlu2 %3330  ;;  %v3525_v48 = vmul.f32 %v5951_v46, %v8338_v45  ;;  %v4119_v7 = vunpack.c.l.b16 %v3588_v28 }
 0x5c9   : > { %5956 = vrcp.f32 %v3331_v33  ;;  %v3333_v54 = vpop.xlane.xlu0 %3332  ;;  %4083 = vmatmul.bf16.gmra.mxu2 %v3983_v36  ;;  %v3476_v30 = vmul.f32 %v5953_v4, %v8341_v0  ;;  %v4051_v8 = vpop.f32.mrf.mxu2  ;;  %v4330_v19 = vpack.c.b16 %v4315_v6, %v4314_v49 }
 0x5ca   : > { %5958 = vrcp.f32 %v3333_v54  ;;  %v3589_v21 = vpack.c.bf16 %v3525_v48, %v3525_v48  ;;  %v3906_v41 = vpop.f32.mrf.mxu1  ;;  %v4267_v9 = vpack.c.bf16 %v4051_v8, %v4051_v8 }
 0x5cb   : > { %v5955_v26 = vpop.eup %5954  ;;  %v3540_v12 = vpack.c.bf16 %v3476_v30, %v3476_v30  ;;  %v4251_v10 = vpack.c.bf16 %v3906_v41, %v3906_v41 }
 0x5cc   : > { %v4194_v14 = vpop.f32.mrf.mxu3  ;;  %v4120_v38 = vunpack.c.l.b16 %v3589_v21  ;;  %v3477_v47 = vmul.f32 %v5955_v26, %v8344_v50  ;;  %v3764_v50 = vpop.f32.mrf.mxu0  ;;  %v4589_v39 = vunpack.c.l.b16 %v4267_v9 }
 0x5cd   : > { %v3684_v0 = vunpack.c.l.b16 %v3540_v12  ;;  %v4452_v42 = vunpack.c.l.b16 %v4251_v10  ;;  %v4236_v30 = vpack.c.bf16 %v3764_v50, %v3764_v50 }
 0x5ce   : > { %v4128_v17 = vpack.c.b16 %v4120_v38, %v4119_v7  ;;  %v3541_v58 = vpack.c.bf16 %v3477_v47, %v3477_v47  ;;  %v4604_v25 = vpack.c.b16 %v4589_v39, %v4588_v55 }
 0x5cf   : > { %v5957_v45 = vpop.eup %5956  ;;  %v4467_v4 = vpack.c.b16 %v4452_v42, %v4451_v51  ;;  %v4316_v8 = vunpack.c.l.b16 %v4236_v30 }
 0x5d0   : > { %v5959_v60 = vpop.eup %5958  ;;  %v3492_v16 = vmul.f32 %v5957_v45, %v8350_v56  ;;  %v3685_v15 = vunpack.c.l.b16 %v3541_v58  ;;  %v4282_v56 = vpack.c.bf16 %v4194_v14, %v4194_v14 }
 0x5d1   : > { %v3493_v32 = vmul.f32 %v5959_v60, %v8353_v31  ;;  %4228 = vmatmul.bf16.gmra.mxu3 %v4128_v17 }
 0x5d2   : > { %v3556_v22 = vpack.c.bf16 %v3492_v16, %v3492_v16  ;;  %v3693_v57 = vpack.c.b16 %v3685_v15, %v3684_v0  ;;  %v3909_v31 = vpop.f32.mrf.mxu1  ;;  %v4725_v59 = vunpack.c.l.b16 %v4282_v56 }
 0x5d3   : > { %v3557_v29 = vpack.c.bf16 %v3493_v32, %v3493_v32  ;;  %v4252_v12 = vpack.c.bf16 %v3909_v31, %v3909_v31 }
 0x5d4   : > { %v4196_v43 = vpop.f32.mrf.mxu3  ;;  %v3829_v44 = vunpack.c.l.b16 %v3556_v22  ;;  %3793 = vmatmul.bf16.gmra.mxu0 %v3693_v57  ;;  %v3766_v18 = vpop.f32.mrf.mxu0 }
 0x5d5   : > { %v3830_v20 = vunpack.c.l.b16 %v3557_v29  ;;  %v4283_v52 = vpack.c.bf16 %v4196_v43, %v4196_v43  ;;  %v4237_v62 = vpack.c.bf16 %v3766_v18, %v3766_v18  ;;  %v4453_v41 = vunpack.c.l.b16 %v4252_v12 }
 0x5d7   : > { %v3838_v63 = vpack.c.b16 %v3830_v20, %v3829_v44  ;;  %v4726_v37 = vunpack.c.l.b16 %v4283_v52  ;;  %v4317_v14 = vunpack.c.l.b16 %v4237_v62 }
 0x5d9   : > { %3938 = vmatmul.bf16.gmra.mxu1 %v3838_v63  ;;  %5475 = vmatmul.msk.bf16.vlgmr.msrb.gmra.mxu2 %vm2321_vm1, %v4604_v25  ;;  %v4741_v34 = vpack.c.b16 %v4726_v37, %v4725_v59  ;;  %v4331_v17 = vpack.c.b16 %v4317_v14, %v4316_v8 }
 0x5da   : > { %v3911_v61 = vpop.f32.mrf.mxu1 }
 0x5db   : > { %v4054_v24 = vpop.f32.mrf.mxu2  ;;  %v4253_v7 = vpack.c.bf16 %v3911_v61, %v3911_v61 }
 0x5dc   : > { %v4268_v35 = vpack.c.bf16 %v4054_v24, %v4054_v24 }
 0x5dd   : > { %v3769_v46 = vpop.f32.mrf.mxu0  ;;  %v4454_v45 = vunpack.c.l.b16 %v4253_v7 }
 0x5de   : > { %v4590_v11 = vunpack.c.l.b16 %v4268_v35  ;;  %v4238_v50 = vpack.c.bf16 %v3769_v46, %v3769_v46 }
 0x5df   : > { %v4199_v3 = vpop.f32.mrf.mxu3  ;;  %v4468_v32 = vpack.c.b16 %v4454_v45, %v4453_v41 }
 0x5e0   : > { %v4284_v48 = vpack.c.bf16 %v4199_v3, %v4199_v3  ;;  %v4318_v55 = vunpack.c.l.b16 %v4238_v50 }
 0x5e1   : > { %5499 = vmatmul.msk.bf16.vlgmr.msrb.gmra.mxu3 %vm2321_vm1, %v4741_v34 }
 0x5e2   : > { %v3914_v40 = vpop.f32.mrf.mxu1  ;;  %v4727_v26 = vunpack.c.l.b16 %v4284_v48 }
 0x5e3   : > { %v4056_v23 = vpop.f32.mrf.mxu2  ;;  %v4254_v52 = vpack.c.bf16 %v3914_v40, %v3914_v40 }
 0x5e4   : > { %v4269_v2 = vpack.c.bf16 %v4056_v23, %v4056_v23  ;;  %5427 = vmatmul.msk.bf16.vlgmr.msrb.gmra.mxu0 %vm2321_vm1, %v4330_v19 }
 0x5e5   : > { %v3771_v47 = vpop.f32.mrf.mxu0  ;;  %v4455_v24 = vunpack.c.l.b16 %v4254_v52 }
 0x5e6   : > { %v4591_v27 = vunpack.c.l.b16 %v4269_v2  ;;  %v4239_v57 = vpack.c.bf16 %v3771_v47, %v3771_v47 }
 0x5e7   : > { %v4201_v36 = vpop.f32.mrf.mxu3 }
 0x5e8   : > { %v4605_v33 = vpack.c.b16 %v4591_v27, %v4590_v11  ;;  %v4285_v28 = vpack.c.bf16 %v4201_v36, %v4201_v36  ;;  %v4319_v43 = vunpack.c.l.b16 %v4239_v57 }
 0x5e9   : > { %5451 = vmatmul.msk.bf16.vlgmr.msrb.gmra.mxu1 %vm2321_vm1, %v4467_v4 }
 0x5ea   : > { %5476 = vmatmul.msk.bf16.gmra.mxu2 %vm2321_vm1, %v4605_v33  ;;  %v4728_v54 = vunpack.c.l.b16 %v4285_v28  ;;  %v3916_v16 = vpop.f32.mrf.mxu1  ;;  %v4332_v25 = vpack.c.b16 %v4319_v43, %v4318_v55 }
 0x5eb   : > { %v4255_v44 = vpack.c.bf16 %v3916_v16, %v3916_v16 }
 0x5ec   : > { %v4059_v21 = vpop.f32.mrf.mxu2  ;;  %v4742_v38 = vpack.c.b16 %v4728_v54, %v4727_v26 }
 0x5ed   : > { %v4270_v58 = vpack.c.bf16 %v4059_v21, %v4059_v21  ;;  %v4456_v56 = vunpack.c.l.b16 %v4255_v44 }
 0x5ee   : > { %v3774_v22 = vpop.f32.mrf.mxu0 }
 0x5ef   : > { %v4592_v0 = vunpack.c.l.b16 %v4270_v58  ;;  %v4469_v18 = vpack.c.b16 %v4456_v56, %v4455_v24  ;;  %v4240_v61 = vpack.c.bf16 %v3774_v22, %v3774_v22 }
 0x5f1   : > { %5500 = vmatmul.msk.bf16.gmra.mxu3 %vm2321_vm1, %v4742_v38  ;;  %v4320_v46 = vunpack.c.l.b16 %v4240_v61 }
 0x5f4   : > { %v4061_v60 = vpop.f32.mrf.mxu2  ;;  %5428 = vmatmul.msk.bf16.gmra.mxu0 %vm2321_vm1, %v4331_v17 }
 0x5f5   : > { %v4271_v9 = vpack.c.bf16 %v4061_v60, %v4061_v60 }
 0x5f6   : > { %v3776_v1 = vpop.f32.mrf.mxu0 }
 0x5f7   : > { %v4593_v15 = vunpack.c.l.b16 %v4271_v9  ;;  %v4241_v13 = vpack.c.bf16 %v3776_v1, %v3776_v1 }
 0x5f9   : > { %v4606_v53 = vpack.c.b16 %v4593_v15, %v4592_v0  ;;  %5452 = vmatmul.msk.bf16.gmra.mxu1 %vm2321_vm1, %v4468_v32  ;;  %v4321_v51 = vunpack.c.l.b16 %v4241_v13 }
 0x5fb   : > { %5477 = vmatmul.msk.bf16.gmra.mxu2 %vm2321_vm1, %v4606_v53  ;;  %v4204_v29 = vpop.f32.mrf.mxu3  ;;  %v4333_v33 = vpack.c.b16 %v4321_v51, %v4320_v46 }
 0x5fc   : > { %v4286_v63 = vpack.c.bf16 %v4204_v29, %v4204_v29 }
 0x5fd   : > { %v3919_v39 = vpop.f32.mrf.mxu1 }
 0x5fe   : > { %v4729_v5 = vunpack.c.l.b16 %v4286_v63  ;;  %v4256_v27 = vpack.c.bf16 %v3919_v39, %v3919_v39 }
 0x5ff   : > { %v4064_v20 = vpop.f32.mrf.mxu2 }
 0x600   : > { %v4272_v6 = vpack.c.bf16 %v4064_v20, %v4064_v20  ;;  %v4457_v62 = vunpack.c.l.b16 %v4256_v27 }
 0x601   : > { %v3779_v42 = vpop.f32.mrf.mxu0 }
 0x602   : > { %v4594_v35 = vunpack.c.l.b16 %v4272_v6  ;;  %v4242_v8 = vpack.c.bf16 %v3779_v42, %v3779_v42 }
 0x603   : > { %v4206_v31 = vpop.f32.mrf.mxu3 }
 0x604   : > { %v4287_v37 = vpack.c.bf16 %v4206_v31, %v4206_v31  ;;  %5429 = vmatmul.msk.bf16.gmra.mxu0 %vm2321_vm1, %v4332_v25  ;;  %v4322_v60 = vunpack.c.l.b16 %v4242_v8 }
 0x605   : > { %v3921_v34 = vpop.f32.mrf.mxu1 }
 0x606   : > { %v4730_v59 = vunpack.c.l.b16 %v4287_v37  ;;  %v4257_v11 = vpack.c.bf16 %v3921_v34, %v3921_v34 }
 0x607   : > { %v4066_v3 = vpop.f32.mrf.mxu2 }
 0x608   : > { %v4743_v10 = vpack.c.b16 %v4730_v59, %v4729_v5  ;;  %v4273_v49 = vpack.c.bf16 %v4066_v3, %v4066_v3  ;;  %v4458_v36 = vunpack.c.l.b16 %v4257_v11 }
 0x609   : > { %5453 = vmatmul.msk.bf16.gmra.mxu1 %vm2321_vm1, %v4469_v18  ;;  %v3781_v40 = vpop.f32.mrf.mxu0 }
 0x60a   : > { %5501 = vmatmul.msk.bf16.gmra.mxu3 %vm2321_vm1, %v4743_v10  ;;  %v4595_v19 = vunpack.c.l.b16 %v4273_v49  ;;  %v4470_v21 = vpack.c.b16 %v4458_v36, %v4457_v62  ;;  %v4243_v7 = vpack.c.bf16 %v3781_v40, %v3781_v40 }
 0x60c   : > { %v4209_v23 = vpop.f32.mrf.mxu3  ;;  %v4607_v2 = vpack.c.b16 %v4595_v19, %v4594_v35  ;;  %v4323_v17 = vunpack.c.l.b16 %v4243_v7 }
 0x60d   : > { %v4288_v48 = vpack.c.bf16 %v4209_v23, %v4209_v23 }
 0x60e   : > { %5478 = vmatmul.msk.bf16.gmra.mxu2 %vm2321_vm1, %v4607_v2  ;;  %v3924_v4 = vpop.f32.mrf.mxu1  ;;  %v4334_v16 = vpack.c.b16 %v4323_v17, %v4322_v60 }
 0x60f   : > { %v4731_v30 = vunpack.c.l.b16 %v4288_v48  ;;  %v4258_v41 = vpack.c.bf16 %v3924_v4, %v3924_v4 }
 0x611   : > { %v4459_v53 = vunpack.c.l.b16 %v4258_v41 }
 0x614   : > { %v4211_v28 = vpop.f32.mrf.mxu3  ;;  %5430 = vmatmul.msk.bf16.gmra.mxu0 %vm2321_vm1, %v4333_v33 }
 0x615   : > { %v4289_v54 = vpack.c.bf16 %v4211_v28, %v4211_v28 }
 0x616   : > { %v3926_v47 = vpop.f32.mrf.mxu1 }
 0x617   : > { %v4732_v26 = vunpack.c.l.b16 %v4289_v54  ;;  %v4259_v45 = vpack.c.bf16 %v3926_v47, %v3926_v47 }
 0x619   : > { %v4744_v14 = vpack.c.b16 %v4732_v26, %v4731_v30  ;;  %5454 = vmatmul.msk.bf16.gmra.mxu1 %vm2321_vm1, %v4470_v21  ;;  %v4460_v32 = vunpack.c.l.b16 %v4259_v45 }
 0x61b   : > { %5502 = vmatmul.msk.bf16.gmra.mxu3 %vm2321_vm1, %v4744_v14  ;;  %v4069_v38 = vpop.f32.mrf.mxu2  ;;  %v4471_v29 = vpack.c.b16 %v4460_v32, %v4459_v53 }
 0x61c   : > { %v4274_v9 = vpack.c.bf16 %v4069_v38, %v4069_v38 }
 0x61e   : > { %v3784_v12 = vpop.f32.mrf.mxu0  ;;  %v4596_v22 = vunpack.c.l.b16 %v4274_v9 }
 0x61f   : > { %v4214_v58 = vpop.f32.mrf.mxu3  ;;  %v4244_v56 = vpack.c.bf16 %v3784_v12, %v3784_v12 }
 0x620   : > { %v4290_v50 = vpack.c.bf16 %v4214_v58, %v4214_v58 }
 0x621   : > { %v4324_v5 = vunpack.c.l.b16 %v4244_v56 }
 0x622   : > { %v4733_v55 = vunpack.c.l.b16 %v4290_v50 }
 0x623   : > { %v4071_v0 = vpop.f32.mrf.mxu2 }
 0x624   : > { %v4275_v15 = vpack.c.bf16 %v4071_v0, %v4071_v0  ;;  %5431 = vmatmul.msk.bf16.gmra.mxu0 %vm2321_vm1, %v4334_v16 }
 0x626   : > { %v4597_v57 = vunpack.c.l.b16 %v4275_v15  ;;  %v3786_v43 = vpop.f32.mrf.mxu0 }
 0x627   : > { %v4216_v44 = vpop.f32.mrf.mxu3  ;;  %v4245_v52 = vpack.c.bf16 %v3786_v43, %v3786_v43 }
 0x628   : > { %v4608_v39 = vpack.c.b16 %v4597_v57, %v4596_v22  ;;  %v4291_v20 = vpack.c.bf16 %v4216_v44, %v4216_v44 }
 0x629   : > { %5455 = vmatmul.msk.bf16.gmra.mxu1 %vm2321_vm1, %v4471_v29  ;;  %v4325_v37 = vunpack.c.l.b16 %v4245_v52 }
 0x62a   : > { %5479 = vmatmul.msk.bf16.gmra.mxu2 %vm2321_vm1, %v4608_v39  ;;  %v4734_v63 = vunpack.c.l.b16 %v4291_v20 }
 0x62b   : > { %v4074_v25 = vpop.f32.mrf.mxu2  ;;  %v4335_v18 = vpack.c.b16 %v4325_v37, %v4324_v5 }
 0x62c   : > { %v4745_v31 = vpack.c.b16 %v4734_v63, %v4733_v55  ;;  %v4276_v59 = vpack.c.bf16 %v4074_v25, %v4074_v25 }
 0x62d   : > { %v3929_v1 = vpop.f32.mrf.mxu1 }
 0x62e   : > { %5503 = vmatmul.msk.bf16.gmra.mxu3 %vm2321_vm1, %v4745_v31  ;;  %v4260_v10 = vpack.c.bf16 %v3929_v1, %v3929_v1  ;;  %v4598_v49 = vunpack.c.l.b16 %v4276_v59 }
 0x62f   : > { %v4219_v24 = vpop.f32.mrf.mxu3 }
 0x630   : > { %v4292_v19 = vpack.c.bf16 %v4219_v24, %v4219_v24  ;;  %v4461_v42 = vunpack.c.l.b16 %v4260_v10 }
 0x632   : > { %v4735_v46 = vunpack.c.l.b16 %v4292_v19 }
 0x633   : > { %v4076_v6 = vpop.f32.mrf.mxu2 }
 0x634   : > { %v4277_v34 = vpack.c.bf16 %v4076_v6, %v4076_v6  ;;  %5432 = vmatmul.msk.bf16.gmra.mxu0 %vm2321_vm1, %v4335_v18 }
 0x635   : > { %v3931_v3 = vpop.f32.mrf.mxu1 }
 0x636   : > { %v4599_v13 = vunpack.c.l.b16 %v4277_v34  ;;  %v4261_v35 = vpack.c.bf16 %v3931_v3, %v3931_v3 }
 0x637   : > { %v4221_v2 = vpop.f32.mrf.mxu3 }
 0x638   : > { %v4609_v23 = vpack.c.b16 %v4599_v13, %v4598_v49  ;;  %v4462_v61 = vunpack.c.l.b16 %v4261_v35  ;;  %v4293_v51 = vpack.c.bf16 %v4221_v2, %v4221_v2 }
 0x63a   : > { %v4472_v11 = vpack.c.b16 %v4462_v61, %v4461_v42  ;;  %5480 = vmatmul.msk.bf16.gmra.mxu2 %vm2321_vm1, %v4609_v23  ;;  %v4736_v27 = vunpack.c.l.b16 %v4293_v51 }
 0x63b   : > { %v4079_v4 = vpop.f32.mrf.mxu2 }
 0x63c   : > { %5456 = vmatmul.msk.bf16.gmra.mxu1 %vm2321_vm1, %v4472_v11  ;;  %v4746_v33 = vpack.c.b16 %v4736_v27, %v4735_v46  ;;  %v4278_v48 = vpack.c.bf16 %v4079_v4, %v4079_v4 }
 0x63d   : > { %v3789_v36 = vpop.f32.mrf.mxu0 }
 0x63e   : > { %5504 = vmatmul.msk.bf16.gmra.mxu3 %vm2321_vm1, %v4746_v33  ;;  %v4246_v54 = vpack.c.bf16 %v3789_v36, %v3789_v36  ;;  %v4600_v26 = vunpack.c.l.b16 %v4278_v48 }
 0x640   : > { %v4326_v38 = vunpack.c.l.b16 %v4246_v54 }
 0x641   : > { %v3934_v28 = vpop.f32.mrf.mxu1 }
 0x642   : > { %v4262_v12 = vpack.c.bf16 %v3934_v28, %v3934_v28 }
 0x643   : > { %v4081_v62 = vpop.f32.mrf.mxu2 }
 0x644   : > { %v4279_v40 = vpack.c.bf16 %v4081_v62, %v4081_v62  ;;  %v4224_v21 = vpop.f32.mrf.mxu3  ;;  %v4463_v9 = vunpack.c.l.b16 %v4262_v12 }
 0x645   : > { %v3791_v30 = vpop.f32.mrf.mxu0  ;;  %v4294_v58 = vpack.c.bf16 %v4224_v21, %v4224_v21 }
 0x646   : > { %v4601_v14 = vunpack.c.l.b16 %v4279_v40  ;;  %v4247_v7 = vpack.c.bf16 %v3791_v30, %v3791_v30 }
 0x647   : > { %v4737_v15 = vunpack.c.l.b16 %v4294_v58 }
 0x648   : > { %v4610_v47 = vpack.c.b16 %v4601_v14, %v4600_v26  ;;  %v4327_v8 = vunpack.c.l.b16 %v4247_v7 }
 0x649   : > { %v3936_v45 = vpop.f32.mrf.mxu1 }
 0x64a   : > { %v4336_v17 = vpack.c.b16 %v4327_v8, %v4326_v38  ;;  %5481 = vmatmul.msk.bf16.gmra.mxu2 %vm2321_vm1, %v4610_v47  ;;  %v4263_v60 = vpack.c.bf16 %v3936_v45, %v3936_v45 }
 0x64c   : > { %v4226_v41 = vpop.f32.mrf.mxu3  ;;  %5433 = vmatmul.msk.bf16.gmra.mxu0 %vm2321_vm1, %v4336_v17  ;;  %v4464_v16 = vunpack.c.l.b16 %v4263_v60  ;;  %v4084_v32 = vpop.f32.mrf.mxu2 }
 0x64d   : > { %v4295_v0 = vpack.c.bf16 %v4226_v41, %v4226_v41  ;;  %v4280_v50 = vpack.c.bf16 %v4084_v32, %v4084_v32 }
 0x64e   : > { %v4473_v53 = vpack.c.b16 %v4464_v16, %v4463_v9 }
 0x64f   : > { %v4738_v22 = vunpack.c.l.b16 %v4295_v0  ;;  %v4602_v55 = vunpack.c.l.b16 %v4280_v50 }
 0x650   : > { %5457 = vmatmul.msk.bf16.gmra.mxu1 %vm2321_vm1, %v4473_v53 }
 0x651   : > { %v4747_v57 = vpack.c.b16 %v4738_v22, %v4737_v15  ;;  %v3794_v29 = vpop.f32.mrf.mxu0 }
 0x652   : > { %v4248_v63 = vpack.c.bf16 %v3794_v29, %v3794_v29 }
 0x653   : > { %5505 = vmatmul.msk.bf16.gmra.mxu3 %vm2321_vm1, %v4747_v57 }
 0x654   : > { %v4229_v39 = vpop.f32.mrf.mxu3  ;;  %v4086_v43 = vpop.f32.mrf.mxu2  ;;  %v4328_v24 = vunpack.c.l.b16 %v4248_v63 }
 0x655   : > { %v4281_v44 = vpack.c.bf16 %v4086_v43, %v4086_v43  ;;  %v4296_v31 = vpack.c.bf16 %v4229_v39, %v4229_v39 }
 0x656   : > { %v3939_v20 = vpop.f32.mrf.mxu1 }
 0x657   : > { %v4603_v52 = vunpack.c.l.b16 %v4281_v44  ;;  %v4264_v5 = vpack.c.bf16 %v3939_v20, %v3939_v20  ;;  %v4739_v10 = vunpack.c.l.b16 %v4296_v31 }
 0x659   : > { %v4611_v25 = vpack.c.b16 %v4603_v52, %v4602_v55  ;;  %v3796_v56 = vpop.f32.mrf.mxu0  ;;  %v4465_v13 = vunpack.c.l.b16 %v4264_v5 }
 0x65a   : > { %v4249_v1 = vpack.c.bf16 %v3796_v56, %v3796_v56 }
 0x65b   : > { %5482 = vmatmul.msk.bf16.gmra.mxu2 %vm2321_vm1, %v4611_v25 }
 0x65c   : > { %v4231_v37 = vpop.f32.mrf.mxu3  ;;  %v4329_v59 = vunpack.c.l.b16 %v4249_v1  ;;  %v4669_v42 = vpop.f32.mrf.mxu2 }
 0x65d   : > { %v4297_v18 = vpack.c.bf16 %v4231_v37, %v4231_v37 }
 0x65e   : > { %v3941_v6 = vpop.f32.mrf.mxu1  ;;  %v4337_v34 = vpack.c.b16 %v4329_v59, %v4328_v24 }
 0x65f   : > { %v4740_v3 = vunpack.c.l.b16 %v4297_v18  ;;  %v4265_v49 = vpack.c.bf16 %v3941_v6, %v3941_v6 }
 0x660   : > { %5434 = vmatmul.msk.bf16.gmra.mxu0 %vm2321_vm1, %v4337_v34 }
 0x661   : > { %v4748_v35 = vpack.c.b16 %v4740_v3, %v4739_v10  ;;  %v4466_v19 = vunpack.c.l.b16 %v4265_v49  ;;  %v4395_v23 = vpop.f32.mrf.mxu0 }
 0x663   : > { %v4474_v61 = vpack.c.b16 %v4466_v19, %v4465_v13  ;;  %5506 = vmatmul.msk.bf16.gmra.mxu3 %vm2321_vm1, %v4748_v35 }
 0x664   : > { %v4806_v2 = vpop.f32.mrf.mxu3  ;;  %v4671_v33 = vpop.f32.mrf.mxu2 }
 0x665   : > { %5458 = vmatmul.msk.bf16.gmra.mxu1 %vm2321_vm1, %v4474_v61 }
 0x666   : > { %v4532_v51 = vpop.f32.mrf.mxu1 }
 0x667   : > { %v4846_v11 = vadd.f32 %v4532_v51, %v4395_v23 }
 0x669   : > { %v4847_v46 = vadd.f32 %v4846_v11, %v4669_v42  ;;  %v4397_v27 = vpop.f32.mrf.mxu0 }
 0x66b   : > { %v4848_v4 = vadd.f32 %v4847_v46, %v4806_v2 }
 0x66c   : > { %v4808_v36 = vpop.f32.mrf.mxu3 }
 0x66d   : > { %4894 = vst [vmem:[%s8496_s14] sm:$0xff] %v4848_v4  ;;  %v4674_v21 = vpop.f32.mrf.mxu2 }
 0x66e   : > { %v4534_v48 = vpop.f32.mrf.mxu1 }
 0x66f   : > { %v4849_v28 = vadd.f32 %v4534_v48, %v4397_v27 }
 0x671   : > { %v4850_v62 = vadd.f32 %v4849_v28, %v4671_v33  ;;  %v4400_v54 = vpop.f32.mrf.mxu0 }
 0x673   : > { %v4851_v40 = vadd.f32 %v4850_v62, %v4808_v36 }
 0x674   : > { %v4811_v14 = vpop.f32.mrf.mxu3 }
 0x675   : > { %4895 = vst [vmem:[%s8496_s14 + $0x8] sm:$0xff] %v4851_v40  ;;  %v4676_v8 = vpop.f32.mrf.mxu2 }
 0x676   : > { %v4537_v30 = vpop.f32.mrf.mxu1 }
 0x677   : > { %v4852_v26 = vadd.f32 %v4537_v30, %v4400_v54 }
 0x679   : > { %v4853_v7 = vadd.f32 %v4852_v26, %v4674_v21  ;;  %v4402_v38 = vpop.f32.mrf.mxu0 }
 0x67b   : > { %v4854_v47 = vadd.f32 %v4853_v7, %v4811_v14 }
 0x67c   : > { %v4813_v58 = vpop.f32.mrf.mxu3 }
 0x67d   : > { %4896 = vst [vmem:[%s8496_s14 + $0x10] sm:$0xff] %v4854_v47 }
 0x67e   : > { %v4539_v12 = vpop.f32.mrf.mxu1  ;;  %v4679_v16 = vpop.f32.mrf.mxu2 }
 0x67f   : > { %v4855_v17 = vadd.f32 %v4539_v12, %v4402_v38 }
 0x681   : > { %v4856_v45 = vadd.f32 %v4855_v17, %v4676_v8  ;;  %v4405_v60 = vpop.f32.mrf.mxu0 }
 0x683   : > { %v4857_v41 = vadd.f32 %v4856_v45, %v4813_v58 }
 0x685   : > { %4897 = vst [vmem:[%s8496_s14 + $0x18] sm:$0xff] %v4857_v41 }
 0x686   : > { %v4542_v9 = vpop.f32.mrf.mxu1  ;;  %v4681_v50 = vpop.f32.mrf.mxu2 }
 0x687   : > { %v4858_v32 = vadd.f32 %v4542_v9, %v4405_v60 }
 0x689   : > { %v4407_v0 = vpop.f32.mrf.mxu0  ;;  %v4859_v15 = vadd.f32 %v4858_v32, %v4679_v16 }
 0x68d   : > { %v4816_v53 = vpop.f32.mrf.mxu3 }
 0x68e   : > { %v4544_v22 = vpop.f32.mrf.mxu1  ;;  %v4860_v57 = vadd.f32 %v4859_v15, %v4816_v53 }
 0x68f   : > { %v4861_v29 = vadd.f32 %v4544_v22, %v4407_v0 }
 0x690   : > { %4898 = vst [vmem:[%s8496_s14 + $0x20] sm:$0xff] %v4860_v57 }
 0x691   : > { %v4410_v39 = vpop.f32.mrf.mxu0  ;;  %v4862_v43 = vadd.f32 %v4861_v29, %v4681_v50  ;;  %v4684_v63 = vpop.f32.mrf.mxu2 }
 0x695   : > { %v4818_v44 = vpop.f32.mrf.mxu3 }
 0x696   : > { %v4547_v20 = vpop.f32.mrf.mxu1  ;;  %v4863_v55 = vadd.f32 %v4862_v43, %v4818_v44 }
 0x697   : > { %v4864_v52 = vadd.f32 %v4547_v20, %v4410_v39 }
 0x698   : > { %4899 = vst [vmem:[%s8496_s14 + $0x28] sm:$0xff] %v4863_v55 }
 0x699   : > { %v4412_v25 = vpop.f32.mrf.mxu0  ;;  %v4865_v56 = vadd.f32 %v4864_v52, %v4684_v63  ;;  %v4686_v5 = vpop.f32.mrf.mxu2 }
 0x69e   : > { %v4549_v31 = vpop.f32.mrf.mxu1  ;;  %v4821_v1 = vpop.f32.mrf.mxu3 }
 0x69f   : > { %v4866_v37 = vadd.f32 %v4865_v56, %v4821_v1  ;;  %v4867_v24 = vadd.f32 %v4549_v31, %v4412_v25 }
 0x6a1   : > { %4900 = vst [vmem:[%s8496_s14 + $0x30] sm:$0xff] %v4866_v37  ;;  %v4868_v59 = vadd.f32 %v4867_v24, %v4686_v5  ;;  %v4415_v6 = vpop.f32.mrf.mxu0 }
 0x6a6   : > { %v4823_v18 = vpop.f32.mrf.mxu3  ;;  %v4552_v34 = vpop.f32.mrf.mxu1 }
 0x6a7   : > { %v4869_v10 = vadd.f32 %v4868_v59, %v4823_v18  ;;  %v4870_v49 = vadd.f32 %v4552_v34, %v4415_v6 }
 0x6a9   : > { %4901 = vst [vmem:[%s8496_s14 + $0x38] sm:$0xff] %v4869_v10  ;;  %v4417_v13 = vpop.f32.mrf.mxu0 }
 0x6ad   : > { %v4689_v3 = vpop.f32.mrf.mxu2 }
 0x6ae   : > { %v4871_v35 = vadd.f32 %v4870_v49, %v4689_v3  ;;  %v4554_v19 = vpop.f32.mrf.mxu1 }
 0x6af   : > { %v4873_v2 = vadd.f32 %v4554_v19, %v4417_v13 }
 0x6b1   : > { %v4826_v42 = vpop.f32.mrf.mxu3  ;;  %v4420_v27 = vpop.f32.mrf.mxu0 }
 0x6b2   : > { %v4872_v23 = vadd.f32 %v4871_v35, %v4826_v42 }
 0x6b4   : > { %4902 = vst [vmem:[%s8496_s14 + $0x40] sm:$0xff] %v4872_v23 }
 0x6b5   : > { %v4691_v61 = vpop.f32.mrf.mxu2 }
 0x6b6   : > { %v4874_v51 = vadd.f32 %v4873_v2, %v4691_v61 }
 0x6b9   : > { %v4557_v11 = vpop.f32.mrf.mxu1  ;;  %v4828_v46 = vpop.f32.mrf.mxu3 }
 0x6ba   : > { %v4875_v4 = vadd.f32 %v4874_v51, %v4828_v46  ;;  %v4876_v36 = vadd.f32 %v4557_v11, %v4420_v27  ;;  %v4422_v40 = vpop.f32.mrf.mxu0 }
 0x6bc   : > { %4903 = vst [vmem:[%s8496_s14 + $0x48] sm:$0xff] %v4875_v4 }
 0x6bd   : > { %v4694_v33 = vpop.f32.mrf.mxu2 }
 0x6be   : > { %v4877_v48 = vadd.f32 %v4876_v36, %v4694_v33 }
 0x6c1   : > { %v4831_v28 = vpop.f32.mrf.mxu3  ;;  %v4559_v54 = vpop.f32.mrf.mxu1 }
 0x6c2   : > { %v4878_v62 = vadd.f32 %v4877_v48, %v4831_v28  ;;  %v4879_v30 = vadd.f32 %v4559_v54, %v4422_v40 }
 0x6c4   : > { %4904 = vst [vmem:[%s8496_s14 + $0x50] sm:$0xff] %v4878_v62 }
 0x6c5   : > { %v4696_v21 = vpop.f32.mrf.mxu2 }
 0x6c6   : > { %v4880_v26 = vadd.f32 %v4879_v30, %v4696_v21 }
 0x6c9   : > { %v4833_v14 = vpop.f32.mrf.mxu3  ;;  %v4425_v38 = vpop.f32.mrf.mxu0 }
 0x6ca   : > { %v4881_v7 = vadd.f32 %v4880_v26, %v4833_v14 }
 0x6cc   : > { %4905 = vst [vmem:[%s8496_s14 + $0x58] sm:$0xff] %v4881_v7 }
 0x6cd   : > { %v4562_v47 = vpop.f32.mrf.mxu1  ;;  %v4699_v8 = vpop.f32.mrf.mxu2 }
 0x6ce   : > { %v4882_v12 = vadd.f32 %v4562_v47, %v4425_v38 }
 0x6d0   : > { %v4883_v17 = vadd.f32 %v4882_v12, %v4699_v8 }
 0x6d1   : > { %v4427_v41 = vpop.f32.mrf.mxu0 }
 0x6d5   : > { %v4564_v45 = vpop.f32.mrf.mxu1  ;;  %v4701_v9 = vpop.f32.mrf.mxu2 }
 0x6d6   : > { %v4836_v58 = vpop.f32.mrf.mxu3  ;;  %v4885_v16 = vadd.f32 %v4564_v45, %v4427_v41 }
 0x6d7   : > { %v4884_v60 = vadd.f32 %v4883_v17, %v4836_v58 }
 0x6d8   : > { %v4886_v32 = vadd.f32 %v4885_v16, %v4701_v9 }
 0x6d9   : > { %4906 = vst [vmem:[%s8496_s14 + $0x60] sm:$0xff] %v4884_v60 }
 0x6dd   : > { %v4430_v53 = vpop.f32.mrf.mxu0 }
 0x6de   : > { %v4838_v0 = vpop.f32.mrf.mxu3  ;;  %v4704_v22 = vpop.f32.mrf.mxu2 }
 0x6df   : > { %v4887_v15 = vadd.f32 %v4886_v32, %v4838_v0 }
 0x6e1   : > { %4907 = vst [vmem:[%s8496_s14 + $0x68] sm:$0xff] %v4887_v15 }
 0x6e2   : > { %v4567_v57 = vpop.f32.mrf.mxu1 }
 0x6e3   : > { %v4888_v29 = vadd.f32 %v4567_v57, %v4430_v53 }
 0x6e5   : > { %v4889_v50 = vadd.f32 %v4888_v29, %v4704_v22  ;;  %v4432_v44 = vpop.f32.mrf.mxu0 }
 0x6e6   : > { %v4841_v39 = vpop.f32.mrf.mxu3  ;;  %v4706_v52 = vpop.f32.mrf.mxu2 }
 0x6e7   : > { %v4890_v43 = vadd.f32 %v4889_v50, %v4841_v39 }
 0x6e9   : > { %4908 = vst [vmem:[%s8496_s14 + $0x70] sm:$0xff] %v4890_v43 }
 0x6ea   : > { %v4569_v20 = vpop.f32.mrf.mxu1 }
 0x6eb   : > { %v4891_v55 = vadd.f32 %v4569_v20, %v4432_v44 }
 0x6ed   : > { %v4892_v63 = vadd.f32 %v4891_v55, %v4706_v52 }
 0x6ee   : > { %v4843_v25 = vpop.f32.mrf.mxu3 }
 0x6ef   : > { %v4893_v56 = vadd.f32 %v4892_v63, %v4843_v25 }
 0x6f1   : > { %4909 = vst [vmem:[%s8496_s14 + $0x78] sm:$0xff] %v4893_v56 }
 0x6f2   : > { %5987 = shalt.err (!%p5984_p3)
}
 0x6f3   : > { %s6025_s9 = smov 128   ;;  %s6026_s14 = smov 8  }
 0x6f4   : > { %5626 = dma.vmem_to_hbm [thread:$0]  (%p6105_p5), %s4924_s20, 2048, %s4926_s17, %s4911_s28, %s6025_s9, %s6025_s9, %s6026_s14  }
 0x6f5 PF: > { %p5632_p4 = scmp.ge.s32.totalorder %s6022_s27, 2  ;;  %s4940_s16 = sand.u32 1, %s6010_s24  }
 0x6f6   : > { %s4941_s18 = scalar_lea.sflag [#allocation3], %s4940_s16 }
 0x6f7   : > { %p5629_p7 = pnand %p5632_p4, %p6109_p6 }
 0x6f9   : > { %p5630_p8 = pneg %p5629_p7 }
 0x6fb   : > { %6005 = dma.done.wait (%p5630_p8), %s4941_s18, 2048  }
 0x6fc   : > { %6007 = vsyncadd (%p5630_p8), %s4941_s18, 4294965248  ;;  %p17_p9 = scmp.ge.s32.totalorder %s6092_s30, 4   ;;  %s8982_s24 = smov %s6014_s25 }
 0x6fd   : > { %s8983_s25 = smov %s6018_s26  ;;  %s8984_s26 = smov %s6103_s10 }
 0x6fe   : > { %s8985_s27 = smov %s6092_s30  ;;  %19 = sbr.rel (!%p17_p9) target bundleno = 3 (0x3), region = 83 }
 0x703   :  { %4947 = vsyncpa [#allocation3], 1 }
 0x704   :  { %4949 = vsyncpa [#allocation3 + $0x1], 1 }

</bundles_post_ra>
